<compile_context>
chip_gen: v5e
topology: v5e:2x2
jax: 0.10.0
libtpu: 0.0.40
codegen_flags: <defaults>
</compile_context>

<pallas_src>
import functools

import jax
import jax.numpy as jnp
from jax import lax
from jax.experimental import pallas as pl
from jax.experimental.pallas import tpu as pltpu


# ==========================================================================
# Fused kernel: whole Generator forward for one batch element per grid step.
# ==========================================================================
def _generator_kernel(img_ref, enc_ref,
                      lin_w_ref, lin_b_ref,
                      w_qkv_ref, b_qkv_ref, wo_ref, bo_ref, ln1_g_ref, ln1_b_ref,
                      w1_ref, b1_ref, w2_ref, b2_ref, ln2_g_ref, ln2_b_ref,
                      wv_ref,
                      bd_self_ref, seg_self_ref, bd_cross_ref, seg_cross_ref,
                      o_ref, *, num_heads, eps):
    f32 = jnp.float32
    bf16 = jnp.bfloat16

    # -------- stage 1: (x - mean)/std over d_model  +  Linear(196 -> S) -----
    x = img_ref[0].astype(f32)                                  # (N=196, D)
    fea = x.shape[-1]
    mu = jnp.mean(x, axis=-1, keepdims=True)
    # torch.std default is unbiased; faithful to the reference: no epsilon.
    var = jnp.sum((x - mu) ** 2, axis=-1, keepdims=True) / (fea - 1)
    xn = (x - mu) / jnp.sqrt(var)
    # img[s, f] = sum_n W[s, n] * xn[n, f] + b[s]  (fused permute+linear+permute)
    img = jnp.dot(lin_w_ref[...], xn.astype(bf16),
                  preferred_element_type=f32) + lin_b_ref[...]  # (S, D) f32

    # shared attention-module weights (same module reused for self & cross attn)
    w_qkv = w_qkv_ref[...]                                      # (D, 3D) bf16
    b_qkv = b_qkv_ref[...]                                      # (1, 3D) f32
    wo, bo = wo_ref[...], bo_ref[...]
    ln1_g, ln1_b = ln1_g_ref[...], ln1_b_ref[...]

    D = img.shape[-1]
    dph = D // num_heads
    scale = float(dph) ** -0.5

    def layer_norm(z, g, b):
        m = jnp.mean(z, axis=-1, keepdims=True)
        v = jnp.mean((z - m) ** 2, axis=-1, keepdims=True)
        return (z - m) * lax.rsqrt(v + eps) * g + b

    def attention(q_src, kv_src, bd_mask, seg_sum, fused_qkv):
        # q_src (Sq, D) f32, kv_src (Sk, D) f32
        if fused_qkv:        # self-attention: single fused (D, 3D) matmul
            qkv = jnp.dot(q_src.astype(bf16), w_qkv,
                          preferred_element_type=f32) + b_qkv
            q, k, v = qkv[:, :D], qkv[:, D:2 * D], qkv[:, 2 * D:]
        else:                # cross-attention: q from query, k/v from encoder
            q = jnp.dot(q_src.astype(bf16), w_qkv[:, :D],
                        preferred_element_type=f32) + b_qkv[:, :D]
            kv = jnp.dot(kv_src.astype(bf16), w_qkv[:, D:],
                         preferred_element_type=f32) + b_qkv[:, D:]
            k, v = kv[:, :D], kv[:, D:]

        # Block-diagonal expansion: kbd/vbd[h*Sk+j, h*dph+d] = k/v[j, h*dph+d].
        # Sublane-aligned replication (cheap vreg placement) + constant 0/1
        # mask, instead of an 8-way head loop / lane concat.
        k_rep = jnp.concatenate([k] * num_heads, axis=0)        # (H*Sk, D)
        v_rep = jnp.concatenate([v] * num_heads, axis=0)
        kbd = (k_rep * bd_mask).astype(bf16)
        vbd = (v_rep * bd_mask).astype(bf16)

        # all-head scores in ONE lane-dense (Sq, H*Sk) tile
        s = lax.dot_general(q.astype(bf16), kbd, (((1,), (1,)), ((), ())),
                            preferred_element_type=f32) * scale
        # Subtracting the row-global max (instead of a per-head max) is exact
        # for the per-head softmax because the per-head sum below renormalizes
        # each head block independently; it lets max/exp run once on full vregs.
        p = jnp.exp(s - jnp.max(s, axis=-1, keepdims=True))     # (Sq, H*Sk) f32
        # per-head denominators, already broadcast back to each head's lanes,
        # via one matmul with a constant block-indicator matrix (f32 accuracy).
        den = jnp.dot(p, seg_sum, preferred_element_type=f32)
        p = p * pl.reciprocal(den, approx=True)
        ctx = jnp.dot(p.astype(bf16), vbd, preferred_element_type=f32)  # (Sq,D)

        out = jnp.dot(ctx.astype(bf16), wo, preferred_element_type=f32) + bo
        # residual from `query` + post-LayerNorm (reference MHA behaviour)
        return layer_norm(q_src + out, ln1_g, ln1_b)

    a1 = attention(img, img, bd_self_ref[...], seg_self_ref[...], True)
    enc = enc_ref[0].astype(f32)                                # (Ske, D)
    a2 = attention(a1, enc, bd_cross_ref[...], seg_cross_ref[...], False)

    # -------- FFN + residual + LN + vocab projection -------------------------
    h = jnp.dot(a2.astype(bf16), w1_ref[...],
                preferred_element_type=f32) + b1_ref[...]
    h = jnp.maximum(h, 0.0)
    ffn = jnp.dot(h.astype(bf16), w2_ref[...],
                  preferred_element_type=f32) + b2_ref[...]
    z = layer_norm(a2 + ffn, ln2_g_ref[...], ln2_b_ref[...])
    logits = jnp.dot(z.astype(bf16), wv_ref[...], preferred_element_type=f32)
    o_ref[0] = logits.astype(o_ref.dtype)                       # (S, Vp) dense


# ==========================================================================
# Wrapper: one pallas_call for the entire forward pass.
# ==========================================================================
def generator_forward(img_in, enc_output, params, num_heads):
    """Full Generator forward in a single fused pallas_call.

    Returns PADDED logits (B, max_seq, Vp) with Vp = vocab rounded up to 128;
    slice [:, :, :vocab] at the consumer (keeps the kernel stores lane-dense).
    """
    B, N, D = img_in.shape
    Ske = enc_output.shape[1]
    S = params["lin_w"].shape[0]
    # Reference loop `for g in layers: output = g(img_in, enc_output)` re-reads
    # img_in every iteration -> only the LAST layer's output is live.
    layer = params["layers"][-1]
    attn, ffn = layer["attn"], layer["ffn"]
    Fdim = ffn["w1"].shape[1]
    wv = params["lin2_w_pad"]
    Vp = wv.shape[1]
    H = num_heads

    inputs = (img_in, enc_output,
              params["lin_w"], params["lin_b"],
              attn["w_qkv"], attn["b_qkv"], attn["wo"], attn["bo"],
              attn["ln_g"], attn["ln_b"],
              ffn["w1"], ffn["b1"], ffn["w2"], ffn["b2"],
              ffn["ln_g"], ffn["ln_b"],
              wv,
              params["bd_self"], params["seg_self"],
              params["bd_cross"], params["seg_cross"])

    def fixed(shape):  # weight / constant: same block every grid step (resident)
        return pl.BlockSpec(shape, lambda b, _s=shape: tuple(0 for _ in _s))

    in_specs = [
        pl.BlockSpec((1, N, D), lambda b: (b, 0, 0)),
        pl.BlockSpec((1, Ske, D), lambda b: (b, 0, 0)),
        fixed((S, N)), fixed((S, 1)),
        fixed((D, 3 * D)), fixed((1, 3 * D)), fixed((D, D)), fixed((1, D)),
        fixed((1, D)), fixed((1, D)),
        fixed((D, Fdim)), fixed((1, Fdim)), fixed((Fdim, D)), fixed((1, D)),
        fixed((1, D)), fixed((1, D)),
        fixed((D, Vp)),
        fixed((H * S, D)), fixed((H * S, H * S)),
        fixed((H * Ske, D)), fixed((H * Ske, H * Ske)),
    ]

    # advisory cost estimate so XLA can schedule/overlap the custom call
    def mm(m, k, n):
        return 2 * m * k * n
    per_b = (mm(S, N, D) + mm(S, D, 3 * D) + mm(S, D, D) + mm(Ske, D, 2 * D)
             + sum(mm(S, D, H * L) + mm(S, H * L, H * L) + mm(S, H * L, D)
                   + mm(S, D, D) for L in (S, Ske))
             + mm(S, D, Fdim) + mm(S, Fdim, D) + mm(S, D, Vp))
    cost = pl.CostEstimate(
        flops=B * per_b,
        transcendentals=B * (S * H * (S + Ske) + 6 * S),
        bytes_accessed=int(sum(int(a.size) * a.dtype.itemsize for a in inputs)
                           + B * S * Vp * 4))

    kernel = functools.partial(_generator_kernel, num_heads=num_heads, eps=1e-5)
    return pl.pallas_call(
        kernel,
        out_shape=jax.ShapeDtypeStruct((B, S, Vp), jnp.float32),
        grid=(B,),
        in_specs=in_specs,
        out_specs=pl.BlockSpec((1, S, Vp), lambda b: (b, 0, 0)),
        compiler_params=pltpu.CompilerParams(dimension_semantics=("parallel",)),
        cost_estimate=cost,
    )(*inputs)


# ==========================================================================
# Parameters (kernel-friendly shapes; matmul weights stored bf16, the rest f32)
# ==========================================================================
def _block_diag_masks(num_heads, d_model, seq_k):
    """Constant 0/1 matrices for the all-head block-diagonal attention."""
    dph = d_model // num_heads
    head_of_row = jnp.arange(num_heads * seq_k) // seq_k        # (H*Sk,)
    head_of_col = jnp.arange(d_model) // dph                    # (D,)
    bd = (head_of_row[:, None] == head_of_col[None, :]).astype(jnp.float32)
    seg = (head_of_row[:, None] == head_of_row[None, :]).astype(jnp.float32)
    return bd, seg                                               # (H*Sk,D),(H*Sk,H*Sk)


def init_params(key, *, vocab_size, max_seq_len, enc_seq_len, num_layers,
                d_model, ffn_dim, num_heads, num_fea=196):
    def nrm(k, shape, scale=0.05):
        return (scale * jax.random.normal(k, shape)).astype(jnp.float32)

    keys = iter(jax.random.split(key, 8 + 12 * num_layers))
    vp = ((vocab_size + 127) // 128) * 128
    lin2 = nrm(next(keys), (d_model, vocab_size))
    # vocab weight padded to 128 lanes ONCE here (not per forward call)
    lin2_pad = jnp.zeros((d_model, vp), jnp.float32).at[:, :vocab_size].set(lin2)

    bd_self, seg_self = _block_diag_masks(num_heads, d_model, max_seq_len)
    bd_cross, seg_cross = _block_diag_masks(num_heads, d_model, enc_seq_len)

    params = {
        # torch nn.Linear(196, max_seq) weight layout: (max_seq, 196)
        "lin_w": nrm(next(keys), (max_seq_len, num_fea)).astype(jnp.bfloat16),
        "lin_b": nrm(next(keys), (max_seq_len, 1)),
        "lin2_w_pad": lin2_pad.astype(jnp.bfloat16),
        "bd_self": bd_self, "seg_self": seg_self,
        "bd_cross": bd_cross, "seg_cross": seg_cross,
        "layers": [],
    }
    for _ in range(num_layers):
        wq = nrm(next(keys), (d_model, d_model))
        wk = nrm(next(keys), (d_model, d_model))
        wvv = nrm(next(keys), (d_model, d_model))
        bq = nrm(next(keys), (d_model,))
        bk = nrm(next(keys), (d_model,))
        bv = nrm(next(keys), (d_model,))
        attn = {
            "w_qkv": jnp.concatenate([wq, wk, wvv], axis=1).astype(jnp.bfloat16),
            "b_qkv": jnp.concatenate([bq, bk, bv]).reshape(1, 3 * d_model),
            "wo": nrm(next(keys), (d_model, d_model)).astype(jnp.bfloat16),
            "bo": nrm(next(keys), (d_model,)).reshape(1, d_model),
            "ln_g": jnp.ones((1, d_model), jnp.float32),
            "ln_b": jnp.zeros((1, d_model), jnp.float32),
        }
        ffn = {
            "w1": nrm(next(keys), (d_model, ffn_dim)).astype(jnp.bfloat16),
            "b1": nrm(next(keys), (ffn_dim,)).reshape(1, ffn_dim),
            "w2": nrm(next(keys), (ffn_dim, d_model)).astype(jnp.bfloat16),
            "b2": nrm(next(keys), (d_model,)).reshape(1, d_model),
            "ln_g": jnp.ones((1, d_model), jnp.float32),
            "ln_b": jnp.zeros((1, d_model), jnp.float32),
        }
        params["layers"].append({"attn": attn, "ffn": ffn})
    return params


# ==========================================================================
# Main
# ==========================================================================
if __name__ == "__main__":
    # Small, module-consistent shapes (num_fea pinned to 196 by nn.Linear(196, ...)).
    B = 2
    NUM_FEA = 196
    D_MODEL = 64
    NUM_HEADS = 8
    FFN_DIM = 128
    MAX_SEQ = 16
    VOCAB = 32
    NUM_LAYERS = 2
    ENC_SEQ = 16

    root = jax.random.PRNGKey(0)
    k_img, k_enc, k_par = jax.random.split(root, 3)

    img_in = jax.random.normal(k_img, (B, NUM_FEA, D_MODEL), jnp.float32)
    enc_output = jax.random.normal(k_enc, (B, ENC_SEQ, D_MODEL), jnp.float32)

    params = init_params(k_par, vocab_size=VOCAB, max_seq_len=MAX_SEQ,
                         enc_seq_len=ENC_SEQ, num_layers=NUM_LAYERS,
                         d_model=D_MODEL, ffn_dim=FFN_DIM, num_heads=NUM_HEADS,
                         num_fea=NUM_FEA)

    fwd = jax.jit(generator_forward, static_argnums=(3,))
    logits_pad = fwd(img_in, enc_output, params, NUM_HEADS)
    logits_pad = jax.block_until_ready(logits_pad)

    VP = ((VOCAB + 127) // 128) * 128
    assert logits_pad.shape == (B, MAX_SEQ, VP), logits_pad.shape
    # consumer-side un-pad (the kernel keeps the store 128-lane dense)
    logits = logits_pad[:, :, :VOCAB]
    assert logits.shape == (B, MAX_SEQ, VOCAB), logits.shape
    assert bool(jnp.all(jnp.isfinite(logits)))
    print("KERNEL_OK")
</pallas_src>

<mosaic_0001>
module attributes {stable_mosaic.version = 11 : i64} {
  func.func @_generator_kernel(%arg0: i32, %arg1: memref<1x196x64xf32, #tpu.memory_space<vmem>>, %arg2: memref<1x16x64xf32, #tpu.memory_space<vmem>>, %arg3: memref<16x196xbf16, #tpu.memory_space<vmem>>, %arg4: memref<16x1xf32, #tpu.memory_space<vmem>>, %arg5: memref<64x192xbf16, #tpu.memory_space<vmem>>, %arg6: memref<1x192xf32, #tpu.memory_space<vmem>>, %arg7: memref<64x64xbf16, #tpu.memory_space<vmem>>, %arg8: memref<1x64xf32, #tpu.memory_space<vmem>>, %arg9: memref<1x64xf32, #tpu.memory_space<vmem>>, %arg10: memref<1x64xf32, #tpu.memory_space<vmem>>, %arg11: memref<64x128xbf16, #tpu.memory_space<vmem>>, %arg12: memref<1x128xf32, #tpu.memory_space<vmem>>, %arg13: memref<128x64xbf16, #tpu.memory_space<vmem>>, %arg14: memref<1x64xf32, #tpu.memory_space<vmem>>, %arg15: memref<1x64xf32, #tpu.memory_space<vmem>>, %arg16: memref<1x64xf32, #tpu.memory_space<vmem>>, %arg17: memref<64x128xbf16, #tpu.memory_space<vmem>>, %arg18: memref<128x64xf32, #tpu.memory_space<vmem>>, %arg19: memref<128x128xf32, #tpu.memory_space<vmem>>, %arg20: memref<128x64xf32, #tpu.memory_space<vmem>>, %arg21: memref<128x128xf32, #tpu.memory_space<vmem>>, %arg22: memref<1x16x128xf32, #tpu.memory_space<vmem>>) attributes {dimension_semantics = [#tpu.dimension_semantics<parallel>], iteration_bounds = array<i64: 2>, scalar_prefetch = 0 : i64, scratch_operands = 0 : i64, tpu.core_type = #tpu.core_type<tc>, window_params = [{transform_indices = @transform_0, window_bounds = array<i64: 1, 196, 64>}, {transform_indices = @transform_1, window_bounds = array<i64: 1, 16, 64>}, {pipeline_mode = #tpu.pipeline_mode<synchronous>, transform_indices = @transform_2, window_bounds = array<i64: 16, 196>}, {pipeline_mode = #tpu.pipeline_mode<synchronous>, transform_indices = @transform_3, window_bounds = array<i64: 16, 1>}, {pipeline_mode = #tpu.pipeline_mode<synchronous>, transform_indices = @transform_4, window_bounds = array<i64: 64, 192>}, {pipeline_mode = #tpu.pipeline_mode<synchronous>, transform_indices = @transform_5, window_bounds = array<i64: 1, 192>}, {pipeline_mode = #tpu.pipeline_mode<synchronous>, transform_indices = @transform_6, window_bounds = array<i64: 64, 64>}, {pipeline_mode = #tpu.pipeline_mode<synchronous>, transform_indices = @transform_7, window_bounds = array<i64: 1, 64>}, {pipeline_mode = #tpu.pipeline_mode<synchronous>, transform_indices = @transform_8, window_bounds = array<i64: 1, 64>}, {pipeline_mode = #tpu.pipeline_mode<synchronous>, transform_indices = @transform_9, window_bounds = array<i64: 1, 64>}, {pipeline_mode = #tpu.pipeline_mode<synchronous>, transform_indices = @transform_10, window_bounds = array<i64: 64, 128>}, {pipeline_mode = #tpu.pipeline_mode<synchronous>, transform_indices = @transform_11, window_bounds = array<i64: 1, 128>}, {pipeline_mode = #tpu.pipeline_mode<synchronous>, transform_indices = @transform_12, window_bounds = array<i64: 128, 64>}, {pipeline_mode = #tpu.pipeline_mode<synchronous>, transform_indices = @transform_13, window_bounds = array<i64: 1, 64>}, {pipeline_mode = #tpu.pipeline_mode<synchronous>, transform_indices = @transform_14, window_bounds = array<i64: 1, 64>}, {pipeline_mode = #tpu.pipeline_mode<synchronous>, transform_indices = @transform_15, window_bounds = array<i64: 1, 64>}, {pipeline_mode = #tpu.pipeline_mode<synchronous>, transform_indices = @transform_16, window_bounds = array<i64: 64, 128>}, {pipeline_mode = #tpu.pipeline_mode<synchronous>, transform_indices = @transform_17, window_bounds = array<i64: 128, 64>}, {pipeline_mode = #tpu.pipeline_mode<synchronous>, transform_indices = @transform_18, window_bounds = array<i64: 128, 128>}, {pipeline_mode = #tpu.pipeline_mode<synchronous>, transform_indices = @transform_19, window_bounds = array<i64: 128, 64>}, {pipeline_mode = #tpu.pipeline_mode<synchronous>, transform_indices = @transform_20, window_bounds = array<i64: 128, 128>}, {transform_indices = @transform_21, window_bounds = array<i64: 1, 16, 128>}]} {
    %c0 = arith.constant 0 : index
    %c0_0 = arith.constant 0 : index
    %c0_1 = arith.constant 0 : index
    %0 = vector.load %arg1[%c0, %c0_0, %c0_1] : memref<1x196x64xf32, #tpu.memory_space<vmem>>, vector<1x196x64xf32>
    %1 = vector.shape_cast %0 : vector<1x196x64xf32> to vector<196x64xf32>
    %cst = arith.constant dense<0.000000e+00> : vector<196xf32>
    %2 = vector.multi_reduction <add>, %1, %cst [1] : vector<196x64xf32> to vector<196xf32>
    %3 = vector.shape_cast %2 : vector<196xf32> to vector<196x1xf32>
    %cst_2 = arith.constant 6.400000e+01 : f32
    %4 = vector.broadcast %cst_2 : f32 to vector<196x1xf32>
    %5 = arith.divf %3, %4 : vector<196x1xf32>
    %6 = vector.broadcast %5 : vector<196x1xf32> to vector<196x64xf32>
    %7 = arith.subf %1, %6 : vector<196x64xf32>
    %8 = arith.mulf %7, %7 : vector<196x64xf32>
    %cst_3 = arith.constant dense<0.000000e+00> : vector<196xf32>
    %9 = vector.multi_reduction <add>, %8, %cst_3 [1] : vector<196x64xf32> to vector<196xf32>
    %10 = vector.shape_cast %9 : vector<196xf32> to vector<196x1xf32>
    %cst_4 = arith.constant 6.300000e+01 : f32
    %11 = vector.broadcast %cst_4 : f32 to vector<196x1xf32>
    %12 = arith.divf %10, %11 : vector<196x1xf32>
    %13 = vector.broadcast %5 : vector<196x1xf32> to vector<196x64xf32>
    %14 = arith.subf %1, %13 : vector<196x64xf32>
    %15 = math.sqrt %12 : vector<196x1xf32>
    %16 = vector.broadcast %15 : vector<196x1xf32> to vector<196x64xf32>
    %17 = arith.divf %14, %16 : vector<196x64xf32>
    %c0_5 = arith.constant 0 : index
    %c0_6 = arith.constant 0 : index
    %18 = vector.load %arg3[%c0_5, %c0_6] : memref<16x196xbf16, #tpu.memory_space<vmem>>, vector<16x196xbf16>
    %19 = arith.truncf %17 : vector<196x64xf32> to vector<196x64xbf16>
    %cst_7 = arith.constant dense<0.000000e+00> : vector<16x64xf32>
    %20 = tpu.matmul %18, %19, %cst_7 {dimension_numbers = #tpu.dot_dimension_numbers<[1], [0], [0], [1], [0, 0, 1, 1], [], []>} : vector<16x196xbf16>, vector<196x64xbf16>, vector<16x64xf32> -> vector<16x64xf32>
    %c0_8 = arith.constant 0 : index
    %c0_9 = arith.constant 0 : index
    %21 = vector.load %arg4[%c0_8, %c0_9] : memref<16x1xf32, #tpu.memory_space<vmem>>, vector<16x1xf32>
    %22 = vector.broadcast %21 : vector<16x1xf32> to vector<16x64xf32>
    %23 = arith.addf %20, %22 : vector<16x64xf32>
    %c0_10 = arith.constant 0 : index
    %c0_11 = arith.constant 0 : index
    %24 = vector.load %arg5[%c0_10, %c0_11] : memref<64x192xbf16, #tpu.memory_space<vmem>>, vector<64x192xbf16>
    %c0_12 = arith.constant 0 : index
    %c0_13 = arith.constant 0 : index
    %25 = vector.load %arg6[%c0_12, %c0_13] : memref<1x192xf32, #tpu.memory_space<vmem>>, vector<1x192xf32>
    %c0_14 = arith.constant 0 : index
    %c0_15 = arith.constant 0 : index
    %26 = vector.load %arg7[%c0_14, %c0_15] : memref<64x64xbf16, #tpu.memory_space<vmem>>, vector<64x64xbf16>
    %c0_16 = arith.constant 0 : index
    %c0_17 = arith.constant 0 : index
    %27 = vector.load %arg8[%c0_16, %c0_17] : memref<1x64xf32, #tpu.memory_space<vmem>>, vector<1x64xf32>
    %c0_18 = arith.constant 0 : index
    %c0_19 = arith.constant 0 : index
    %28 = vector.load %arg9[%c0_18, %c0_19] : memref<1x64xf32, #tpu.memory_space<vmem>>, vector<1x64xf32>
    %c0_20 = arith.constant 0 : index
    %c0_21 = arith.constant 0 : index
    %29 = vector.load %arg10[%c0_20, %c0_21] : memref<1x64xf32, #tpu.memory_space<vmem>>, vector<1x64xf32>
    %c0_22 = arith.constant 0 : index
    %c0_23 = arith.constant 0 : index
    %30 = vector.load %arg18[%c0_22, %c0_23] : memref<128x64xf32, #tpu.memory_space<vmem>>, vector<128x64xf32>
    %c0_24 = arith.constant 0 : index
    %c0_25 = arith.constant 0 : index
    %31 = vector.load %arg19[%c0_24, %c0_25] : memref<128x128xf32, #tpu.memory_space<vmem>>, vector<128x128xf32>
    %32 = arith.truncf %23 : vector<16x64xf32> to vector<16x64xbf16>
    %cst_26 = arith.constant dense<0.000000e+00> : vector<16x192xf32>
    %33 = tpu.matmul %32, %24, %cst_26 {dimension_numbers = #tpu.dot_dimension_numbers<[1], [0], [0], [1], [0, 0, 1, 1], [], []>} : vector<16x64xbf16>, vector<64x192xbf16>, vector<16x192xf32> -> vector<16x192xf32>
    %34 = vector.broadcast %25 : vector<1x192xf32> to vector<16x192xf32>
    %35 = arith.addf %33, %34 : vector<16x192xf32>
    %36 = vector.extract_strided_slice %35 {offsets = [0, 0], sizes = [16, 64], strides = [1, 1]} : vector<16x192xf32> to vector<16x64xf32>
    %37 = vector.extract_strided_slice %35 {offsets = [0, 64], sizes = [16, 64], strides = [1, 1]} : vector<16x192xf32> to vector<16x64xf32>
    %38 = vector.extract_strided_slice %35 {offsets = [0, 128], sizes = [16, 64], strides = [1, 1]} : vector<16x192xf32> to vector<16x64xf32>
    %39 = tpu.concatenate %37, %37, %37, %37, %37, %37, %37, %37 in 0 : vector<16x64xf32>, vector<16x64xf32>, vector<16x64xf32>, vector<16x64xf32>, vector<16x64xf32>, vector<16x64xf32>, vector<16x64xf32>, vector<16x64xf32> -> vector<128x64xf32>
    %40 = tpu.concatenate %38, %38, %38, %38, %38, %38, %38, %38 in 0 : vector<16x64xf32>, vector<16x64xf32>, vector<16x64xf32>, vector<16x64xf32>, vector<16x64xf32>, vector<16x64xf32>, vector<16x64xf32>, vector<16x64xf32> -> vector<128x64xf32>
    %41 = arith.mulf %39, %30 : vector<128x64xf32>
    %42 = arith.truncf %41 : vector<128x64xf32> to vector<128x64xbf16>
    %43 = arith.mulf %40, %30 : vector<128x64xf32>
    %44 = arith.truncf %43 : vector<128x64xf32> to vector<128x64xbf16>
    %45 = arith.truncf %36 : vector<16x64xf32> to vector<16x64xbf16>
    %cst_27 = arith.constant dense<0.000000e+00> : vector<16x128xf32>
    %46 = tpu.matmul %45, %42, %cst_27 {dimension_numbers = #tpu.dot_dimension_numbers<[1], [1], [0], [0], [0, 0, 1, 0], [], []>} : vector<16x64xbf16>, vector<128x64xbf16>, vector<16x128xf32> -> vector<16x128xf32>
    %cst_28 = arith.constant 0.353553385 : f32
    %47 = vector.broadcast %cst_28 : f32 to vector<16x128xf32>
    %48 = arith.mulf %46, %47 : vector<16x128xf32>
    %cst_29 = arith.constant dense<0xFF800000> : vector<16xf32>
    %49 = vector.multi_reduction <maximumf>, %48, %cst_29 [1] : vector<16x128xf32> to vector<16xf32>
    %50 = vector.shape_cast %49 : vector<16xf32> to vector<16x1xf32>
    %51 = vector.broadcast %50 : vector<16x1xf32> to vector<16x128xf32>
    %52 = arith.subf %48, %51 : vector<16x128xf32>
    %53 = math.exp %52 : vector<16x128xf32>
    %cst_30 = arith.constant dense<0.000000e+00> : vector<16x128xf32>
    %54 = tpu.matmul %53, %31, %cst_30 {dimension_numbers = #tpu.dot_dimension_numbers<[1], [0], [0], [1], [0, 0, 1, 1], [], []>} : vector<16x128xf32>, vector<128x128xf32>, vector<16x128xf32> -> vector<16x128xf32>
    %55 = tpu.reciprocal %54 {approx = true} : vector<16x128xf32> -> vector<16x128xf32>
    %56 = arith.mulf %53, %55 : vector<16x128xf32>
    %57 = arith.truncf %56 : vector<16x128xf32> to vector<16x128xbf16>
    %cst_31 = arith.constant dense<0.000000e+00> : vector<16x64xf32>
    %58 = tpu.matmul %57, %44, %cst_31 {dimension_numbers = #tpu.dot_dimension_numbers<[1], [0], [0], [1], [0, 0, 1, 1], [], []>} : vector<16x128xbf16>, vector<128x64xbf16>, vector<16x64xf32> -> vector<16x64xf32>
    %59 = arith.truncf %58 : vector<16x64xf32> to vector<16x64xbf16>
    %cst_32 = arith.constant dense<0.000000e+00> : vector<16x64xf32>
    %60 = tpu.matmul %59, %26, %cst_32 {dimension_numbers = #tpu.dot_dimension_numbers<[1], [0], [0], [1], [0, 0, 1, 1], [], []>} : vector<16x64xbf16>, vector<64x64xbf16>, vector<16x64xf32> -> vector<16x64xf32>
    %61 = vector.broadcast %27 : vector<1x64xf32> to vector<16x64xf32>
    %62 = arith.addf %60, %61 : vector<16x64xf32>
    %63 = arith.addf %23, %62 : vector<16x64xf32>
    %cst_33 = arith.constant dense<0.000000e+00> : vector<16xf32>
    %64 = vector.multi_reduction <add>, %63, %cst_33 [1] : vector<16x64xf32> to vector<16xf32>
    %65 = vector.shape_cast %64 : vector<16xf32> to vector<16x1xf32>
    %cst_34 = arith.constant 6.400000e+01 : f32
    %66 = vector.broadcast %cst_34 : f32 to vector<16x1xf32>
    %67 = arith.divf %65, %66 : vector<16x1xf32>
    %68 = vector.broadcast %67 : vector<16x1xf32> to vector<16x64xf32>
    %69 = arith.subf %63, %68 : vector<16x64xf32>
    %70 = arith.mulf %69, %69 : vector<16x64xf32>
    %cst_35 = arith.constant dense<0.000000e+00> : vector<16xf32>
    %71 = vector.multi_reduction <add>, %70, %cst_35 [1] : vector<16x64xf32> to vector<16xf32>
    %72 = vector.shape_cast %71 : vector<16xf32> to vector<16x1xf32>
    %cst_36 = arith.constant 6.400000e+01 : f32
    %73 = vector.broadcast %cst_36 : f32 to vector<16x1xf32>
    %74 = arith.divf %72, %73 : vector<16x1xf32>
    %75 = vector.broadcast %67 : vector<16x1xf32> to vector<16x64xf32>
    %76 = arith.subf %63, %75 : vector<16x64xf32>
    %cst_37 = arith.constant 9.99999974E-6 : f32
    %77 = vector.broadcast %cst_37 : f32 to vector<16x1xf32>
    %78 = arith.addf %74, %77 : vector<16x1xf32>
    %79 = math.rsqrt %78 : vector<16x1xf32>
    %80 = vector.broadcast %79 : vector<16x1xf32> to vector<16x64xf32>
    %81 = arith.mulf %76, %80 : vector<16x64xf32>
    %82 = vector.broadcast %28 : vector<1x64xf32> to vector<16x64xf32>
    %83 = arith.mulf %81, %82 : vector<16x64xf32>
    %84 = vector.broadcast %29 : vector<1x64xf32> to vector<16x64xf32>
    %85 = arith.addf %83, %84 : vector<16x64xf32>
    %c0_38 = arith.constant 0 : index
    %c0_39 = arith.constant 0 : index
    %c0_40 = arith.constant 0 : index
    %86 = vector.load %arg2[%c0_38, %c0_39, %c0_40] : memref<1x16x64xf32, #tpu.memory_space<vmem>>, vector<1x16x64xf32>
    %87 = vector.shape_cast %86 : vector<1x16x64xf32> to vector<16x64xf32>
    %c0_41 = arith.constant 0 : index
    %c0_42 = arith.constant 0 : index
    %88 = vector.load %arg20[%c0_41, %c0_42] : memref<128x64xf32, #tpu.memory_space<vmem>>, vector<128x64xf32>
    %c0_43 = arith.constant 0 : index
    %c0_44 = arith.constant 0 : index
    %89 = vector.load %arg21[%c0_43, %c0_44] : memref<128x128xf32, #tpu.memory_space<vmem>>, vector<128x128xf32>
    %90 = arith.truncf %85 : vector<16x64xf32> to vector<16x64xbf16>
    %91 = vector.extract_strided_slice %24 {offsets = [0, 0], sizes = [64, 64], strides = [1, 1]} : vector<64x192xbf16> to vector<64x64xbf16>
    %cst_45 = arith.constant dense<0.000000e+00> : vector<16x64xf32>
    %92 = tpu.matmul %90, %91, %cst_45 {dimension_numbers = #tpu.dot_dimension_numbers<[1], [0], [0], [1], [0, 0, 1, 1], [], []>} : vector<16x64xbf16>, vector<64x64xbf16>, vector<16x64xf32> -> vector<16x64xf32>
    %93 = vector.extract_strided_slice %25 {offsets = [0, 0], sizes = [1, 64], strides = [1, 1]} : vector<1x192xf32> to vector<1x64xf32>
    %94 = vector.broadcast %93 : vector<1x64xf32> to vector<16x64xf32>
    %95 = arith.addf %92, %94 : vector<16x64xf32>
    %96 = arith.truncf %87 : vector<16x64xf32> to vector<16x64xbf16>
    %97 = vector.extract_strided_slice %24 {offsets = [0, 64], sizes = [64, 128], strides = [1, 1]} : vector<64x192xbf16> to vector<64x128xbf16>
    %cst_46 = arith.constant dense<0.000000e+00> : vector<16x128xf32>
    %98 = tpu.matmul %96, %97, %cst_46 {dimension_numbers = #tpu.dot_dimension_numbers<[1], [0], [0], [1], [0, 0, 1, 1], [], []>} : vector<16x64xbf16>, vector<64x128xbf16>, vector<16x128xf32> -> vector<16x128xf32>
    %99 = vector.extract_strided_slice %25 {offsets = [0, 64], sizes = [1, 128], strides = [1, 1]} : vector<1x192xf32> to vector<1x128xf32>
    %100 = vector.broadcast %99 : vector<1x128xf32> to vector<16x128xf32>
    %101 = arith.addf %98, %100 : vector<16x128xf32>
    %102 = vector.extract_strided_slice %101 {offsets = [0, 0], sizes = [16, 64], strides = [1, 1]} : vector<16x128xf32> to vector<16x64xf32>
    %103 = vector.extract_strided_slice %101 {offsets = [0, 64], sizes = [16, 64], strides = [1, 1]} : vector<16x128xf32> to vector<16x64xf32>
    %104 = tpu.concatenate %102, %102, %102, %102, %102, %102, %102, %102 in 0 : vector<16x64xf32>, vector<16x64xf32>, vector<16x64xf32>, vector<16x64xf32>, vector<16x64xf32>, vector<16x64xf32>, vector<16x64xf32>, vector<16x64xf32> -> vector<128x64xf32>
    %105 = tpu.concatenate %103, %103, %103, %103, %103, %103, %103, %103 in 0 : vector<16x64xf32>, vector<16x64xf32>, vector<16x64xf32>, vector<16x64xf32>, vector<16x64xf32>, vector<16x64xf32>, vector<16x64xf32>, vector<16x64xf32> -> vector<128x64xf32>
    %106 = arith.mulf %104, %88 : vector<128x64xf32>
    %107 = arith.truncf %106 : vector<128x64xf32> to vector<128x64xbf16>
    %108 = arith.mulf %105, %88 : vector<128x64xf32>
    %109 = arith.truncf %108 : vector<128x64xf32> to vector<128x64xbf16>
    %110 = arith.truncf %95 : vector<16x64xf32> to vector<16x64xbf16>
    %cst_47 = arith.constant dense<0.000000e+00> : vector<16x128xf32>
    %111 = tpu.matmul %110, %107, %cst_47 {dimension_numbers = #tpu.dot_dimension_numbers<[1], [1], [0], [0], [0, 0, 1, 0], [], []>} : vector<16x64xbf16>, vector<128x64xbf16>, vector<16x128xf32> -> vector<16x128xf32>
    %cst_48 = arith.constant 0.353553385 : f32
    %112 = vector.broadcast %cst_48 : f32 to vector<16x128xf32>
    %113 = arith.mulf %111, %112 : vector<16x128xf32>
    %cst_49 = arith.constant dense<0xFF800000> : vector<16xf32>
    %114 = vector.multi_reduction <maximumf>, %113, %cst_49 [1] : vector<16x128xf32> to vector<16xf32>
    %115 = vector.shape_cast %114 : vector<16xf32> to vector<16x1xf32>
    %116 = vector.broadcast %115 : vector<16x1xf32> to vector<16x128xf32>
    %117 = arith.subf %113, %116 : vector<16x128xf32>
    %118 = math.exp %117 : vector<16x128xf32>
    %cst_50 = arith.constant dense<0.000000e+00> : vector<16x128xf32>
    %119 = tpu.matmul %118, %89, %cst_50 {dimension_numbers = #tpu.dot_dimension_numbers<[1], [0], [0], [1], [0, 0, 1, 1], [], []>} : vector<16x128xf32>, vector<128x128xf32>, vector<16x128xf32> -> vector<16x128xf32>
    %120 = tpu.reciprocal %119 {approx = true} : vector<16x128xf32> -> vector<16x128xf32>
    %121 = arith.mulf %118, %120 : vector<16x128xf32>
    %122 = arith.truncf %121 : vector<16x128xf32> to vector<16x128xbf16>
    %cst_51 = arith.constant dense<0.000000e+00> : vector<16x64xf32>
    %123 = tpu.matmul %122, %109, %cst_51 {dimension_numbers = #tpu.dot_dimension_numbers<[1], [0], [0], [1], [0, 0, 1, 1], [], []>} : vector<16x128xbf16>, vector<128x64xbf16>, vector<16x64xf32> -> vector<16x64xf32>
    %124 = arith.truncf %123 : vector<16x64xf32> to vector<16x64xbf16>
    %cst_52 = arith.constant dense<0.000000e+00> : vector<16x64xf32>
    %125 = tpu.matmul %124, %26, %cst_52 {dimension_numbers = #tpu.dot_dimension_numbers<[1], [0], [0], [1], [0, 0, 1, 1], [], []>} : vector<16x64xbf16>, vector<64x64xbf16>, vector<16x64xf32> -> vector<16x64xf32>
    %126 = vector.broadcast %27 : vector<1x64xf32> to vector<16x64xf32>
    %127 = arith.addf %125, %126 : vector<16x64xf32>
    %128 = arith.addf %85, %127 : vector<16x64xf32>
    %cst_53 = arith.constant dense<0.000000e+00> : vector<16xf32>
    %129 = vector.multi_reduction <add>, %128, %cst_53 [1] : vector<16x64xf32> to vector<16xf32>
    %130 = vector.shape_cast %129 : vector<16xf32> to vector<16x1xf32>
    %cst_54 = arith.constant 6.400000e+01 : f32
    %131 = vector.broadcast %cst_54 : f32 to vector<16x1xf32>
    %132 = arith.divf %130, %131 : vector<16x1xf32>
    %133 = vector.broadcast %132 : vector<16x1xf32> to vector<16x64xf32>
    %134 = arith.subf %128, %133 : vector<16x64xf32>
    %135 = arith.mulf %134, %134 : vector<16x64xf32>
    %cst_55 = arith.constant dense<0.000000e+00> : vector<16xf32>
    %136 = vector.multi_reduction <add>, %135, %cst_55 [1] : vector<16x64xf32> to vector<16xf32>
    %137 = vector.shape_cast %136 : vector<16xf32> to vector<16x1xf32>
    %cst_56 = arith.constant 6.400000e+01 : f32
    %138 = vector.broadcast %cst_56 : f32 to vector<16x1xf32>
    %139 = arith.divf %137, %138 : vector<16x1xf32>
    %140 = vector.broadcast %132 : vector<16x1xf32> to vector<16x64xf32>
    %141 = arith.subf %128, %140 : vector<16x64xf32>
    %cst_57 = arith.constant 9.99999974E-6 : f32
    %142 = vector.broadcast %cst_57 : f32 to vector<16x1xf32>
    %143 = arith.addf %139, %142 : vector<16x1xf32>
    %144 = math.rsqrt %143 : vector<16x1xf32>
    %145 = vector.broadcast %144 : vector<16x1xf32> to vector<16x64xf32>
    %146 = arith.mulf %141, %145 : vector<16x64xf32>
    %147 = vector.broadcast %28 : vector<1x64xf32> to vector<16x64xf32>
    %148 = arith.mulf %146, %147 : vector<16x64xf32>
    %149 = vector.broadcast %29 : vector<1x64xf32> to vector<16x64xf32>
    %150 = arith.addf %148, %149 : vector<16x64xf32>
    %151 = arith.truncf %150 : vector<16x64xf32> to vector<16x64xbf16>
    %c0_58 = arith.constant 0 : index
    %c0_59 = arith.constant 0 : index
    %152 = vector.load %arg11[%c0_58, %c0_59] : memref<64x128xbf16, #tpu.memory_space<vmem>>, vector<64x128xbf16>
    %cst_60 = arith.constant dense<0.000000e+00> : vector<16x128xf32>
    %153 = tpu.matmul %151, %152, %cst_60 {dimension_numbers = #tpu.dot_dimension_numbers<[1], [0], [0], [1], [0, 0, 1, 1], [], []>} : vector<16x64xbf16>, vector<64x128xbf16>, vector<16x128xf32> -> vector<16x128xf32>
    %c0_61 = arith.constant 0 : index
    %c0_62 = arith.constant 0 : index
    %154 = vector.load %arg12[%c0_61, %c0_62] : memref<1x128xf32, #tpu.memory_space<vmem>>, vector<1x128xf32>
    %155 = vector.broadcast %154 : vector<1x128xf32> to vector<16x128xf32>
    %156 = arith.addf %153, %155 : vector<16x128xf32>
    %cst_63 = arith.constant 0.000000e+00 : f32
    %157 = vector.broadcast %cst_63 : f32 to vector<16x128xf32>
    %158 = arith.maximumf %156, %157 : vector<16x128xf32>
    %159 = arith.truncf %158 : vector<16x128xf32> to vector<16x128xbf16>
    %c0_64 = arith.constant 0 : index
    %c0_65 = arith.constant 0 : index
    %160 = vector.load %arg13[%c0_64, %c0_65] : memref<128x64xbf16, #tpu.memory_space<vmem>>, vector<128x64xbf16>
    %cst_66 = arith.constant dense<0.000000e+00> : vector<16x64xf32>
    %161 = tpu.matmul %159, %160, %cst_66 {dimension_numbers = #tpu.dot_dimension_numbers<[1], [0], [0], [1], [0, 0, 1, 1], [], []>} : vector<16x128xbf16>, vector<128x64xbf16>, vector<16x64xf32> -> vector<16x64xf32>
    %c0_67 = arith.constant 0 : index
    %c0_68 = arith.constant 0 : index
    %162 = vector.load %arg14[%c0_67, %c0_68] : memref<1x64xf32, #tpu.memory_space<vmem>>, vector<1x64xf32>
    %163 = vector.broadcast %162 : vector<1x64xf32> to vector<16x64xf32>
    %164 = arith.addf %161, %163 : vector<16x64xf32>
    %165 = arith.addf %150, %164 : vector<16x64xf32>
    %c0_69 = arith.constant 0 : index
    %c0_70 = arith.constant 0 : index
    %166 = vector.load %arg15[%c0_69, %c0_70] : memref<1x64xf32, #tpu.memory_space<vmem>>, vector<1x64xf32>
    %c0_71 = arith.constant 0 : index
    %c0_72 = arith.constant 0 : index
    %167 = vector.load %arg16[%c0_71, %c0_72] : memref<1x64xf32, #tpu.memory_space<vmem>>, vector<1x64xf32>
    %cst_73 = arith.constant dense<0.000000e+00> : vector<16xf32>
    %168 = vector.multi_reduction <add>, %165, %cst_73 [1] : vector<16x64xf32> to vector<16xf32>
    %169 = vector.shape_cast %168 : vector<16xf32> to vector<16x1xf32>
    %cst_74 = arith.constant 6.400000e+01 : f32
    %170 = vector.broadcast %cst_74 : f32 to vector<16x1xf32>
    %171 = arith.divf %169, %170 : vector<16x1xf32>
    %172 = vector.broadcast %171 : vector<16x1xf32> to vector<16x64xf32>
    %173 = arith.subf %165, %172 : vector<16x64xf32>
    %174 = arith.mulf %173, %173 : vector<16x64xf32>
    %cst_75 = arith.constant dense<0.000000e+00> : vector<16xf32>
    %175 = vector.multi_reduction <add>, %174, %cst_75 [1] : vector<16x64xf32> to vector<16xf32>
    %176 = vector.shape_cast %175 : vector<16xf32> to vector<16x1xf32>
    %cst_76 = arith.constant 6.400000e+01 : f32
    %177 = vector.broadcast %cst_76 : f32 to vector<16x1xf32>
    %178 = arith.divf %176, %177 : vector<16x1xf32>
    %179 = vector.broadcast %171 : vector<16x1xf32> to vector<16x64xf32>
    %180 = arith.subf %165, %179 : vector<16x64xf32>
    %cst_77 = arith.constant 9.99999974E-6 : f32
    %181 = vector.broadcast %cst_77 : f32 to vector<16x1xf32>
    %182 = arith.addf %178, %181 : vector<16x1xf32>
    %183 = math.rsqrt %182 : vector<16x1xf32>
    %184 = vector.broadcast %183 : vector<16x1xf32> to vector<16x64xf32>
    %185 = arith.mulf %180, %184 : vector<16x64xf32>
    %186 = vector.broadcast %166 : vector<1x64xf32> to vector<16x64xf32>
    %187 = arith.mulf %185, %186 : vector<16x64xf32>
    %188 = vector.broadcast %167 : vector<1x64xf32> to vector<16x64xf32>
    %189 = arith.addf %187, %188 : vector<16x64xf32>
    %190 = arith.truncf %189 : vector<16x64xf32> to vector<16x64xbf16>
    %c0_78 = arith.constant 0 : index
    %c0_79 = arith.constant 0 : index
    %191 = vector.load %arg17[%c0_78, %c0_79] : memref<64x128xbf16, #tpu.memory_space<vmem>>, vector<64x128xbf16>
    %cst_80 = arith.constant dense<0.000000e+00> : vector<16x128xf32>
    %192 = tpu.matmul %190, %191, %cst_80 {dimension_numbers = #tpu.dot_dimension_numbers<[1], [0], [0], [1], [0, 0, 1, 1], [], []>} : vector<16x64xbf16>, vector<64x128xbf16>, vector<16x128xf32> -> vector<16x128xf32>
    %c0_81 = arith.constant 0 : index
    %c0_82 = arith.constant 0 : index
    %c0_83 = arith.constant 0 : index
    %193 = vector.load %arg22[%c0_81, %c0_82, %c0_83] : memref<1x16x128xf32, #tpu.memory_space<vmem>>, vector<1x16x128xf32>
    %194 = vector.shape_cast %193 : vector<1x16x128xf32> to vector<16x128xf32>
    %195 = vector.shape_cast %192 : vector<16x128xf32> to vector<1x16x128xf32>
    tpu.vector_store %arg22[%c0_81, %c0_82, %c0_83], %195 {strides = array<i32>} : memref<1x16x128xf32, #tpu.memory_space<vmem>>, vector<1x16x128xf32>,
    return
  }
  func.func @transform_0(%arg0: i32) -> (i32, i32, i32) {
    %c0_i32 = arith.constant 0 : i32
    %c0_i32_0 = arith.constant 0 : i32
    %c0_i32_1 = arith.constant 0 : i32
    return %arg0, %c0_i32, %c0_i32_0 : i32, i32, i32
  }
  func.func @transform_1(%arg0: i32) -> (i32, i32, i32) {
    %c0_i32 = arith.constant 0 : i32
    %c0_i32_0 = arith.constant 0 : i32
    %c0_i32_1 = arith.constant 0 : i32
    return %arg0, %c0_i32, %c0_i32_0 : i32, i32, i32
  }
  func.func @transform_2(%arg0: i32) -> (i32, i32) {
    %c0_i32 = arith.constant 0 : i32
    %c0_i32_0 = arith.constant 0 : i32
    %c0_i32_1 = arith.constant 0 : i32
    return %c0_i32, %c0_i32_0 : i32, i32
  }
  func.func @transform_3(%arg0: i32) -> (i32, i32) {
    %c0_i32 = arith.constant 0 : i32
    %c0_i32_0 = arith.constant 0 : i32
    %c0_i32_1 = arith.constant 0 : i32
    return %c0_i32, %c0_i32_0 : i32, i32
  }
  func.func @transform_4(%arg0: i32) -> (i32, i32) {
    %c0_i32 = arith.constant 0 : i32
    %c0_i32_0 = arith.constant 0 : i32
    %c0_i32_1 = arith.constant 0 : i32
    return %c0_i32, %c0_i32_0 : i32, i32
  }
  func.func @transform_5(%arg0: i32) -> (i32, i32) {
    %c0_i32 = arith.constant 0 : i32
    %c0_i32_0 = arith.constant 0 : i32
    %c0_i32_1 = arith.constant 0 : i32
    return %c0_i32, %c0_i32_0 : i32, i32
  }
  func.func @transform_6(%arg0: i32) -> (i32, i32) {
    %c0_i32 = arith.constant 0 : i32
    %c0_i32_0 = arith.constant 0 : i32
    %c0_i32_1 = arith.constant 0 : i32
    return %c0_i32, %c0_i32_0 : i32, i32
  }
  func.func @transform_7(%arg0: i32) -> (i32, i32) {
    %c0_i32 = arith.constant 0 : i32
    %c0_i32_0 = arith.constant 0 : i32
    %c0_i32_1 = arith.constant 0 : i32
    return %c0_i32, %c0_i32_0 : i32, i32
  }
  func.func @transform_8(%arg0: i32) -> (i32, i32) {
    %c0_i32 = arith.constant 0 : i32
    %c0_i32_0 = arith.constant 0 : i32
    %c0_i32_1 = arith.constant 0 : i32
    return %c0_i32, %c0_i32_0 : i32, i32
  }
  func.func @transform_9(%arg0: i32) -> (i32, i32) {
    %c0_i32 = arith.constant 0 : i32
    %c0_i32_0 = arith.constant 0 : i32
    %c0_i32_1 = arith.constant 0 : i32
    return %c0_i32, %c0_i32_0 : i32, i32
  }
  func.func @transform_10(%arg0: i32) -> (i32, i32) {
    %c0_i32 = arith.constant 0 : i32
    %c0_i32_0 = arith.constant 0 : i32
    %c0_i32_1 = arith.constant 0 : i32
    return %c0_i32, %c0_i32_0 : i32, i32
  }
  func.func @transform_11(%arg0: i32) -> (i32, i32) {
    %c0_i32 = arith.constant 0 : i32
    %c0_i32_0 = arith.constant 0 : i32
    %c0_i32_1 = arith.constant 0 : i32
    return %c0_i32, %c0_i32_0 : i32, i32
  }
  func.func @transform_12(%arg0: i32) -> (i32, i32) {
    %c0_i32 = arith.constant 0 : i32
    %c0_i32_0 = arith.constant 0 : i32
    %c0_i32_1 = arith.constant 0 : i32
    return %c0_i32, %c0_i32_0 : i32, i32
  }
  func.func @transform_13(%arg0: i32) -> (i32, i32) {
    %c0_i32 = arith.constant 0 : i32
    %c0_i32_0 = arith.constant 0 : i32
    %c0_i32_1 = arith.constant 0 : i32
    return %c0_i32, %c0_i32_0 : i32, i32
  }
  func.func @transform_14(%arg0: i32) -> (i32, i32) {
    %c0_i32 = arith.constant 0 : i32
    %c0_i32_0 = arith.constant 0 : i32
    %c0_i32_1 = arith.constant 0 : i32
    return %c0_i32, %c0_i32_0 : i32, i32
  }
  func.func @transform_15(%arg0: i32) -> (i32, i32) {
    %c0_i32 = arith.constant 0 : i32
    %c0_i32_0 = arith.constant 0 : i32
    %c0_i32_1 = arith.constant 0 : i32
    return %c0_i32, %c0_i32_0 : i32, i32
  }
  func.func @transform_16(%arg0: i32) -> (i32, i32) {
    %c0_i32 = arith.constant 0 : i32
    %c0_i32_0 = arith.constant 0 : i32
    %c0_i32_1 = arith.constant 0 : i32
    return %c0_i32, %c0_i32_0 : i32, i32
  }
  func.func @transform_17(%arg0: i32) -> (i32, i32) {
    %c0_i32 = arith.constant 0 : i32
    %c0_i32_0 = arith.constant 0 : i32
    %c0_i32_1 = arith.constant 0 : i32
    return %c0_i32, %c0_i32_0 : i32, i32
  }
  func.func @transform_18(%arg0: i32) -> (i32, i32) {
    %c0_i32 = arith.constant 0 : i32
    %c0_i32_0 = arith.constant 0 : i32
    %c0_i32_1 = arith.constant 0 : i32
    return %c0_i32, %c0_i32_0 : i32, i32
  }
  func.func @transform_19(%arg0: i32) -> (i32, i32) {
    %c0_i32 = arith.constant 0 : i32
    %c0_i32_0 = arith.constant 0 : i32
    %c0_i32_1 = arith.constant 0 : i32
    return %c0_i32, %c0_i32_0 : i32, i32
  }
  func.func @transform_20(%arg0: i32) -> (i32, i32) {
    %c0_i32 = arith.constant 0 : i32
    %c0_i32_0 = arith.constant 0 : i32
    %c0_i32_1 = arith.constant 0 : i32
    return %c0_i32, %c0_i32_0 : i32, i32
  }
  func.func @transform_21(%arg0: i32) -> (i32, i32, i32) {
    %c0_i32 = arith.constant 0 : i32
    %c0_i32_0 = arith.constant 0 : i32
    %c0_i32_1 = arith.constant 0 : i32
    return %arg0, %c0_i32, %c0_i32_0 : i32, i32, i32
  }
}

</mosaic_0001>

<bundles_post_ra>
// kernel: generator_forward.1
= control target key start
LH: loop header
LB: loop body
LE: loop exit
PB: predicated region body
PF: predicated region fallthrough
CT: control target
= control target key end

     0   :  { %s5484_s0 = inlined_call_operand.vmem [shape: f32[2,196,64], index: 0, kind: input, shape index: {}]   ;;  %s5485_s1 = inlined_call_operand.vmem [shape: f32[2,16,64], index: 1, kind: input, shape index: {}]   ;;  %s5486_s2 = inlined_call_operand.vmem [shape: bf16[16,196], index: 2, kind: input, shape index: {}]   ;;  %s5487_s3 = inlined_call_operand.vmem [shape: f32[16,1], index: 3, kind: input, shape index: {}]   ;;  %s5488_s4 = inlined_call_operand.vmem [shape: bf16[64,192], index: 4, kind: input, shape index: {}]   ;;  %s5489_s5 = inlined_call_operand.vmem [shape: f32[1,192], index: 5, kind: input, shape index: {}]   ;;  %s5490_s6 = inlined_call_operand.vmem [shape: bf16[64,64], index: 6, kind: input, shape index: {}]   ;;  %s5491_s7 = inlined_call_operand.vmem [shape: f32[1,64], index: 7, kind: input, shape index: {}]   ;;  %s5492_s8 = inlined_call_operand.vmem [shape: f32[1,64], index: 8, kind: input, shape index: {}]   ;;  %s5493_s9 = inlined_call_operand.vmem [shape: f32[1,64], index: 9, kind: input, shape index: {}]   ;;  %s5494_s10 = inlined_call_operand.vmem [shape: bf16[64,128], index: 10, kind: input, shape index: {}]   ;;  %s5495_s11 = inlined_call_operand.vmem [shape: f32[1,128], index: 11, kind: input, shape index: {}]   ;;  %s5496_s12 = inlined_call_operand.vmem [shape: bf16[128,64], index: 12, kind: input, shape index: {}]   ;;  %s5497_s13 = inlined_call_operand.vmem [shape: f32[1,64], index: 13, kind: input, shape index: {}]   ;;  %s5498_s14 = inlined_call_operand.vmem [shape: f32[1,64], index: 14, kind: input, shape index: {}]   ;;  %s5499_s15 = inlined_call_operand.vmem [shape: f32[1,64], index: 15, kind: input, shape index: {}]   ;;  %s5500_s16 = inlined_call_operand.vmem [shape: bf16[64,128], index: 16, kind: input, shape index: {}]   ;;  %s5501_s17 = inlined_call_operand.vmem [shape: f32[128,64], index: 17, kind: input, shape index: {}]   ;;  %s5502_s18 = inlined_call_operand.vmem [shape: f32[128,128], index: 18, kind: input, shape index: {}]   ;;  %s5503_s19 = inlined_call_operand.vmem [shape: f32[128,64], index: 19, kind: input, shape index: {}]   ;;  %s5504_s20 = inlined_call_operand.vmem [shape: f32[128,128], index: 20, kind: input, shape index: {}]   ;;  %s5505_s21 = inlined_call_operand.hbm [shape: f32[2,16,128], index: 21, kind: output, shape index: {}]  }
   0x1   :  { %5545 = sst [smem:[#allocation31_spill]] %s5484_s0 }
   0x2   :  { %5546 = sst [smem:[#allocation32_spill]] %s5485_s1 }
   0x3   :  { %5547 = sst [smem:[#allocation33_spill]] %s5486_s2 }
   0x4   :  { %5548 = sst [smem:[#allocation34_spill]] %s5487_s3 }
   0x5   :  { %5549 = sst [smem:[#allocation35_spill]] %s5488_s4 }
   0x6   :  { %5550 = sst [smem:[#allocation36_spill]] %s5489_s5 }
   0x7   :  { %5551 = sst [smem:[#allocation37_spill]] %s5490_s6 }
   0x8   :  { %5552 = sst [smem:[#allocation38_spill]] %s5491_s7 }
   0x9   :  { %5553 = sst [smem:[#allocation39_spill]] %s5505_s21 }
   0xa   :  { %26 = vsyncpa [#allocation3], 0 }
   0xb   :  { %28 = vsyncpa [#allocation3 + $0x1], 0  ;;  %s3467_s2 = smov 0   ;;  %s3469_s25 = smov 0  }
   0xc   :  { %s3471_s26 = smov 0   ;;  %s3473_s27 = smov 0  }
   0xd LB: > { %5554 = sst [smem:[#allocation5_spill]] %s3337_s2  ;;  %s3488_s3 = sadd.s32 4294967295, %s3349_s27   ;;  %s3349_s27 = sphi %s3473_s27, %s5675_s27   ;;  %s3345_s26 = sphi %s3471_s26, %s5677_s26   ;;  %s3341_s25 = sphi %s3469_s25, %s5679_s25   ;;  %s3337_s2 = sphi %s3467_s2, %s5678_s2  }
   0xe   : > { %5555 = sst [smem:[#allocation6_spill]] %s3345_s26  ;;  %s2924_s28 = sadd.s32 4294967294, %s3349_s27  }
   0xf   : > { %5556 = sst [smem:[#allocation7_spill]] %s3349_s27  ;;  %s3492_s29 = sadd.s32 1, %s3349_s27  }
  0x10   : > { %5557 = sst [smem:[#allocation8_spill]] %s3492_s29  ;;  %s492_s0 = sadd.s32 1, %s3345_s26 }
  0x11   : > { %s489_s4 = ssub.s32 %s3349_s27, %s3492_s29  ;;  %p502_p0 = scmp.ne.s32.totalorder %s3345_s26, %s3341_s25 }
  0x12   : > { %p490_p1 = scmp.eq.s32.totalorder %s489_s4, 0  ;;  %p503_p2 = scmp.eq.s32.totalorder %s3488_s3, 1 }
  0x13   : > { %p508_p3 = scmp.ne.s32.totalorder %s3341_s25, %s3337_s2  ;;  %p509_p4 = scmp.eq.s32.totalorder %s2924_s28, 1 }
  0x14   : > { %s3503_s30 = scalar_select %p490_p1, %s3345_s26, %s492_s0  }
  0x15   : > { %p3505_p5 = por %p503_p2, %p502_p0  ;;  %p3509_p6 = por %p509_p4, %p508_p3 }
  0x16   : > { %5558 = sst [smem:[#allocation9_spill]] %s3503_s30  ;;  %p2927_p7 = scmp.ge.s32.totalorder %s3349_s27, 1 }
  0x17   : > { %s5560_s22 = scalar_select %p3509_p6, 1, 0 }
  0x18   : > { %p600_p8 = scmp.lt.s32.totalorder %s3349_s27, 3 }
  0x19   : > { %5561 = sst [smem:[#allocation10_spill]] %s5560_s22 }
  0x1a   : > { %p601_p9 = pnand %p2927_p7, %p600_p8 }
  0x1c   : > { %604 = sbr.rel (%p601_p9) target bundleno = 3707 (0xe7b), region = 104 }
  0x21   : > { %p665_p10 = scmp.lt.s32.totalorder %s3488_s3, 1  ;;  %vm701_vm0 = vcmask 523264   ;;  %s5562_s0 = sld [smem:[#allocation31_spill]]  ;;  %vm774_vm1 = vcmask 519168   ;;  %v3351_v50 = vmov 64.0  }
  0x22   : > { %3155 = vrcp.f32 %v3351_v50  ;;  %s5533_s28 = smov 64   ;;  %s5662_s29 = sld [smem:[#allocation33_spill]] }
  0x23   : > { %s3517_s23 = scalar_select %p665_p10, %s3488_s3, 1 }
  0x24   : > { %s5665_s24 = smov 64   ;;  %s5667_s6 = sld [smem:[#allocation37_spill]] }
  0x25   : > { %s3100_s1 = smul.u32 200, %s3517_s23  ;;  %s5668_s7 = sld [smem:[#allocation38_spill]] }
  0x26   : > { %s3068_s22 = sshll.u32 %s3517_s23, 4  ;;  %s5670_s30 = sld [smem:[#allocation32_spill]] }
  0x27   : > { %s3523_s4 = scalar_lea.vmem %s5562_s0, %s3100_s1  ;;  %s5656_s1 = sld [smem:[#allocation35_spill]] }
  0x28   : > { %v3526_v0 = vld [vmem:[%s3523_s4 + $0x70] sm:$0xff]  ;;  %v3529_v1 = vld [vmem:[%s3523_s4 + $0x60] sm:$0xff]  ;;  %v3541_v6 = vld [vmem:[%s3523_s4 + $0x78] sm:$0xff]  ;;  %v3156_v51 = vpop.eup %3155  ;;  %s662_s26 = sand.u32 1, %s3341_s25   ;;  %s5671_s23 = sld [smem:[#allocation39_spill]] }
  0x29   : > { %v3532_v2 = vld [vmem:[%s3523_s4 + $0x50] sm:$0xff]  ;;  %v744_v3 = vsel %vm701_vm0, %v3526_v0, 0.0  ;;  %v738_v4 = vsel %vm701_vm0, %v3529_v1, 0.0  ;;  %v3544_v7 = vld [vmem:[%s3523_s4 + $0x68] sm:$0xff]  ;;  %v3547_v8 = vld [vmem:[%s3523_s4 + $0x58] sm:$0xff]  ;;  %v747_v9 = vsel %vm701_vm0, %v3541_v6, 0.0  ;;  %vm783_vm2 = vweird.f32 %v3156_v51 }
  0x2a   : > { %v732_v5 = vsel %vm701_vm0, %v3532_v2, 0.0  ;;  %745 = vadd.xlane.f32.xlu0 %v744_v3  ;;  %739 = vadd.xlane.f32.xlu1 %v738_v4  ;;  %v741_v10 = vsel %vm701_vm0, %v3544_v7, 0.0  ;;  %v735_v11 = vsel %vm701_vm0, %v3547_v8, 0.0  ;;  %v3556_v12 = vld [vmem:[%s3523_s4 + $0x40] sm:$0xff]  ;;  %v3559_v13 = vld [vmem:[%s3523_s4 + $0x48] sm:$0xff]  ;;  %v3571_v18 = vld [vmem:[%s3523_s4 + $0x30] sm:$0xff] }
  0x2b   : > { %733 = vadd.xlane.f32.xlu2 %v732_v5  ;;  %v3562_v14 = vld [vmem:[%s3523_s4 + $0xc0] sm:$0xf]  ;;  %v726_v15 = vsel %vm701_vm0, %v3556_v12, 0.0  ;;  %v729_v16 = vsel %vm701_vm0, %v3559_v13, 0.0  ;;  %v3574_v19 = vld [vmem:[%s3523_s4 + $0x38] sm:$0xff]  ;;  %v3577_v20 = vld [vmem:[%s3523_s4 + $0xb0] sm:$0xff] }
  0x2c   : > { %v775_v17 = vsel %vm774_vm1, %v3562_v14, 0.0  ;;  %v720_v21 = vsel %vm701_vm0, %v3571_v18, 0.0  ;;  %v723_v22 = vsel %vm701_vm0, %v3574_v19, 0.0  ;;  %v768_v23 = vsel %vm701_vm0, %v3577_v20, 0.0  ;;  %v3586_v24 = vld [vmem:[%s3523_s4 + $0xb8] sm:$0xff]  ;;  %v3589_v25 = vld [vmem:[%s3523_s4 + $0x20] sm:$0xff]  ;;  %s674_s0 = scalar_lea.vmem %s5670_s30, %s3068_s22 }
  0x2d   : > { %v3592_v26 = vld [vmem:[%s3523_s4 + $0x28] sm:$0xff]  ;;  %v771_v27 = vsel %vm701_vm0, %v3586_v24, 0.0  ;;  %v714_v28 = vsel %vm701_vm0, %v3589_v25, 0.0  ;;  %v3601_v30 = vld [vmem:[%s3523_s4 + $0xa0] sm:$0xff]  ;;  %v3607_v32 = vld [vmem:[%s3523_s4 + $0x10] sm:$0xff]  ;;  %v779_v52 = vmul.f32 64.0, %v3156_v51 }
  0x2e   : > { %v717_v29 = vsel %vm701_vm0, %v3592_v26, 0.0  ;;  %v3604_v31 = vld [vmem:[%s3523_s4 + $0xa8] sm:$0xff]  ;;  %v762_v33 = vsel %vm701_vm0, %v3601_v30, 0.0  ;;  %v708_v35 = vsel %vm701_vm0, %v3607_v32, 0.0  ;;  %v3616_v36 = vld [vmem:[%s3523_s4 + $0x18] sm:$0xff]  ;;  %v3619_v37 = vld [vmem:[%s3523_s4 + $0x90] sm:$0xff] }
  0x2f   : > { %v765_v34 = vsel %vm701_vm0, %v3604_v31, 0.0  ;;  %v3622_v38 = vld [vmem:[%s3523_s4 + $0x98] sm:$0xff]  ;;  %v711_v39 = vsel %vm701_vm0, %v3616_v36, 0.0  ;;  %v756_v40 = vsel %vm701_vm0, %v3619_v37, 0.0  ;;  %v3631_v42 = vld [vmem:[%s3523_s4] sm:$0xff]  ;;  %v3634_v43 = vld [vmem:[%s3523_s4 + $0x8] sm:$0xff] }
  0x30   : > { %v759_v41 = vsel %vm701_vm0, %v3622_v38, 0.0  ;;  %v3637_v44 = vld [vmem:[%s3523_s4 + $0x80] sm:$0xff]  ;;  %v702_v45 = vsel %vm701_vm0, %v3631_v42, 0.0  ;;  %v705_v46 = vsel %vm701_vm0, %v3634_v43, 0.0  ;;  %v3646_v48 = vld [vmem:[%s3523_s4 + $0x88] sm:$0xff]  ;;  %v780_v53 = vsub.f32 1.0, %v779_v52 }
  0x31   : > { %v750_v47 = vsel %vm701_vm0, %v3637_v44, 0.0  ;;  %v753_v49 = vsel %vm701_vm0, %v3646_v48, 0.0  ;;  %s5657_s4 = sld [smem:[#allocation34_spill]]  ;;  %s2928_s22 = sshll.u32 %s662_s26, 4 }
  0x32   : > { %748 = vadd.xlane.f32.xlu0 %v747_v9  ;;  %742 = vadd.xlane.f32.xlu1 %v741_v10  ;;  %v781_v54 = vmul.f32 %v3156_v51, %v780_v53 }
  0x33   : > { %736 = vadd.xlane.f32.xlu2 %v735_v11 }
  0x34   : > { %v782_v55 = vadd.f32 %v3156_v51, %v781_v54 }
  0x36   : > { %v3650_v56 = vsel %vm783_vm2, %v3156_v51, %v782_v55 }
  0x37   : > { %5563 = vst [vmem:[#allocation11_spill] sm:$0xff] %v3650_v56 }
  0x3a   : > { %727 = vadd.xlane.f32.xlu0 %v726_v15  ;;  %730 = vadd.xlane.f32.xlu1 %v729_v16 }
  0x3b   : > { %776 = vadd.xlane.f32.xlu2 %v775_v17 }
  0x42   : > { %721 = vadd.xlane.f32.xlu0 %v720_v21  ;;  %724 = vadd.xlane.f32.xlu1 %v723_v22 }
  0x43   : > { %769 = vadd.xlane.f32.xlu2 %v768_v23 }
  0x4a   : > { %772 = vadd.xlane.f32.xlu0 %v771_v27  ;;  %715 = vadd.xlane.f32.xlu1 %v714_v28 }
  0x4b   : > { %718 = vadd.xlane.f32.xlu2 %v717_v29 }
  0x52   : > { %763 = vadd.xlane.f32.xlu0 %v762_v33  ;;  %766 = vadd.xlane.f32.xlu1 %v765_v34 }
  0x53   : > { %709 = vadd.xlane.f32.xlu2 %v708_v35 }
  0x5a   : > { %712 = vadd.xlane.f32.xlu0 %v711_v39  ;;  %757 = vadd.xlane.f32.xlu1 %v756_v40 }
  0x5b   : > { %760 = vadd.xlane.f32.xlu2 %v759_v41 }
  0x62   : > { %703 = vadd.xlane.f32.xlu0 %v702_v45  ;;  %706 = vadd.xlane.f32.xlu1 %v705_v46 }
  0x63   : > { %751 = vadd.xlane.f32.xlu2 %v750_v47 }
  0x6a   : > { %754 = vadd.xlane.f32.xlu0 %v753_v49 }
  0x9d   : > { %v746_v57 = vpop.xlane.xlu0 %745  ;;  %v740_v58 = vpop.xlane.xlu1 %739 }
  0x9e   : > { %v799_v59 = vmul.f32 %v3650_v56, %v746_v57  ;;  %v797_v60 = vmul.f32 %v3650_v56, %v740_v58  ;;  %v734_v61 = vpop.xlane.xlu2 %733 }
  0x9f   : > { %v795_v17 = vmul.f32 %v3650_v56, %v734_v61 }
  0xa0   : > { %v3655_v62 = vsub.f32 %v3526_v0, %v799_v59  ;;  %v3658_v63 = vsub.f32 %v3529_v1, %v797_v60 }
  0xa1   : > { %v3686_v33 = vsub.f32 %v3532_v2, %v795_v17 }
  0xa2   : > { %v849_v3 = vmul.f32 %v3655_v62, %v3655_v62  ;;  %v847_v4 = vmul.f32 %v3658_v63, %v3658_v63 }
  0xa3   : > { %v845_v46 = vmul.f32 %v3686_v33, %v3686_v33 }
  0xa4   : > { %v902_v5 = vsel %vm701_vm0, %v849_v3, 0.0  ;;  %v896_v9 = vsel %vm701_vm0, %v847_v4, 0.0 }
  0xa5   : > { %v749_v10 = vpop.xlane.xlu0 %748  ;;  %v743_v11 = vpop.xlane.xlu1 %742  ;;  %903 = vadd.xlane.f32.xlu1 %v902_v5  ;;  %897 = vadd.xlane.f32.xlu0 %v896_v9  ;;  %v890_v52 = vsel %vm701_vm0, %v845_v46, 0.0 }
  0xa6   : > { %v800_v0 = vmul.f32 %v3650_v56, %v749_v10  ;;  %v798_v15 = vmul.f32 %v3650_v56, %v743_v11  ;;  %v737_v1 = vpop.xlane.xlu2 %736 }
  0xa7   : > { %v796_v16 = vmul.f32 %v3650_v56, %v737_v1 }
  0xa8   : > { %v3671_v21 = vsub.f32 %v3541_v6, %v800_v0  ;;  %v3674_v22 = vsub.f32 %v3544_v7, %v798_v15 }
  0xa9   : > { %v3677_v23 = vsub.f32 %v3547_v8, %v796_v16 }
  0xaa   : > { %v850_v27 = vmul.f32 %v3671_v21, %v3671_v21  ;;  %v848_v28 = vmul.f32 %v3674_v22, %v3674_v22 }
  0xab   : > { %v846_v29 = vmul.f32 %v3677_v23, %v3677_v23 }
  0xac   : > { %v905_v6 = vsel %vm701_vm0, %v850_v27, 0.0  ;;  %v899_v7 = vsel %vm701_vm0, %v848_v28, 0.0 }
  0xad   : > { %v728_v34 = vpop.xlane.xlu0 %727  ;;  %906 = vadd.xlane.f32.xlu2 %v905_v6  ;;  %900 = vadd.xlane.f32.xlu1 %v899_v7  ;;  %v893_v8 = vsel %vm701_vm0, %v846_v29, 0.0  ;;  %v731_v35 = vpop.xlane.xlu1 %730 }
  0xae   : > { %v777_v39 = vpop.xlane.xlu2 %776  ;;  %v793_v40 = vmul.f32 %v3650_v56, %v728_v34  ;;  %894 = vadd.xlane.f32.xlu0 %v893_v8  ;;  %v794_v41 = vmul.f32 %v3650_v56, %v731_v35 }
  0xaf   : > { %v809_v45 = vmul.f32 %v3650_v56, %v777_v39 }
  0xb0   : > { %v3695_v2 = vsub.f32 %v3556_v12, %v793_v40  ;;  %v3703_v49 = vsub.f32 %v3559_v13, %v794_v41 }
  0xb1   : > { %v3700_v47 = vsub.f32 %v3562_v14, %v809_v45 }
  0xb2   : > { %v843_v50 = vmul.f32 %v3695_v2, %v3695_v2  ;;  %v844_v58 = vmul.f32 %v3703_v49, %v3703_v49 }
  0xb3   : > { %v859_v51 = vmul.f32 %v3700_v47, %v3700_v47 }
  0xb4   : > { %v884_v12 = vsel %vm701_vm0, %v843_v50, 0.0  ;;  %v887_v4 = vsel %vm701_vm0, %v844_v58, 0.0 }
  0xb5   : > { %v722_v53 = vpop.xlane.xlu0 %721  ;;  %891 = vadd.xlane.f32.xlu2 %v890_v52  ;;  %885 = vadd.xlane.f32.xlu1 %v884_v12  ;;  %v932_v54 = vsel %vm774_vm1, %v859_v51, 0.0  ;;  %v725_v14 = vpop.xlane.xlu1 %724 }
  0xb6   : > { %v770_v55 = vpop.xlane.xlu2 %769  ;;  %v791_v13 = vmul.f32 %v3650_v56, %v722_v53  ;;  %933 = vadd.xlane.f32.xlu0 %v932_v54  ;;  %v792_v57 = vmul.f32 %v3650_v56, %v725_v14 }
  0xb7   : > { %v807_v59 = vmul.f32 %v3650_v56, %v770_v55 }
  0xb8   : > { %v3718_v60 = vsub.f32 %v3571_v18, %v791_v13  ;;  %v3724_v3 = vsub.f32 %v3574_v19, %v792_v57 }
  0xb9   : > { %v3721_v61 = vsub.f32 %v3577_v20, %v807_v59 }
  0xba   : > { %v841_v5 = vmul.f32 %v3718_v60, %v3718_v60  ;;  %v842_v1 = vmul.f32 %v3724_v3, %v3724_v3 }
  0xbb   : > { %5564 = vst [vmem:[#allocation12_spill] sm:$0xff] %v3721_v61  ;;  %v857_v9 = vmul.f32 %v3721_v61, %v3721_v61 }
  0xbc   : > { %v878_v10 = vsel %vm701_vm0, %v841_v5, 0.0  ;;  %v881_v29 = vsel %vm701_vm0, %v842_v1, 0.0 }
  0xbd   : > { %v773_v11 = vpop.xlane.xlu0 %772  ;;  %888 = vadd.xlane.f32.xlu2 %v887_v4  ;;  %879 = vadd.xlane.f32.xlu1 %v878_v10  ;;  %v926_v18 = vsel %vm701_vm0, %v857_v9, 0.0  ;;  %v716_v20 = vpop.xlane.xlu1 %715 }
  0xbe   : > { %v808_v0 = vmul.f32 %v3650_v56, %v773_v11  ;;  %v719_v19 = vpop.xlane.xlu2 %718  ;;  %927 = vadd.xlane.f32.xlu0 %v926_v18  ;;  %v789_v15 = vmul.f32 %v3650_v56, %v716_v20 }
  0xbf   : > { %v790_v16 = vmul.f32 %v3650_v56, %v719_v19 }
  0xc0   : > { %v3739_v17 = vsub.f32 %v3586_v24, %v808_v0  ;;  %v3745_v28 = vsub.f32 %v3589_v25, %v789_v15 }
  0xc1   : > { %v3742_v27 = vsub.f32 %v3592_v26, %v790_v16 }
  0xc2   : > { %5565 = vst [vmem:[#allocation13_spill] sm:$0xff] %v3739_v17  ;;  %v858_v6 = vmul.f32 %v3739_v17, %v3739_v17  ;;  %v839_v40 = vmul.f32 %v3745_v28, %v3745_v28 }
  0xc3   : > { %5566 = vst [vmem:[#allocation14_spill] sm:$0xff] %v3742_v27  ;;  %v840_v7 = vmul.f32 %v3742_v27, %v3742_v27 }
  0xc4   : > { %5567 = vst [vmem:[#allocation15_spill] sm:$0xff] %v3745_v28  ;;  %v929_v34 = vsel %vm701_vm0, %v858_v6, 0.0  ;;  %v872_v51 = vsel %vm701_vm0, %v839_v40, 0.0  ;;  %v3352_v40 = vmov 63.0  }
  0xc5   : > { %v764_v8 = vpop.xlane.xlu0 %763  ;;  %882 = vadd.xlane.f32.xlu2 %v881_v29  ;;  %930 = vadd.xlane.f32.xlu1 %v929_v34  ;;  %v875_v24 = vsel %vm701_vm0, %v840_v7, 0.0  ;;  %v767_v26 = vpop.xlane.xlu1 %766  ;;  %3157 = vrcp.f32 %v3352_v40 }
  0xc6   : > { %v805_v35 = vmul.f32 %v3650_v56, %v764_v8  ;;  %v710_v25 = vpop.xlane.xlu2 %709  ;;  %876 = vadd.xlane.f32.xlu0 %v875_v24  ;;  %v806_v39 = vmul.f32 %v3650_v56, %v767_v26 }
  0xc7   : > { %v787_v41 = vmul.f32 %v3650_v56, %v710_v25 }
  0xc8   : > { %v3760_v45 = vsub.f32 %v3601_v30, %v805_v35  ;;  %v3766_v50 = vsub.f32 %v3604_v31, %v806_v39 }
  0xc9   : > { %v3763_v46 = vsub.f32 %v3607_v32, %v787_v41 }
  0xca   : > { %5568 = vst [vmem:[#allocation16_spill] sm:$0xff] %v3760_v45  ;;  %v855_v52 = vmul.f32 %v3760_v45, %v3760_v45  ;;  %v856_v13 = vmul.f32 %v3766_v50, %v3766_v50 }
  0xcb   : > { %5569 = vst [vmem:[#allocation17_spill] sm:$0xff] %v3763_v46  ;;  %v837_v12 = vmul.f32 %v3763_v46, %v3763_v46  ;;  %v3158_v41 = vpop.eup %3157 }
  0xcc   : > { %5570 = vst [vmem:[#allocation18_spill] sm:$0xff] %v3766_v50  ;;  %v920_v53 = vsel %vm701_vm0, %v855_v52, 0.0  ;;  %v923_v5 = vsel %vm701_vm0, %v856_v13, 0.0  ;;  %vm940_vm3 = vweird.f32 %v3158_v41 }
  0xcd   : > { %v713_v54 = vpop.xlane.xlu0 %712  ;;  %873 = vadd.xlane.f32.xlu2 %v872_v51  ;;  %921 = vadd.xlane.f32.xlu1 %v920_v53  ;;  %v866_v30 = vsel %vm701_vm0, %v837_v12, 0.0  ;;  %v758_v32 = vpop.xlane.xlu1 %757  ;;  %v936_v51 = vmul.f32 63.0, %v3158_v41 }
  0xce   : > { %v788_v14 = vmul.f32 %v3650_v56, %v713_v54  ;;  %v761_v31 = vpop.xlane.xlu2 %760  ;;  %867 = vadd.xlane.f32.xlu0 %v866_v30  ;;  %v803_v55 = vmul.f32 %v3650_v56, %v758_v32 }
  0xcf   : > { %v804_v57 = vmul.f32 %v3650_v56, %v761_v31  ;;  %v937_v52 = vsub.f32 1.0, %v936_v51 }
  0xd0   : > { %v3781_v58 = vsub.f32 %v3616_v36, %v788_v14  ;;  %v3787_v4 = vsub.f32 %v3619_v37, %v803_v55 }
  0xd1   : > { %v3784_v59 = vsub.f32 %v3622_v38, %v804_v57  ;;  %v938_v12 = vmul.f32 %v3158_v41, %v937_v52 }
  0xd2   : > { %5571 = vst [vmem:[#allocation19_spill] sm:$0xff] %v3781_v58  ;;  %v838_v9 = vmul.f32 %v3781_v58, %v3781_v58  ;;  %v853_v0 = vmul.f32 %v3787_v4, %v3787_v4 }
  0xd3   : > { %5572 = vst [vmem:[#allocation20_spill] sm:$0xff] %v3784_v59  ;;  %v854_v10 = vmul.f32 %v3784_v59, %v3784_v59  ;;  %v939_v53 = vadd.f32 %v3158_v41, %v938_v12 }
  0xd4   : > { %5573 = vst [vmem:[#allocation21_spill] sm:$0xff] %v3787_v4  ;;  %v869_v11 = vsel %vm701_vm0, %v838_v9, 0.0  ;;  %v914_v29 = vsel %vm701_vm0, %v853_v0, 0.0 }
  0xd5   : > { %924 = vadd.xlane.f32.xlu2 %v923_v5  ;;  %870 = vadd.xlane.f32.xlu1 %v869_v11  ;;  %v917_v36 = vsel %vm701_vm0, %v854_v10, 0.0  ;;  %v704_v18 = vpop.xlane.xlu0 %703  ;;  %v707_v38 = vpop.xlane.xlu1 %706  ;;  %v3827_v54 = vsel %vm940_vm3, %v3158_v41, %v939_v53 }
  0xd6   : > { %v752_v20 = vpop.xlane.xlu2 %751  ;;  %918 = vadd.xlane.f32.xlu0 %v917_v36  ;;  %v785_v37 = vmul.f32 %v3650_v56, %v704_v18  ;;  %v786_v19 = vmul.f32 %v3650_v56, %v707_v38 }
  0xd7   : > { %v801_v15 = vmul.f32 %v3650_v56, %v752_v20 }
  0xd8   : > { %v3802_v1 = vsub.f32 %v3631_v42, %v785_v37  ;;  %v3809_v6 = vsub.f32 %v3634_v43, %v786_v19 }
  0xd9   : > { %v3805_v16 = vsub.f32 %v3637_v44, %v801_v15 }
  0xda   : > { %5574 = vst [vmem:[#allocation22_spill] sm:$0xff] %v3802_v1  ;;  %v835_v7 = vmul.f32 %v3802_v1, %v3802_v1  ;;  %v836_v43 = vmul.f32 %v3809_v6, %v3809_v6 }
  0xdb   : > { %5575 = vst [vmem:[#allocation23_spill] sm:$0xff] %v3805_v16  ;;  %v851_v34 = vmul.f32 %v3805_v16, %v3805_v16 }
  0xdc   : > { %5576 = vst [vmem:[#allocation24_spill] sm:$0xff] %v3809_v6  ;;  %v860_v8 = vsel %vm701_vm0, %v835_v7, 0.0  ;;  %v863_v35 = vsel %vm701_vm0, %v836_v43, 0.0 }
  0xdd   : > { %915 = vadd.xlane.f32.xlu2 %v914_v29  ;;  %v908_v42 = vsel %vm701_vm0, %v851_v34, 0.0  ;;  %861 = vadd.xlane.f32.xlu1 %v860_v8  ;;  %v755_v24 = vpop.xlane.xlu0 %754 }
  0xde   : > { %909 = vadd.xlane.f32.xlu0 %v908_v42  ;;  %v802_v44 = vmul.f32 %v3650_v56, %v755_v24 }
  0xe0   : > { %v3821_v26 = vsub.f32 %v3646_v48, %v802_v44 }
  0xe2   : > { %5577 = vst [vmem:[#allocation25_spill] sm:$0xff] %v3821_v26  ;;  %v852_v25 = vmul.f32 %v3821_v26, %v3821_v26 }
  0xe4   : > { %v911_v39 = vsel %vm701_vm0, %v852_v25, 0.0 }
  0xe5   : > { %864 = vadd.xlane.f32.xlu2 %v863_v35  ;;  %912 = vadd.xlane.f32.xlu1 %v911_v39 }
 0x118   : > { %v904_v48 = vpop.xlane.xlu1 %903  ;;  %v898_v30 = vpop.xlane.xlu0 %897 }
 0x119   : > { %v956_v32 = vmul.f32 %v3827_v54, %v904_v48  ;;  %v3831_v14 = vmul.f32 %v3827_v54, %v898_v30 }
 0x11b   : > { %3159 = vrsqrt.f32 %v956_v32  ;;  %vm1142_vm4 = vcmp.eq.f32.partialorder %v956_v32, inf  ;;  %v1145_v51 = vand.u32 2147483648, %v956_v32  ;;  %vm1144_vm5 = vcmp.eq.f32.partialorder %v956_v32, 0.0 }
 0x11c   : > { %3161 = vrsqrt.f32 %v3831_v14  ;;  %vm1118_vm6 = vcmp.eq.f32.partialorder %v3831_v14, inf  ;;  %vm1120_vm8 = vcmp.eq.f32.partialorder %v3831_v14, 0.0 }
 0x120   : > { %v907_v31 = vpop.xlane.xlu2 %906  ;;  %v901_v55 = vpop.xlane.xlu1 %900 }
 0x121   : > { %v3160_v13 = vpop.eup %3159  ;;  %v3835_v57 = vmul.f32 %v3827_v54, %v907_v31  ;;  %v3838_v5 = vmul.f32 %v3827_v54, %v901_v55  ;;  %v895_v9 = vpop.xlane.xlu0 %894 }
 0x122   : > { %v3162_v10 = vpop.eup %3161  ;;  %v1136_v11 = vmul.f32 %v3160_v13, %v956_v32  ;;  %v3844_v0 = vmul.f32 %v3827_v54, %v895_v9 }
 0x123   : > { %v1112_v36 = vmul.f32 %v3162_v10, %v3831_v14  ;;  %3163 = vrsqrt.f32 %v3835_v57  ;;  %vm1154_vm7 = vcmp.eq.f32.partialorder %v3835_v57, inf  ;;  %vm1156_vm9 = vcmp.eq.f32.partialorder %v3835_v57, 0.0 }
 0x124   : > { %3165 = vrsqrt.f32 %v3838_v5  ;;  %v1137_v18 = vmul.f32 %v3160_v13, %v1136_v11  ;;  %vm1130_vm10 = vcmp.eq.f32.partialorder %v3838_v5, inf  ;;  %vm1132_vm11 = vcmp.eq.f32.partialorder %v3838_v5, 0.0 }
 0x125   : > { %v1113_v38 = vmul.f32 %v3162_v10, %v1112_v36  ;;  %3167 = vrsqrt.f32 %v3844_v0 }
 0x126   : > { %v1138_v20 = vmul.f32 0.5, %v1137_v18 }
 0x127   : > { %v1114_v37 = vmul.f32 0.5, %v1113_v38 }
 0x128   : > { %v892_v19 = vpop.xlane.xlu2 %891  ;;  %v886_v15 = vpop.xlane.xlu1 %885  ;;  %v1139_v29 = vsub.f32 1.5, %v1138_v20 }
 0x129   : > { %v3164_v7 = vpop.eup %3163  ;;  %v934_v34 = vpop.xlane.xlu0 %933  ;;  %v1115_v8 = vsub.f32 1.5, %v1114_v37  ;;  %v3849_v35 = vmul.f32 %v3827_v54, %v892_v19  ;;  %v3853_v41 = vmul.f32 %v3827_v54, %v886_v15 }
 0x12a   : > { %v3166_v42 = vpop.eup %3165  ;;  %v1148_v24 = vmul.f32 %v3164_v7, %v3835_v57  ;;  %v1140_v44 = vmul.f32 %v3160_v13, %v1139_v29  ;;  %v3857_v53 = vmul.f32 %v3827_v54, %v934_v34  ;;  %v1157_v29 = vand.u32 2147483648, %v3835_v57 }
 0x12b   : > { %v1124_v43 = vmul.f32 %v3166_v42, %v3838_v5  ;;  %v1116_v25 = vmul.f32 %v3162_v10, %v1115_v8  ;;  %3169 = vrsqrt.f32 %v3849_v35  ;;  %v3867_v18 = vpop.eup %3167  ;;  %vm1094_vm2 = vcmp.eq.f32.partialorder %v3849_v35, inf }
 0x12c   : > { %v1141_v39 = vmul.f32 %v1140_v44, %v956_v32  ;;  %v1149_v40 = vmul.f32 %v3164_v7, %v1148_v24 }
 0x12d   : > { %v1117_v52 = vmul.f32 %v1116_v25, %v3831_v14  ;;  %v1125_v12 = vmul.f32 %v3166_v42, %v1124_v43 }
 0x12e   : > { %v1143_v48 = vsel %vm1142_vm4, %v956_v32, %v1141_v39  ;;  %v1150_v30 = vmul.f32 0.5, %v1149_v40  ;;  %v1121_v32 = vand.u32 2147483648, %v3831_v14 }
 0x12f   : > { %v3860_v31 = vsel %vm1144_vm5, %v1145_v51, %v1143_v48  ;;  %v1126_v55 = vmul.f32 0.5, %v1125_v12  ;;  %v1119_v11 = vsel %vm1118_vm6, %v3831_v14, %v1117_v52  ;;  %v1100_v14 = vmul.f32 %v3867_v18, %v3844_v0 }
 0x130   : > { %v889_v13 = vpop.xlane.xlu2 %888  ;;  %v880_v9 = vpop.xlane.xlu1 %879  ;;  %v1151_v10 = vsub.f32 1.5, %v1150_v30  ;;  %3171 = vrcp.f32 %v3860_v31  ;;  %v3876_v37 = vsel %vm1120_vm8, %v1121_v32, %v1119_v11  ;;  %v1486_v8 = vand.u32 2147483647, %v3860_v31 }
 0x131   : > { %3173 = vrsqrt.f32 %v3853_v41  ;;  %v928_v36 = vpop.xlane.xlu0 %927  ;;  %v3873_v20 = vmul.f32 %v3827_v54, %v889_v13  ;;  %v1127_v19 = vsub.f32 1.5, %v1126_v55  ;;  %v3887_v34 = vmul.f32 %v3827_v54, %v880_v9 }
 0x132   : > { %3175 = vrsqrt.f32 %v3857_v53  ;;  %v1152_v38 = vmul.f32 %v3164_v7, %v1151_v10  ;;  %v3882_v7 = vpop.eup %3169  ;;  %v3893_v43 = vmul.f32 %v3827_v54, %v928_v36  ;;  %v1488_v39 = vand.u32 2147483648, %v3860_v31 }
 0x133   : > { %v1128_v24 = vmul.f32 %v3166_v42, %v1127_v19  ;;  %3177 = vrcp.f32 %v3876_v37  ;;  %v1088_v48 = vmul.f32 %v3882_v7, %v3849_v35  ;;  %v1133_v13 = vand.u32 2147483648, %v3838_v5 }
 0x134   : > { %v1153_v15 = vmul.f32 %v1152_v38, %v3835_v57  ;;  %3179 = vrsqrt.f32 %v3873_v20  ;;  %v1101_v32 = vmul.f32 %v3867_v18, %v1100_v14  ;;  %vm1482_vm12 = vweird.f32 %v3860_v31 }
 0x135   : > { %v1129_v52 = vmul.f32 %v1128_v24, %v3838_v5  ;;  %v1489_v19 = vor.u32 1.1754944e-38, %v1488_v39  ;;  %vm3934_vm13 = vcmp.eq.f32.partialorder %v1486_v8, 8.507059e+37  ;;  %vm1452_vm1 = vweird.f32 %v3876_v37 }
 0x136   : > { %v3890_v44 = vpop.eup %3171  ;;  %v1155_v25 = vsel %vm1154_vm7, %v3835_v57, %v1153_v15  ;;  %v1102_v56 = vmul.f32 0.5, %v1101_v32  ;;  %vm1106_vm5 = vcmp.eq.f32.partialorder %v3844_v0, inf  ;;  %vm1096_vm6 = vcmp.eq.f32.partialorder %v3849_v35, 0.0 }
 0x137   : > { %v3900_v40 = vpop.eup %3173  ;;  %v3905_v42 = vsel %vm1156_vm9, %v1157_v29, %v1155_v25  ;;  %v1478_v51 = vmul.f32 %v3890_v44, %v3860_v31  ;;  %v1131_v11 = vsel %vm1130_vm10, %v3838_v5, %v1129_v52  ;;  %vm1483_vm14 = vweird.f32 %v3890_v44 }
 0x138   : > { %v3910_v12 = vpop.eup %3175  ;;  %v883_v30 = vpop.xlane.xlu2 %882  ;;  %3181 = vrcp.f32 %v3905_v42  ;;  %v3924_v38 = vmul.f32 %v3900_v40, %v3853_v41  ;;  %v3940_v14 = vsel %vm1132_vm11, %v1133_v13, %v1131_v11  ;;  %v1089_v52 = vmul.f32 %v3882_v7, %v1088_v48  ;;  %vm3980_vm3 = vmor %vm1482_vm12, %vm1483_vm14 }
 0x139   : > { %v931_v55 = vpop.xlane.xlu1 %930  ;;  %v877_v9 = vpop.xlane.xlu0 %876  ;;  %v1479_v10 = vsub.f32 1.0, %v1478_v51  ;;  %3183 = vrsqrt.f32 %v3887_v34  ;;  %v3930_v15 = vmul.f32 %v3910_v12, %v3857_v53  ;;  %v3945_v39 = vmul.f32 %v3827_v54, %v883_v30 }
 0x13a   : > { %3185 = vrsqrt.f32 %v3893_v43  ;;  %v3942_v25 = vpop.eup %3177  ;;  %v1501_v51 = vand.u32 2147483647, %v3905_v42  ;;  %v3953_v8 = vmul.f32 %v3827_v54, %v931_v55  ;;  %v1503_v13 = vand.u32 2147483648, %v3905_v42 }
 0x13b   : > { %v1480_v29 = vmul.f32 %v3890_v44, %v1479_v10  ;;  %v3950_v10 = vpop.eup %3179  ;;  %v1448_v11 = vmul.f32 %v3942_v25, %v3876_v37  ;;  %v3960_v57 = vmul.f32 %v3827_v54, %v877_v9  ;;  %3187 = vrcp.f32 %v3940_v14 }
 0x13c   : > { %vm1497_vm15 = vweird.f32 %v3905_v42  ;;  %v3973_v9 = vmul.f32 %v3950_v10, %v3873_v20  ;;  %3189 = vrsqrt.f32 %v3945_v39  ;;  %vm3984_vm4 = vcmp.eq.f32.partialorder %v1501_v51, 8.507059e+37 }
 0x13d   : > { %v1481_v5 = vadd.f32 %v3890_v44, %v1480_v29  ;;  %v1449_v29 = vsub.f32 1.0, %v1448_v11  ;;  %v1090_v16 = vmul.f32 0.5, %v1089_v52  ;;  %3191 = vrsqrt.f32 %v3953_v8 }
 0x13e   : > { %v3182_v30 = vpop.eup %3181  ;;  %v1504_v31 = vor.u32 1.1754944e-38, %v1503_v13  ;;  %3193 = vrsqrt.f32 %v3960_v57  ;;  %vm1108_vm8 = vcmp.eq.f32.partialorder %v3844_v0, 0.0  ;;  %vm1453_vm9 = vweird.f32 %v3942_v25 }
 0x13f   : > { %v1493_v55 = vmul.f32 %v3182_v30, %v3905_v42  ;;  %v3969_v26 = vpop.eup %3183  ;;  %v1485_v59 = vsel %vm3980_vm3, %v3890_v44, %v1481_v5  ;;  %v1450_v52 = vmul.f32 %v3942_v25, %v1449_v29  ;;  %v1091_v50 = vsub.f32 1.5, %v1090_v16  ;;  %vm4036_vm11 = vmor %vm1452_vm1, %vm1453_vm9 }
 0x140   : > { %v874_v48 = vpop.xlane.xlu2 %873  ;;  %v3988_v6 = vpop.eup %3185  ;;  %vm1498_vm7 = vweird.f32 %v3182_v30  ;;  %v1103_v44 = vsub.f32 1.5, %v1102_v56  ;;  %v1490_v13 = vsel %vm3934_vm13, %v1489_v19, %v1485_v59  ;;  %vm1467_vm14 = vweird.f32 %v3940_v14 }
 0x141   : > { %v922_v36 = vpop.xlane.xlu1 %921  ;;  %v868_v1 = vpop.xlane.xlu0 %867  ;;  %v1494_v4 = vsub.f32 1.0, %v1493_v55  ;;  %v3997_v51 = vmul.f32 %v3827_v54, %v874_v48  ;;  %v1471_v48 = vand.u32 2147483647, %v3940_v14  ;;  %v1092_v16 = vmul.f32 %v3882_v7, %v1091_v50  ;;  %vm1499_vm10 = vmor %vm1497_vm15, %vm1498_vm7 }
 0x142   : > { %v4002_v45 = vmul.f32 %v3827_v54, %v922_v36  ;;  %v3188_v5 = vpop.eup %3187  ;;  %v1451_v29 = vadd.f32 %v3942_v25, %v1450_v52  ;;  %v4017_v24 = vmul.f32 %v3827_v54, %v868_v1  ;;  %v1491_v7 = vmul.f32 %v1490_v13, %v3655_v62 }
 0x143   : > { %v1495_v58 = vmul.f32 %v3182_v30, %v1494_v4  ;;  %v1463_v36 = vmul.f32 %v3188_v5, %v3940_v14  ;;  %v1473_v4 = vand.u32 2147483648, %v3940_v14  ;;  %v4013_v56 = vpop.eup %3189  ;;  %3195 = vrsqrt.f32 %v3997_v51 }
 0x144   : > { %5584 = vst [vmem:[#allocation26_spill] sm:$0xff] %v4002_v45  ;;  %v1093_v50 = vmul.f32 %v1092_v16, %v3849_v35  ;;  %v4024_v59 = vpop.eup %3191  ;;  %3197 = vrsqrt.f32 %v4002_v45  ;;  %vm1468_vm12 = vweird.f32 %v3188_v5  ;;  %v1257_v14 = vmul.f32 %v3910_v12, %v3930_v15 }
 0x145   : > { %v1496_v55 = vadd.f32 %v3182_v30, %v1495_v58  ;;  %5585 = vst [vmem:[#allocation27_spill] sm:$0xff] %v4017_v24  ;;  %v1104_v58 = vmul.f32 %v3867_v18, %v1103_v44  ;;  %v1464_v11 = vsub.f32 1.0, %v1463_v36  ;;  %v4028_v52 = vpop.eup %3193  ;;  %3199 = vrsqrt.f32 %v4017_v24  ;;  %vm1469_vm15 = vmor %vm1467_vm14, %vm1468_vm12 }
 0x146   : > { %v1095_v62 = vsel %vm1094_vm2, %v3849_v35, %v1093_v50  ;;  %v5590_v36 = vand.u32 2147483648, %v3876_v37  ;;  %vm1472_vm1 = vcmp.eq.f32.partialorder %v1471_v48, 8.507059e+37  ;;  %vm1262_vm2 = vcmp.eq.f32.partialorder %v3857_v53, inf }
 0x147   : > { %v1500_v19 = vsel %vm1499_vm10, %v3182_v30, %v1496_v55  ;;  %v1105_v42 = vmul.f32 %v1104_v58, %v3844_v0  ;;  %v1465_v44 = vmul.f32 %v3188_v5, %v1464_v11  ;;  %v5589_v55 = vand.u32 2147483647, %v3876_v37 }
 0x148   : > { %v925_v1 = vpop.xlane.xlu2 %924  ;;  %v1505_v46 = vsel %vm3984_vm4, %v1504_v31, %v1500_v19  ;;  %v1455_v31 = vsel %vm4036_vm11, %v3942_v25, %v1451_v29  ;;  %v1459_v50 = vor.u32 1.1754944e-38, %v5590_v36  ;;  %v5591_v25 = vand.u32 2147483648, %v3849_v35 }
 0x149   : > { %v4045_v30 = vmul.f32 %v3827_v54, %v925_v1  ;;  %v1506_v32 = vmul.f32 %v1505_v46, %v3671_v21  ;;  %v871_v13 = vpop.xlane.xlu1 %870  ;;  %v919_v16 = vpop.xlane.xlu0 %918  ;;  %vm1457_vm13 = vcmp.eq.f32.partialorder %v5589_v55, 8.507059e+37  ;;  %v1107_v58 = vsel %vm1106_vm5, %v3844_v0, %v1105_v42 }
 0x14a   : > { %v1466_v46 = vadd.f32 %v3188_v5, %v1465_v44  ;;  %v4064_v29 = vsel %vm1096_vm6, %v5591_v25, %v1095_v62  ;;  %v4066_v19 = vpop.eup %3195  ;;  %v1460_v11 = vsel %vm1457_vm13, %v1459_v50, %v1455_v31  ;;  %v1474_v37 = vor.u32 1.1754944e-38, %v1473_v4 }
 0x14b   : > { %5588 = vst [vmem:[#allocation28_spill] sm:$0xff] %v4045_v30  ;;  %v1651_v21 = vpack.c.bf16 %v1506_v32, %v1491_v7  ;;  %v5592_v1 = vand.u32 2147483648, %v3844_v0  ;;  %v4077_v18 = vpop.eup %3197  ;;  %v4081_v35 = vmul.f32 %v3969_v26, %v3887_v34  ;;  %3201 = vrsqrt.f32 %v4045_v30 }
 0x14c   : > { %5593 = vst [vmem:[#allocation29_spill] sm:$0xff] %v4077_v18  ;;  %v1470_v62 = vsel %vm1469_vm15, %v3188_v5, %v1466_v46  ;;  %v4086_v4 = vmul.f32 %v3988_v6, %v3893_v43  ;;  %v4089_v0 = vmul.f32 %v3827_v54, %v871_v13  ;;  %3203 = vrcp.f32 %v4064_v29  ;;  %v4099_v5 = vpop.eup %3199 }
 0x14d   : > { %v4073_v7 = vsel %vm1108_vm8, %v5592_v1, %v1107_v58  ;;  %1686 = vmatpush.bf16.msra.mxu0 %v1651_v21  ;;  %v1475_v42 = vsel %vm1472_vm1, %v1474_v37, %v1470_v62  ;;  %v4093_v15 = vmul.f32 %v3827_v54, %v919_v16  ;;  %v1461_v32 = vmul.f32 %v1460_v11, %v3658_v63 }
 0x14e   : > { %v1476_v31 = vmul.f32 %v1475_v42, %v3674_v22  ;;  %3205 = vrcp.f32 %v4073_v7  ;;  %v4103_v48 = vmul.f32 %v4013_v56, %v3945_v39  ;;  %v4107_v44 = vmul.f32 %v4024_v59, %v3953_v8 }
 0x14f   : > { %v4111_v13 = vmul.f32 %v4028_v52, %v3960_v57  ;;  %v1258_v63 = vmul.f32 0.5, %v1257_v14  ;;  %v1426_v16 = vand.u32 2147483647, %v4064_v29  ;;  %v1428_v55 = vand.u32 2147483648, %v4064_v29 }
 0x150   : > { %v1650_v22 = vpack.c.bf16 %v1476_v31, %v1461_v32  ;;  %vm1264_vm3 = vcmp.eq.f32.partialorder %v3857_v53, 0.0  ;;  %v4118_v36 = vmul.f32 %v4066_v19, %v3997_v51  ;;  %3207 = vrsqrt.f32 %v4089_v0  ;;  %v916_v50 = vpop.xlane.xlu2 %915 }
 0x151   : > { %v1441_v58 = vand.u32 2147483647, %v4073_v7  ;;  %v1259_v21 = vsub.f32 1.5, %v1258_v63  ;;  %v4122_v46 = vpop.eup %3201  ;;  %v4126_v25 = vmul.f32 %v4077_v18, %v4002_v45  ;;  %v4130_v11 = vmul.f32 %v4099_v5, %v4017_v24  ;;  %v862_v14 = vpop.xlane.xlu1 %861 }
 0x152   : > { %3209 = vrsqrt.f32 %v4093_v15  ;;  %1687 = vmatpush.bf16.msra.mxu0 %v1650_v22  ;;  %v1065_v37 = vmul.f32 %v3900_v40, %v3924_v38  ;;  %v3204_v1 = vpop.eup %3203  ;;  %v910_v62 = vpop.xlane.xlu0 %909  ;;  %vm1422_vm4 = vweird.f32 %v4064_v29  ;;  %vm1437_vm5 = vweird.f32 %v4073_v7 }
 0x153   : > { %5594 = vst [vmem:[#allocation30_spill] sm:$0xff] %v4126_v25  ;;  %v1443_v42 = vand.u32 2147483648, %v4073_v7  ;;  %v1260_v32 = vmul.f32 %v3910_v12, %v1259_v21  ;;  %v4140_v63 = vmul.f32 %v3827_v54, %v916_v50  ;;  %v1418_v22 = vmul.f32 %v3204_v1, %v4064_v29 }
 0x154   : > { %v3206_v31 = vpop.eup %3205  ;;  %vm4143_vm6 = vcmp.eq.f32.partialorder %v1426_v16, 8.507059e+37  ;;  %v1429_v38 = vor.u32 1.1754944e-38, %v1428_v55  ;;  %v1066_v28 = vmul.f32 0.5, %v1065_v37  ;;  %vm4148_vm7 = vcmp.eq.f32.partialorder %v1441_v58, 8.507059e+37 }
 0x155   : > { %v1433_v45 = vmul.f32 %v3206_v31, %v4073_v7  ;;  %v1261_v12 = vmul.f32 %v1260_v32, %v3857_v53  ;;  %v1265_v21 = vand.u32 2147483648, %v3857_v53  ;;  %v4156_v50 = vmul.f32 %v4122_v46, %v4045_v30 }
 0x156   : > { %v4159_v16 = vmul.f32 %v3827_v54, %v862_v14  ;;  %v4162_v55 = vmul.f32 %v3827_v54, %v910_v62  ;;  %v1419_v37 = vsub.f32 1.0, %v1418_v22  ;;  %v4164_v61 = vpop.eup %3207  ;;  %v1444_v18 = vor.u32 1.1754944e-38, %v1443_v42 }
 0x157   : > { %v1434_v58 = vsub.f32 1.0, %v1433_v45  ;;  %v1263_v32 = vsel %vm1262_vm2, %v3857_v53, %v1261_v12  ;;  %v1067_v25 = vsub.f32 1.5, %v1066_v28  ;;  %3211 = vrsqrt.f32 %v4140_v63 }
 0x158   : > { %v4169_v24 = vpop.eup %3209  ;;  %v1420_v30 = vmul.f32 %v3204_v1, %v1419_v37  ;;  %vm1423_vm8 = vweird.f32 %v3204_v1  ;;  %v4174_v14 = vsel %vm1264_vm3, %v1265_v21, %v1263_v32  ;;  %vm1438_vm9 = vweird.f32 %v3206_v31 }
 0x159   : > { %v1435_v62 = vmul.f32 %v3206_v31, %v1434_v58  ;;  %3213 = vrcp.f32 %v4174_v14  ;;  %v1077_v45 = vmul.f32 %v3950_v10, %v3973_v9  ;;  %v4181_v28 = vmul.f32 %v4164_v61, %v4089_v0  ;;  %vm1424_vm11 = vmor %vm1422_vm4, %vm1423_vm8  ;;  %v865_v58 = vpop.xlane.xlu2 %864 }
 0x15a   : > { %3215 = vrsqrt.f32 %v4159_v16  ;;  %v1421_v42 = vadd.f32 %v3204_v1, %v1420_v30  ;;  %vm1070_vm10 = vcmp.eq.f32.partialorder %v3853_v41, inf  ;;  %v4187_v53 = vmul.f32 %v4169_v24, %v4093_v15  ;;  %vm1439_vm12 = vmor %vm1437_vm5, %vm1438_vm9 }
 0x15b   : > { %3217 = vrsqrt.f32 %v4162_v55  ;;  %v1436_v22 = vadd.f32 %v3206_v31, %v1435_v62  ;;  %v1068_v9 = vmul.f32 %v3900_v40, %v1067_v25  ;;  %vm1072_vm13 = vcmp.eq.f32.partialorder %v3853_v41, 0.0 }
 0x15c   : > { %v1425_v12 = vsel %vm1424_vm11, %v3204_v1, %v1421_v42  ;;  %v1073_v30 = vand.u32 2147483648, %v3853_v41  ;;  %vm1082_vm14 = vcmp.eq.f32.partialorder %v3873_v20, inf  ;;  %v1078_v32 = vmul.f32 0.5, %v1077_v45 }
 0x15d   : > { %v1430_v21 = vsel %vm4143_vm6, %v1429_v38, %v1425_v12  ;;  %v1440_v37 = vsel %vm1439_vm12, %v3206_v31, %v1436_v22  ;;  %v1069_v29 = vmul.f32 %v1068_v9, %v3853_v41  ;;  %v4201_v62 = vpop.eup %3211  ;;  %vm1084_vm15 = vcmp.eq.f32.partialorder %v3873_v20, 0.0  ;;  %v913_v31 = vpop.xlane.xlu1 %912 }
 0x15e   : > { %v1431_v40 = vmul.f32 %v1430_v21, %v3686_v33  ;;  %v1445_v7 = vsel %vm4148_vm7, %v1444_v18, %v1440_v37  ;;  %v1041_v25 = vmul.f32 %v3969_v26, %v4081_v35  ;;  %v1079_v45 = vsub.f32 1.5, %v1078_v32 }
 0x15f   : > { %v3214_v1 = vpop.eup %3213  ;;  %v1446_v27 = vmul.f32 %v1445_v7, %v3677_v23  ;;  %v1071_v38 = vsel %vm1070_vm10, %v3853_v41, %v1069_v29  ;;  %v1085_v42 = vand.u32 2147483648, %v3873_v20  ;;  %v4218_v18 = vmul.f32 %v3827_v54, %v865_v58 }
 0x160   : > { %v4214_v33 = vpop.eup %3215  ;;  %v1628_v17 = vmul.f32 %v3214_v1, %v4174_v14  ;;  %v4222_v35 = vsel %vm1072_vm13, %v1073_v30, %v1071_v38  ;;  %v1042_v23 = vmul.f32 0.5, %v1041_v25  ;;  %v1636_v12 = vand.u32 2147483647, %v4174_v14 }
 0x161   : > { %v4224_v22 = vpop.eup %3217  ;;  %v1649_v9 = vpack.c.bf16 %v1446_v27, %v1431_v40  ;;  %v1080_v21 = vmul.f32 %v3950_v10, %v1079_v45  ;;  %3219 = vrcp.f32 %v4222_v35  ;;  %v4231_v37 = vmul.f32 %v4201_v62, %v4140_v63 }
 0x162   : > { %v1629_v58 = vsub.f32 1.0, %v1628_v17  ;;  %vm1632_vm1 = vweird.f32 %v4174_v14  ;;  %v4235_v41 = vmul.f32 %v3827_v54, %v913_v31  ;;  %v4239_v30 = vmul.f32 %v4214_v33, %v4159_v16 }
 0x163   : > { %1688 = vmatpush.bf16.msra.mxu0 %v1649_v9  ;;  %v1638_v29 = vand.u32 2147483648, %v4174_v14  ;;  %vm1682_vm2 = vcmask 1041408   ;;  %v1081_v10 = vmul.f32 %v1080_v21, %v3873_v20  ;;  %v1043_v32 = vsub.f32 1.5, %v1042_v23 }
 0x164   : > { %v4245_v40 = vmul.f32 %v4224_v22, %v4162_v55  ;;  %v1630_v7 = vmul.f32 %v3214_v1, %v1629_v58  ;;  %vm1633_vm3 = vweird.f32 %v3214_v1  ;;  %v1053_v54 = vmul.f32 %v4013_v56, %v4103_v48 }
 0x165   : > { %vm4249_vm4 = vcmp.eq.f32.partialorder %v1636_v12, 8.507059e+37  ;;  %3221 = vrsqrt.f32 %v4218_v18  ;;  %v1083_v27 = vsel %vm1082_vm14, %v3873_v20, %v1081_v10  ;;  %v1044_v31 = vmul.f32 %v3969_v26, %v1043_v32  ;;  %vm1634_vm5 = vmor %vm1632_vm1, %vm1633_vm3 }
 0x166   : > { %v1631_v38 = vadd.f32 %v3214_v1, %v1630_v7  ;;  %3223 = vrsqrt.f32 %v4235_v41  ;;  %v4261_v45 = vsel %vm1084_vm15, %v1085_v42, %v1083_v27  ;;  %v1054_v48 = vmul.f32 0.5, %v1053_v54 }
 0x167   : > { %v3220_v17 = vpop.eup %3219  ;;  %v1639_v23 = vor.u32 1.1754944e-38, %v1638_v29  ;;  %3225 = vrcp.f32 %v4261_v45  ;;  %vm1046_vm6 = vcmp.eq.f32.partialorder %v3887_v34, inf  ;;  %vm1048_vm7 = vcmp.eq.f32.partialorder %v3887_v34, 0.0 }
 0x168   : > { %v1635_v26 = vsel %vm1634_vm5, %v3214_v1, %v1631_v38  ;;  %v1388_v9 = vmul.f32 %v3220_v17, %v4222_v35  ;;  %vm1392_vm8 = vweird.f32 %v4222_v35  ;;  %v1045_v20 = vmul.f32 %v1044_v31, %v3887_v34 }
 0x169   : > { %v1640_v42 = vsel %vm4249_vm4, %v1639_v23, %v1635_v26  ;;  %v1396_v14 = vand.u32 2147483647, %v4222_v35  ;;  %v1049_v12 = vand.u32 2147483648, %v3887_v34  ;;  %v1055_v21 = vsub.f32 1.5, %v1054_v48 }
 0x16a   : > { %v1641_v58 = vmul.f32 %v1640_v42, %v3700_v47  ;;  %v1389_v29 = vsub.f32 1.0, %v1388_v9  ;;  %v1047_v10 = vsel %vm1046_vm6, %v3887_v34, %v1045_v20  ;;  %v1233_v1 = vmul.f32 %v3988_v6, %v4086_v4 }
 0x16b   : > { %v4279_v32 = vpop.eup %3221  ;;  %v1398_v7 = vand.u32 2147483648, %v4222_v35  ;;  %v4282_v54 = vsel %vm1048_vm7, %v1049_v12, %v1047_v10  ;;  %v1056_v25 = vmul.f32 %v4013_v56, %v1055_v21  ;;  %vm1058_vm9 = vcmp.eq.f32.partialorder %v3945_v39, inf }
 0x16c   : > { %v4286_v27 = vpop.eup %3223  ;;  %v1656_v31 = vpack.c.bf16 %v1641_v58, %v1641_v58  ;;  %v1390_v47 = vmul.f32 %v3220_v17, %v1389_v29  ;;  %vm1393_vm10 = vweird.f32 %v3220_v17  ;;  %3227 = vrcp.f32 %v4282_v54 }
 0x16d   : > { %v3226_v34 = vpop.eup %3225  ;;  %v1411_v4 = vand.u32 2147483647, %v4261_v45  ;;  %v1413_v38 = vand.u32 2147483648, %v4261_v45  ;;  %v1057_v48 = vmul.f32 %v1056_v25, %v3945_v39  ;;  %v1234_v23 = vmul.f32 0.5, %v1233_v1  ;;  %vm4297_vm11 = vmor %vm1392_vm8, %vm1393_vm10 }
 0x16e   : > { %v1684_v26 = vsel %vm1682_vm2, %v1656_v31, 0  ;;  %v1391_v56 = vadd.f32 %v3220_v17, %v1390_v47  ;;  %v1403_v9 = vmul.f32 %v3226_v34, %v4261_v45  ;;  %v1061_v20 = vand.u32 2147483648, %v3945_v39 }
 0x16f   : > { %1703 = vmatpush.bf16.msra.mxu1 %v1684_v26  ;;  %vm4301_vm12 = vcmp.eq.f32.partialorder %v1396_v14, 8.507059e+37  ;;  %v1059_v21 = vsel %vm1058_vm9, %v3945_v39, %v1057_v48  ;;  %vm1060_vm13 = vcmp.eq.f32.partialorder %v3945_v39, 0.0  ;;  %v1235_v58 = vsub.f32 1.5, %v1234_v23 }
 0x170   : > { %v1395_v29 = vsel %vm4297_vm11, %v3220_v17, %v1391_v56  ;;  %v1399_v10 = vor.u32 1.1754944e-38, %v1398_v7  ;;  %v1404_v35 = vsub.f32 1.0, %v1403_v9  ;;  %v4311_v1 = vsel %vm1060_vm13, %v1061_v20, %v1059_v21 }
 0x171   : > { %vm1407_vm14 = vweird.f32 %v4261_v45  ;;  %vm4314_vm15 = vcmp.eq.f32.partialorder %v1411_v4, 8.507059e+37  ;;  %v1414_v25 = vor.u32 1.1754944e-38, %v1413_v38  ;;  %3229 = vrcp.f32 %v4311_v1 }
 0x172   : > { %v3228_v31 = vpop.eup %3227  ;;  %v1405_v47 = vmul.f32 %v3226_v34, %v1404_v35  ;;  %vm1408_vm1 = vweird.f32 %v3226_v34  ;;  %v1366_v39 = vand.u32 2147483647, %v4282_v54  ;;  %v1236_v17 = vmul.f32 %v3988_v6, %v1235_v58 }
 0x173   : > { %v1400_v7 = vsel %vm4301_vm12, %v1399_v10, %v1395_v29  ;;  %v1358_v48 = vmul.f32 %v3228_v31, %v4282_v54  ;;  %vm1238_vm2 = vcmp.eq.f32.partialorder %v3893_v43, inf  ;;  %v1245_v4 = vmul.f32 %v4024_v59, %v4107_v44  ;;  %vm1409_vm5 = vmor %vm1407_vm14, %vm1408_vm1 }
 0x174   : > { %v1406_v38 = vadd.f32 %v3226_v34, %v1405_v47  ;;  %vm1362_vm3 = vweird.f32 %v4282_v54  ;;  %v1237_v23 = vmul.f32 %v1236_v17, %v3893_v43  ;;  %vm1240_vm4 = vcmp.eq.f32.partialorder %v3893_v43, 0.0 }
 0x175   : > { %v1359_v6 = vsub.f32 1.0, %v1358_v48  ;;  %v1368_v26 = vand.u32 2147483648, %v4282_v54  ;;  %v1241_v56 = vand.u32 2147483648, %v3893_v43  ;;  %v1246_v9 = vmul.f32 0.5, %v1245_v4 }
 0x176   : > { %v1401_v20 = vmul.f32 %v1400_v7, %v3695_v2  ;;  %v1410_v42 = vsel %vm1409_vm5, %v3226_v34, %v1406_v38  ;;  %vm4335_vm6 = vcmp.eq.f32.partialorder %v1366_v39, 8.507059e+37  ;;  %v1239_v12 = vsel %vm1238_vm2, %v3893_v43, %v1237_v23 }
 0x177   : > { %v1017_v21 = vmul.f32 %v4066_v19, %v4118_v36  ;;  %v3230_v45 = vpop.eup %3229  ;;  %v1415_v58 = vsel %vm4314_vm15, %v1414_v25, %v1410_v42  ;;  %v1360_v29 = vmul.f32 %v3228_v31, %v1359_v6  ;;  %v4344_v10 = vsel %vm1240_vm4, %v1241_v56, %v1239_v12 }
 0x178   : > { %v1247_v35 = vsub.f32 1.5, %v1246_v9  ;;  %v1416_v2 = vmul.f32 %v1415_v58, %v3703_v49  ;;  %vm1363_vm7 = vweird.f32 %v3228_v31  ;;  %v1373_v34 = vmul.f32 %v3230_v45, %v4311_v1 }
 0x179   : > { %3231 = vrcp.f32 %v4344_v10  ;;  %v1361_v47 = vadd.f32 %v3228_v31, %v1360_v29  ;;  %v1369_v43 = vor.u32 1.1754944e-38, %v1368_v26  ;;  %v1381_v39 = vand.u32 2147483647, %v4311_v1  ;;  %vm4354_vm8 = vmor %vm1362_vm3, %vm1363_vm7 }
 0x17a   : > { %v1248_v36 = vmul.f32 %v4024_v59, %v1247_v35  ;;  %v1648_v17 = vpack.c.bf16 %v1416_v2, %v1401_v20  ;;  %v1374_v14 = vsub.f32 1.0, %v1373_v34  ;;  %v1383_v25 = vand.u32 2147483648, %v4311_v1 }
 0x17b   : > { %v1018_v7 = vmul.f32 0.5, %v1017_v21  ;;  %vm1377_vm9 = vweird.f32 %v4311_v1  ;;  %vm1250_vm10 = vcmp.eq.f32.partialorder %v3953_v8, inf  ;;  %v1253_v4 = vand.u32 2147483648, %v3953_v8 }
 0x17c   : > { %v1249_v48 = vmul.f32 %v1248_v36, %v3953_v8  ;;  %1689 = vmatpush.bf16.msra.mxu0 %v1648_v17  ;;  %v1365_v59 = vsel %vm4354_vm8, %v3228_v31, %v1361_v47  ;;  %v1375_v38 = vmul.f32 %v3230_v45, %v1374_v14  ;;  %vm1378_vm11 = vweird.f32 %v3230_v45 }
 0x17d   : > { %v1019_v23 = vsub.f32 1.5, %v1018_v7  ;;  %vm4364_vm12 = vcmp.eq.f32.partialorder %v1381_v39, 8.507059e+37  ;;  %vm1252_vm13 = vcmp.eq.f32.partialorder %v3953_v8, 0.0  ;;  %v1029_v26 = vmul.f32 %v4028_v52, %v4111_v13  ;;  %vm1379_vm14 = vmor %vm1377_vm9, %vm1378_vm11 }
 0x17e   : > { %v1251_v6 = vsel %vm1250_vm10, %v3953_v8, %v1249_v48  ;;  %v1376_v9 = vadd.f32 %v3230_v45, %v1375_v38  ;;  %v1384_v20 = vor.u32 1.1754944e-38, %v1383_v25  ;;  %v1370_v12 = vsel %vm4335_vm6, %v1369_v43, %v1365_v59 }
 0x17f   : > { %v3232_v56 = vpop.eup %3231  ;;  %v4372_v42 = vsel %vm1252_vm13, %v1253_v4, %v1251_v6  ;;  %v1020_v31 = vmul.f32 %v4066_v19, %v1019_v23  ;;  %vm1022_vm15 = vcmp.eq.f32.partialorder %v3997_v51, inf  ;;  %v1606_v13 = vand.u32 2147483647, %v4344_v10 }
 0x180   : > { %v1598_v21 = vmul.f32 %v3232_v56, %v4344_v10  ;;  %3233 = vrcp.f32 %v4372_v42  ;;  %v1380_v8 = vsel %vm1379_vm14, %v3230_v45, %v1376_v9  ;;  %v1608_v58 = vand.u32 2147483648, %v4344_v10 }
 0x181   : > { %v1021_v29 = vmul.f32 %v1020_v31, %v3997_v51  ;;  %v1385_v19 = vsel %vm4364_vm12, %v1384_v20, %v1380_v8  ;;  %v1025_v1 = vand.u32 2147483648, %v3997_v51  ;;  %v1030_v35 = vmul.f32 0.5, %v1029_v26 }
 0x182   : > { %v1599_v44 = vsub.f32 1.0, %v1598_v21  ;;  %v1371_v2 = vmul.f32 %v1370_v12, %v3718_v60  ;;  %v1386_v34 = vmul.f32 %v1385_v19, %v3724_v3  ;;  %vm1024_vm1 = vcmp.eq.f32.partialorder %v3997_v51, 0.0 }
 0x183   : > { %v1023_v47 = vsel %vm1022_vm15, %v3997_v51, %v1021_v29  ;;  %vm1602_vm2 = vweird.f32 %v4344_v10  ;;  %v1031_v39 = vsub.f32 1.5, %v1030_v35  ;;  %vm1603_vm3 = vweird.f32 %v3232_v56 }
 0x184   : > { %v1600_v45 = vmul.f32 %v3232_v56, %v1599_v44  ;;  %v4393_v43 = vsel %vm1024_vm1, %v1025_v1, %v1023_v47  ;;  %v1647_v36 = vpack.c.bf16 %v1386_v34, %v1371_v2  ;;  %v1621_v17 = vand.u32 2147483647, %v4372_v42  ;;  %vm4409_vm6 = vmor %vm1602_vm2, %vm1603_vm3  ;;  %v5620_v44 = vld [vmem:[#allocation30_spill] sm:$0xff]  ;;  %v5621_v1 = vld [vmem:[#allocation29_spill] sm:$0xff] }
 0x185   : > { %3235 = vrcp.f32 %v4393_v43  ;;  %v1623_v3 = vand.u32 2147483648, %v4372_v42  ;;  %v1032_v25 = vmul.f32 %v4028_v52, %v1031_v39  ;;  %v993_v51 = vmul.f32 %v4099_v5, %v4130_v11  ;;  %v5622_v2 = vld [vmem:[#allocation12_spill] sm:$0xff] }
 0x186   : > { %v3234_v14 = vpop.eup %3233  ;;  %v1601_v60 = vadd.f32 %v3232_v56, %v1600_v45  ;;  %1690 = vmatpush.bf16.msra.mxu0 %v1647_v36  ;;  %vm4401_vm4 = vcmp.eq.f32.partialorder %v1606_v13, 8.507059e+37  ;;  %v1609_v49 = vor.u32 1.1754944e-38, %v1608_v58  ;;  %vm1034_vm5 = vcmp.eq.f32.partialorder %v3960_v57, inf  ;;  %v5619_v58 = vld [vmem:[#allocation27_spill] sm:$0xff] }
 0x187   : > { %v1613_v48 = vmul.f32 %v3234_v14, %v4372_v42  ;;  %vm1617_vm7 = vweird.f32 %v4372_v42  ;;  %v1033_v52 = vmul.f32 %v1032_v25, %v3960_v57  ;;  %vm1036_vm8 = vcmp.eq.f32.partialorder %v3960_v57, 0.0 }
 0x188   : > { %v994_v11 = vmul.f32 0.5, %v993_v51  ;;  %v1605_v59 = vsel %vm4409_vm6, %v3232_v56, %v1601_v60  ;;  %vm4418_vm9 = vcmp.eq.f32.partialorder %v1621_v17, 8.507059e+37  ;;  %v1037_v10 = vand.u32 2147483648, %v3960_v57  ;;  %v5623_v60 = vld [vmem:[#allocation13_spill] sm:$0xff] }
 0x189   : > { %v1614_v38 = vsub.f32 1.0, %v1613_v48  ;;  %v1624_v54 = vor.u32 1.1754944e-38, %v1623_v3  ;;  %v1035_v6 = vsel %vm1034_vm5, %v3960_v57, %v1033_v52  ;;  %v1005_v9 = vmul.f32 %v4164_v61, %v4181_v28 }
 0x18a   : > { %v995_v26 = vsub.f32 1.5, %v994_v11  ;;  %vm1618_vm10 = vweird.f32 %v3234_v14  ;;  %v4426_v12 = vsel %vm1036_vm8, %v1037_v10, %v1035_v6  ;;  %vm1332_vm11 = vweird.f32 %v4393_v43 }
 0x18b   : > { %v3236_v20 = vpop.eup %3235  ;;  %v1615_v31 = vmul.f32 %v3234_v14, %v1614_v38  ;;  %v1610_v56 = vsel %vm4401_vm4, %v1609_v49, %v1605_v59  ;;  %v1336_v8 = vand.u32 2147483647, %v4393_v43  ;;  %3237 = vrcp.f32 %v4426_v12  ;;  %vm1619_vm13 = vmor %vm1617_vm7, %vm1618_vm10 }
 0x18c   : > { %v1328_v21 = vmul.f32 %v3236_v20, %v4393_v43  ;;  %v1338_v13 = vand.u32 2147483648, %v4393_v43  ;;  %v996_v28 = vmul.f32 %v4099_v5, %v995_v26  ;;  %vm998_vm12 = vcmp.eq.f32.partialorder %v5619_v58, inf }
 0x18d   : > { %v1616_v57 = vadd.f32 %v3234_v14, %v1615_v31  ;;  %vm1000_vm14 = vcmp.eq.f32.partialorder %v5619_v58, 0.0  ;;  %v1006_v19 = vmul.f32 0.5, %v1005_v9  ;;  %v1209_v35 = vmul.f32 %v5621_v1, %v5620_v44 }
 0x18e   : > { %v1329_v29 = vsub.f32 1.0, %v1328_v21  ;;  %v1611_v34 = vmul.f32 %v1610_v56, %v5622_v2  ;;  %v997_v45 = vmul.f32 %v996_v28, %v5619_v58  ;;  %v1001_v39 = vand.u32 2147483648, %v5619_v58  ;;  %v5631_v2 = vld [vmem:[#allocation15_spill] sm:$0xff] }
 0x18f   : > { %v1620_v47 = vsel %vm1619_vm13, %v3234_v14, %v1616_v57  ;;  %v1007_v42 = vsub.f32 1.5, %v1006_v19  ;;  %v1210_v17 = vmul.f32 0.5, %v1209_v35  ;;  %vm1333_vm15 = vweird.f32 %v3236_v20 }
 0x190   : > { %v1625_v5 = vsel %vm4418_vm9, %v1624_v54, %v1620_v47  ;;  %v1330_v36 = vmul.f32 %v3236_v20, %v1329_v29  ;;  %v1351_v25 = vand.u32 2147483647, %v4426_v12  ;;  %v999_v51 = vsel %vm998_vm12, %v5619_v58, %v997_v45  ;;  %vm4465_vm2 = vmor %vm1332_vm11, %vm1333_vm15 }
 0x191   : > { %v1626_v3 = vmul.f32 %v1625_v5, %v5623_v60  ;;  %v3238_v14 = vpop.eup %3237  ;;  %v4454_v49 = vsel %vm1000_vm14, %v1001_v39, %v999_v51  ;;  %v1008_v48 = vmul.f32 %v4164_v61, %v1007_v42  ;;  %v1211_v4 = vsub.f32 1.5, %v1210_v17 }
 0x192   : > { %v1331_v7 = vadd.f32 %v3236_v20, %v1330_v36  ;;  %vm4457_vm1 = vcmp.eq.f32.partialorder %v1336_v8, 8.507059e+37  ;;  %v1343_v59 = vmul.f32 %v3238_v14, %v4426_v12  ;;  %3239 = vrcp.f32 %v4454_v49 }
 0x193   : > { %v1655_v52 = vpack.c.bf16 %v1626_v3, %v1611_v34  ;;  %v1339_v23 = vor.u32 1.1754944e-38, %v1338_v13  ;;  %v1009_v10 = vmul.f32 %v1008_v48, %v4089_v0  ;;  %vm1010_vm3 = vcmp.eq.f32.partialorder %v4089_v0, inf }
 0x194   : > { %vm1012_vm4 = vcmp.eq.f32.partialorder %v4089_v0, 0.0  ;;  %v1335_v61 = vsel %vm4465_vm2, %v3236_v20, %v1331_v7  ;;  %v1344_v54 = vsub.f32 1.0, %v1343_v59  ;;  %v1013_v6 = vand.u32 2147483648, %v4089_v0  ;;  %v5630_v20 = vld [vmem:[#allocation26_spill] sm:$0xff]  ;;  %v5635_v59 = vld [vmem:[#allocation28_spill] sm:$0xff] }
 0x195   : > { %1704 = vmatpush.bf16.msra.mxu1 %v1655_v52  ;;  %v1212_v43 = vmul.f32 %v5621_v1, %v1211_v4  ;;  %vm1347_vm5 = vweird.f32 %v4426_v12  ;;  %vm4477_vm6 = vcmp.eq.f32.partialorder %v1351_v25, 8.507059e+37  ;;  %v1353_v9 = vand.u32 2147483648, %v4426_v12  ;;  %v5632_v12 = vld [vmem:[#allocation14_spill] sm:$0xff] }
 0x196   : > { %v1011_v31 = vsel %vm1010_vm3, %v4089_v0, %v1009_v10  ;;  %v1345_v56 = vmul.f32 %v3238_v14, %v1344_v54  ;;  %vm1348_vm7 = vweird.f32 %v3238_v14  ;;  %v1340_v57 = vsel %vm4457_vm1, %v1339_v23, %v1335_v61 }
 0x197   : > { %v4483_v21 = vsel %vm1012_vm4, %v1013_v6, %v1011_v31  ;;  %v1213_v8 = vmul.f32 %v1212_v43, %v5630_v20  ;;  %v1306_v13 = vand.u32 2147483647, %v4454_v49  ;;  %vm1214_vm8 = vcmp.eq.f32.partialorder %v5630_v20, inf  ;;  %vm1349_vm9 = vmor %vm1347_vm5, %vm1348_vm7 }
 0x198   : > { %3241 = vrcp.f32 %v4483_v21  ;;  %v3240_v28 = vpop.eup %3239  ;;  %v1346_v58 = vadd.f32 %v3238_v14, %v1345_v56  ;;  %v1217_v0 = vand.u32 2147483648, %v5630_v20  ;;  %v1221_v19 = vmul.f32 %v4122_v46, %v4156_v50 }
 0x199   : > { %v1215_v29 = vsel %vm1214_vm8, %v5630_v20, %v1213_v8  ;;  %v1354_v44 = vor.u32 1.1754944e-38, %v1353_v9  ;;  %v1298_v1 = vmul.f32 %v3240_v28, %v4454_v49  ;;  %v1308_v35 = vand.u32 2147483648, %v4454_v49 }
 0x19a   : > { %vm1216_vm10 = vcmp.eq.f32.partialorder %v5630_v20, 0.0  ;;  %v1341_v34 = vmul.f32 %v1340_v57, %v5631_v2  ;;  %v1350_v47 = vsel %vm1349_vm9, %v3238_v14, %v1346_v58  ;;  %v1222_v39 = vmul.f32 0.5, %v1221_v19 }
 0x19b   : > { %v4501_v45 = vsel %vm1216_vm10, %v1217_v0, %v1215_v29  ;;  %v1355_v5 = vsel %vm4477_vm6, %v1354_v44, %v1350_v47  ;;  %v1299_v50 = vsub.f32 1.0, %v1298_v1  ;;  %vm1302_vm11 = vweird.f32 %v4454_v49  ;;  %v5640_v1 = vld [vmem:[#allocation17_spill] sm:$0xff] }
 0x19c   : > { %3243 = vrcp.f32 %v4501_v45  ;;  %v1356_v36 = vmul.f32 %v1355_v5, %v5632_v12  ;;  %vm4508_vm12 = vcmp.eq.f32.partialorder %v1306_v13, 8.507059e+37  ;;  %v1321_v17 = vand.u32 2147483647, %v4483_v21 }
 0x19d   : > { %v1223_v60 = vsub.f32 1.5, %v1222_v39  ;;  %v1300_v25 = vmul.f32 %v3240_v28, %v1299_v50  ;;  %vm1303_vm13 = vweird.f32 %v3240_v28  ;;  %v1309_v51 = vor.u32 1.1754944e-38, %v1308_v35 }
 0x19e   : > { %v3242_v3 = vpop.eup %3241  ;;  %v1185_v14 = vmul.f32 %v4201_v62, %v4231_v37  ;;  %v1646_v7 = vpack.c.bf16 %v1356_v36, %v1341_v34  ;;  %vm1317_vm14 = vweird.f32 %v4483_v21  ;;  %v1323_v11 = vand.u32 2147483648, %v4483_v21  ;;  %vm4522_vm1 = vmor %vm1302_vm11, %vm1303_vm13  ;;  %v5641_v34 = vld [vmem:[#allocation19_spill] sm:$0xff] }
 0x19f   : > { %v1313_v48 = vmul.f32 %v3242_v3, %v4483_v21  ;;  %v1224_v4 = vmul.f32 %v4122_v46, %v1223_v60  ;;  %v1301_v52 = vadd.f32 %v3240_v28, %v1300_v25  ;;  %vm1226_vm15 = vcmp.eq.f32.partialorder %v5635_v59, inf }
 0x1a0   : > { %v1186_v38 = vmul.f32 0.5, %v1185_v14  ;;  %1691 = vmatpush.bf16.msra.mxu0 %v1646_v7  ;;  %vm4526_vm2 = vcmp.eq.f32.partialorder %v1321_v17, 8.507059e+37  ;;  %vm1228_vm3 = vcmp.eq.f32.partialorder %v5635_v59, 0.0  ;;  %v1229_v49 = vand.u32 2147483648, %v5635_v59 }
 0x1a1   : > { %v1314_v37 = vsub.f32 1.0, %v1313_v48  ;;  %v1225_v46 = vmul.f32 %v1224_v4, %v5635_v59  ;;  %v1305_v54 = vsel %vm4522_vm1, %v3240_v28, %v1301_v52  ;;  %v1197_v43 = vmul.f32 %v4169_v24, %v4187_v53 }
 0x1a2   : > { %v4532_v61 = vpop.eup %3243  ;;  %v1187_v6 = vsub.f32 1.5, %v1186_v38  ;;  %vm1318_vm4 = vweird.f32 %v3242_v3  ;;  %v1324_v56 = vor.u32 1.1754944e-38, %v1323_v11  ;;  %v1576_v8 = vand.u32 2147483647, %v4501_v45 }
 0x1a3   : > { %v1315_v26 = vmul.f32 %v3242_v3, %v1314_v37  ;;  %v1227_v9 = vsel %vm1226_vm15, %v5635_v59, %v1225_v46  ;;  %v1568_v31 = vmul.f32 %v4532_v61, %v4501_v45  ;;  %v1310_v13 = vsel %vm4508_vm12, %v1309_v51, %v1305_v54  ;;  %vm1319_vm5 = vmor %vm1317_vm14, %vm1318_vm4 }
 0x1a4   : > { %v4542_v20 = vsel %vm1228_vm3, %v1229_v49, %v1227_v9  ;;  %v1188_v57 = vmul.f32 %v4201_v62, %v1187_v6  ;;  %v1578_v53 = vand.u32 2147483648, %v4501_v45  ;;  %vm1190_vm6 = vcmp.eq.f32.partialorder %v4140_v63, inf  ;;  %v5648_v9 = vld [vmem:[#allocation16_spill] sm:$0xff] }
 0x1a5   : > { %v1316_v28 = vadd.f32 %v3242_v3, %v1315_v26  ;;  %v1569_v58 = vsub.f32 1.0, %v1568_v31  ;;  %3245 = vrcp.f32 %v4542_v20  ;;  %v1198_v0 = vmul.f32 0.5, %v1197_v43 }
 0x1a6   : > { %v1189_v29 = vmul.f32 %v1188_v57, %v4140_v63  ;;  %vm1192_vm7 = vcmp.eq.f32.partialorder %v4140_v63, 0.0  ;;  %v1193_v44 = vand.u32 2147483648, %v4140_v63  ;;  %v1311_v35 = vmul.f32 %v1310_v13, %v5640_v1 }
 0x1a7   : > { %v1320_v19 = vsel %vm1319_vm5, %v3242_v3, %v1316_v28  ;;  %v1570_v62 = vmul.f32 %v4532_v61, %v1569_v58  ;;  %vm1573_vm8 = vweird.f32 %v4532_v61  ;;  %v1199_v50 = vsub.f32 1.5, %v1198_v0 }
 0x1a8   : > { %v1325_v21 = vsel %vm4526_vm2, %v1324_v56, %v1320_v19  ;;  %v1191_v2 = vsel %vm1190_vm6, %v4140_v63, %v1189_v29  ;;  %v980_v12 = vmul.f32 %v4279_v32, %v4218_v18  ;;  %v4570_v36 = vmul.f32 %v4286_v27, %v4235_v41 }
 0x1a9   : > { %v1326_v47 = vmul.f32 %v1325_v21, %v5641_v34  ;;  %v1571_v39 = vadd.f32 %v4532_v61, %v1570_v62  ;;  %v4564_v5 = vsel %vm1192_vm7, %v1193_v44, %v1191_v2  ;;  %vm1572_vm9 = vweird.f32 %v4501_v45 }
 0x1aa   : > { %3247 = vrcp.f32 %v4564_v5  ;;  %v1591_v17 = vand.u32 2147483647, %v4542_v20  ;;  %v1200_v60 = vmul.f32 %v4169_v24, %v1199_v50  ;;  %v969_v3 = vmul.f32 %v4214_v33, %v4239_v30  ;;  %vm4580_vm10 = vmor %vm1572_vm9, %vm1573_vm8 }
 0x1ab   : > { %v3246_v42 = vpop.eup %3245  ;;  %v1645_v63 = vpack.c.bf16 %v1326_v47, %v1311_v35  ;;  %vm4584_vm11 = vcmp.eq.f32.partialorder %v1576_v8, 8.507059e+37  ;;  %v1579_v45 = vor.u32 1.1754944e-38, %v1578_v53  ;;  %vm1202_vm12 = vcmp.eq.f32.partialorder %v4093_v15, inf }
 0x1ac   : > { %v1583_v14 = vmul.f32 %v3246_v42, %v4542_v20  ;;  %v1575_v24 = vsel %vm4580_vm10, %v4532_v61, %v1571_v39  ;;  %v1593_v30 = vand.u32 2147483648, %v4542_v20  ;;  %v1201_v7 = vmul.f32 %v1200_v60, %v4093_v15 }
 0x1ad   : > { %1692 = vmatpush.bf16.msra.mxu0 %v1645_v63  ;;  %v970_v48 = vmul.f32 0.5, %v969_v3  ;;  %vm1587_vm13 = vweird.f32 %v4542_v20  ;;  %vm1204_vm14 = vcmp.eq.f32.partialorder %v4093_v15, 0.0  ;;  %v1205_v52 = vand.u32 2147483648, %v4093_v15  ;;  %v5649_v20 = vld [vmem:[#allocation18_spill] sm:$0xff] }
 0x1ae   : > { %v1584_v4 = vsub.f32 1.0, %v1583_v14  ;;  %vm4598_vm15 = vcmp.eq.f32.partialorder %v1591_v17, 8.507059e+37  ;;  %v1203_v59 = vsel %vm1202_vm12, %v4093_v15, %v1201_v7  ;;  %v981_v23 = vmul.f32 %v4279_v32, %v980_v12 }
 0x1af   : > { %v971_v38 = vsub.f32 1.5, %v970_v48  ;;  %v1580_v10 = vsel %vm4584_vm11, %v1579_v45, %v1575_v24  ;;  %vm1588_vm1 = vweird.f32 %v3246_v42  ;;  %v4606_v61 = vsel %vm1204_vm14, %v1205_v52, %v1203_v59 }
 0x1b0   : > { %v3248_v37 = vpop.eup %3247  ;;  %v1585_v46 = vmul.f32 %v3246_v42, %v1584_v4  ;;  %v1594_v54 = vor.u32 1.1754944e-38, %v1593_v30  ;;  %vm1542_vm2 = vweird.f32 %v4564_v5  ;;  %3249 = vrcp.f32 %v4606_v61  ;;  %vm1589_vm3 = vmor %vm1587_vm13, %vm1588_vm1  ;;  %v5654_v4 = vld [vmem:[#allocation21_spill] sm:$0xff] }
 0x1b1   : > { %v1538_v49 = vmul.f32 %v3248_v37, %v4564_v5  ;;  %v1546_v15 = vand.u32 2147483647, %v4564_v5  ;;  %v1548_v43 = vand.u32 2147483648, %v4564_v5  ;;  %v972_v26 = vmul.f32 %v4214_v33, %v971_v38 }
 0x1b2   : > { %v1586_v6 = vadd.f32 %v3246_v42, %v1585_v46  ;;  %v1581_v31 = vmul.f32 %v1580_v10, %v5648_v9  ;;  %v982_v8 = vmul.f32 0.5, %v981_v23  ;;  %v1161_v57 = vmul.f32 %v4224_v22, %v4245_v40  ;;  %v4676_v10 = vld [vmem:[%s5501_s17 + $0x70] sm:$0xff]  ;;  %v5655_v46 = vld [vmem:[#allocation20_spill] sm:$0xff] }
 0x1b3   : > { %v1539_v56 = vsub.f32 1.0, %v1538_v49  ;;  %v973_v28 = vmul.f32 %v972_v26, %v4159_v16  ;;  %vm974_vm4 = vcmp.eq.f32.partialorder %v4159_v16, inf  ;;  %v977_v58 = vand.u32 2147483648, %v4159_v16  ;;  %1887 = vrot.lane.b32.xlu1 %v4676_v10, %s5533_s28  ;;  %v3078_v26 = vld [vmem:[%s5656_s1 + $0x34] sm:$0xf0]  ;;  %s664_s28 = scalar_lea.vmem [#allocation2], %s2928_s22 }
 0x1b4   : > { %v1590_v13 = vsel %vm1589_vm3, %v3246_v42, %v1586_v6  ;;  %v983_v29 = vsub.f32 1.5, %v982_v8  ;;  %v1162_v0 = vmul.f32 0.5, %v1161_v57  ;;  %vm1543_vm5 = vweird.f32 %v3248_v37  ;;  %v2969_v8 = vld [vmem:[%s5656_s1 + $0x38] sm:$0xf0] }
 0x1b5   : > { %v1595_v33 = vsel %vm4598_vm15, %v1594_v54, %v1590_v13  ;;  %v1540_v53 = vmul.f32 %v3248_v37, %v1539_v56  ;;  %v975_v62 = vsel %vm974_vm4, %v4159_v16, %v973_v28  ;;  %vm976_vm6 = vcmp.eq.f32.partialorder %v4159_v16, 0.0  ;;  %vm4638_vm8 = vmor %vm1542_vm2, %vm1543_vm5  ;;  %v3077_v56 = vld [vmem:[%s5656_s1 + $0x34] sm:$0xf]  ;;  %v1658_v28 = vld [vmem:[%s5657_s4 + $0x8] sm:$0xff] }
 0x1b6   : > { %v1596_v19 = vmul.f32 %v1595_v33, %v5649_v20  ;;  %v3250_v40 = vpop.eup %3249  ;;  %v4627_v1 = vsel %vm976_vm6, %v977_v58, %v975_v62  ;;  %v984_v35 = vmul.f32 %v4279_v32, %v983_v29  ;;  %v1163_v21 = vsub.f32 1.5, %v1162_v0  ;;  %v1657_v58 = vld [vmem:[%s5657_s4] sm:$0xff]  ;;  %v4799_v20 = vld [vmem:[%s5501_s17 + $0x58] sm:$0xff]  ;;  %s3099_s4 = sshll.u32 %s3488_s3, 4 }
 0x1b7   : > { %v1541_v44 = vadd.f32 %v3248_v37, %v1540_v53  ;;  %vm4630_vm7 = vcmp.eq.f32.partialorder %v1546_v15, 8.507059e+37  ;;  %v1553_v47 = vmul.f32 %v3250_v40, %v4606_v61  ;;  %3251 = vrcp.f32 %v4627_v1  ;;  %s2846_s21 = scalar_lea.hbm %s5671_s23, %s3099_s4 }
 0x1b8   : > { %v1654_v2 = vpack.c.bf16 %v1596_v19, %v1581_v31  ;;  %v1549_v39 = vor.u32 1.1754944e-38, %v1548_v43  ;;  %v985_v50 = vmul.f32 %v984_v35, %v4218_v18  ;;  %vm986_vm9 = vcmp.eq.f32.partialorder %v4218_v18, inf  ;;  %v2967_v43 = vld [vmem:[%s5656_s1 + $0x30] sm:$0xf]  ;;  %s2849_s27 = sshll.u32 %s2846_s21, 4  ;;  %s2850_s27 = int_to_ptr.hbm [resolvable:$true] %s2849_s27 }
 0x1b9   : > { %vm988_vm10 = vcmp.eq.f32.partialorder %v4218_v18, 0.0  ;;  %v1545_v32 = vsel %vm4638_vm8, %v3248_v37, %v1541_v44  ;;  %v1554_v12 = vsub.f32 1.0, %v1553_v47  ;;  %v989_v42 = vand.u32 2147483648, %v4218_v18  ;;  %s3301_s2 = sshra.s32 %s2850_s27, 4  ;;  %s3302_s2 = int_to_ptr.hbm [resolvable:$true] %s3301_s2 }
 0x1ba   : > { %1705 = vmatpush.bf16.msra.mxu1 %v1654_v2  ;;  %v1164_v5 = vmul.f32 %v4224_v22, %v1163_v21  ;;  %v1561_v63 = vand.u32 2147483647, %v4606_v61  ;;  %v1563_v17 = vand.u32 2147483648, %v4606_v61  ;;  %v987_v60 = vsel %vm986_vm9, %v4218_v18, %v985_v50  ;;  %p3308_p0 = scmp.lt.s32.totalorder %s3302_s2, %s5671_s23 }
 0x1bb   : > { %v1173_v3 = vmul.f32 %v4286_v27, %v4570_v36  ;;  %v1555_v25 = vmul.f32 %v3250_v40, %v1554_v12  ;;  %vm1558_vm11 = vweird.f32 %v3250_v40  ;;  %v4654_v51 = vsel %vm988_vm10, %v989_v42, %v987_v60  ;;  %v5660_v42 = vld [vmem:[#allocation22_spill] sm:$0xff]  ;;  %v2934_v60 = vld [vmem:[%s5662_s29] sm:$0xf] }
 0x1bc   : > { %v1165_v45 = vmul.f32 %v1164_v5, %v4162_v55  ;;  %v1550_v14 = vsel %vm4630_vm7, %v1549_v39, %v1545_v32  ;;  %vm1557_vm12 = vweird.f32 %v4606_v61  ;;  %3253 = vrcp.f32 %v4654_v51 }
 0x1bd   : > { %vm1166_vm13 = vcmp.eq.f32.partialorder %v4162_v55, inf  ;;  %v4662_v22 = vpop.eup %3251  ;;  %v1556_v18 = vadd.f32 %v3250_v40, %v1555_v25  ;;  %v1169_v24 = vand.u32 2147483648, %v4162_v55  ;;  %v1174_v30 = vmul.f32 0.5, %v1173_v3  ;;  %vm1559_vm14 = vmor %vm1557_vm12, %vm1558_vm11  ;;  %v3070_v3 = vld [vmem:[%s5662_s29 + $0x4] sm:$0xf0] }
 0x1be   : > { %v1167_v36 = vsel %vm1166_vm13, %v4162_v55, %v1165_v45  ;;  %vm1562_vm15 = vcmp.eq.f32.partialorder %v1561_v63, 8.507059e+37  ;;  %v1564_v7 = vor.u32 1.1754944e-38, %v1563_v17  ;;  %v1268_v48 = vmul.f32 %v4662_v22, %v4627_v1  ;;  %v5661_v63 = vld [vmem:[#allocation24_spill] sm:$0xff] }
 0x1bf   : > { %vm1168_vm1 = vcmp.eq.f32.partialorder %v4162_v55, 0.0  ;;  %v1551_v52 = vmul.f32 %v1550_v14, %v5654_v4  ;;  %v1560_v11 = vsel %vm1559_vm14, %v3250_v40, %v1556_v18  ;;  %v1175_v38 = vsub.f32 1.5, %v1174_v30 }
 0x1c0   : > { %v4670_v59 = vsel %vm1168_vm1, %v1169_v24, %v1167_v36  ;;  %v1565_v23 = vsel %vm1562_vm15, %v1564_v7, %v1560_v11  ;;  %v1269_v37 = vsub.f32 1.0, %v1268_v48  ;;  %v1276_v54 = vand.u32 2147483647, %v4627_v1 }
 0x1c1   : > { %3255 = vrcp.f32 %v4670_v59  ;;  %v1566_v61 = vmul.f32 %v1565_v23, %v5655_v46  ;;  %v1176_v55 = vmul.f32 %v4286_v27, %v1175_v38  ;;  %vm1272_vm2 = vweird.f32 %v4627_v1 }
 0x1c2   : > { %v3254_v49 = vpop.eup %3253  ;;  %v1270_v6 = vmul.f32 %v4662_v22, %v1269_v37  ;;  %v1278_v15 = vand.u32 2147483648, %v4627_v1  ;;  %vm1273_vm3 = vweird.f32 %v4662_v22  ;;  %vm1178_vm4 = vcmp.eq.f32.partialorder %v4235_v41, inf }
 0x1c3   : > { %v1653_v27 = vpack.c.bf16 %v1566_v61, %v1551_v52  ;;  %v1283_v9 = vmul.f32 %v3254_v49, %v4654_v51  ;;  %v1177_v31 = vmul.f32 %v1176_v55, %v4235_v41  ;;  %vm1180_vm5 = vcmp.eq.f32.partialorder %v4235_v41, 0.0  ;;  %vm4718_vm6 = vmor %vm1272_vm2, %vm1273_vm3  ;;  %v5663_v61 = vld [vmem:[#allocation23_spill] sm:$0xff] }
 0x1c4   : > { %v1271_v57 = vadd.f32 %v4662_v22, %v1270_v6  ;;  %v1181_v13 = vand.u32 2147483648, %v4235_v41  ;;  %v4712_v29 = vor.u32 %v3078_v26, %v2967_v43  ;;  %v1291_v19 = vand.u32 2147483647, %v4654_v51  ;;  %v2936_v6 = vld [vmem:[%s5662_s29 + $0x8] sm:$0xf0] }
 0x1c5   : > { %1706 = vmatpush.bf16.msra.mxu1 %v1653_v27  ;;  %v1284_v33 = vsub.f32 1.0, %v1283_v9  ;;  %v1179_v53 = vsel %vm1178_vm4, %v4235_v41, %v1177_v31  ;;  %v1293_v62 = vand.u32 2147483648, %v4654_v51  ;;  %v3354_v44 = vmov 0   ;;  %v4755_v26 = vld [vmem:[%s5501_s17 + $0x68] sm:$0xff]  ;;  %v2959_v27 = vld [vmem:[%s5656_s1 + $0x20] sm:$0xf] }
 0x1c6   : > { %v1182_v40 = vsel %vm1180_vm5, %v1181_v13, %v1179_v53  ;;  %3147 = vset.pattern.permute.xlu0 %v3354_v44  ;;  %3146 = vset.pattern.permute.xlu2 %v3354_v44  ;;  %v4724_v41 = vor.u32 %v3077_v56, %v2969_v8  ;;  %v1275_v35 = vsel %vm4718_vm6, %v4662_v22, %v1271_v57  ;;  %vm1288_vm7 = vweird.f32 %v3254_v49  ;;  %v3076_v9 = vld [vmem:[%s5656_s1 + $0x24] sm:$0xf0]  ;;  %v3075_v56 = vld [vmem:[%s5656_s1 + $0x24] sm:$0xf]  ;;  %v2961_v8 = vld [vmem:[%s5656_s1 + $0x28] sm:$0xf0] }
 0x1c7   : > { %v3256_v0 = vpop.eup %3255  ;;  %v1285_v21 = vmul.f32 %v3254_v49, %v1284_v33  ;;  %1666 = vperm.xlu0 %3147, %v1658_v28   ;;  %1661 = vperm.xlu2 %3146, %v1657_v58   ;;  %v1279_v2 = vor.u32 1.1754944e-38, %v1278_v15  ;;  %3257 = vrcp.f32 %v1182_v40  ;;  %vm1277_vm8 = vcmp.eq.f32.partialorder %v1276_v54, 8.507059e+37  ;;  %v5664_v54 = vld [vmem:[#allocation25_spill] sm:$0xff]  ;;  %v3074_v28 = vld [vmem:[%s5656_s1 + $0x14] sm:$0xf0] }
 0x1c8   : > { %v1508_v1 = vmul.f32 %v3256_v0, %v4670_v59  ;;  %1819 = vmatpush.bf16.msra.mxu2 %v4712_v29  ;;  %1833 = vmatpush.bf16.msra.mxu3 %v4724_v41  ;;  %vm1287_vm9 = vweird.f32 %v4654_v51  ;;  %v1294_v39 = vor.u32 1.1754944e-38, %v1293_v62  ;;  %vm1292_vm11 = vcmp.eq.f32.partialorder %v1291_v19, 8.507059e+37  ;;  %v2951_v13 = vld [vmem:[%s5656_s1 + $0x10] sm:$0xf]  ;;  %v3073_v58 = vld [vmem:[%s5656_s1 + $0x14] sm:$0xf] }
 0x1c9   : > { %v1286_v34 = vadd.f32 %v3254_v49, %v1285_v21  ;;  %v1280_v16 = vsel %vm1277_vm8, %v1279_v2, %v1275_v35  ;;  %vm1289_vm10 = vmor %vm1287_vm9, %vm1288_vm7  ;;  %vm1513_vm12 = vweird.f32 %v3256_v0  ;;  %v1518_v22 = vand.u32 2147483648, %v4670_v59  ;;  %1885 = vrot.lane.b32.xlu1 %v4755_v26, %s5665_s24  ;;  %v2953_v53 = vld [vmem:[%s5656_s1 + $0x18] sm:$0xf0]  ;;  %v2943_v62 = vld [vmem:[%s5656_s1] sm:$0xf] }
 0x1ca   : > { %v1509_v47 = vsub.f32 1.0, %v1508_v1  ;;  %v1281_v5 = vmul.f32 %v1280_v16, %v5660_v42  ;;  %v2935_v18 = vor.u32 %v3070_v3, %v2934_v60  ;;  %vm1512_vm13 = vweird.f32 %v4670_v59  ;;  %v3071_v35 = vld [vmem:[%s5656_s1 + $0x4] sm:$0xf]  ;;  %v2945_v21 = vld [vmem:[%s5656_s1 + $0x8] sm:$0xf0]  ;;  %v4851_v16 = vld [vmem:[%s5501_s17 + $0x38] sm:$0xff] }
 0x1cb   : > { %v1290_v50 = vsel %vm1289_vm10, %v3254_v49, %v1286_v34  ;;  %v1516_v36 = vand.u32 2147483647, %v4670_v59  ;;  %vm1514_vm14 = vmor %vm1512_vm13, %vm1513_vm12  ;;  %v1533_v30 = vand.u32 2147483648, %v1182_v40  ;;  %v1531_v4 = vand.u32 2147483647, %v1182_v40  ;;  %v4828_v2 = vld [vmem:[%s5501_s17 + $0x40] sm:$0xff] }
 0x1cc   : > { %v1510_v32 = vmul.f32 %v3256_v0, %v1509_v47  ;;  %v1295_v12 = vsel %vm1292_vm11, %v1294_v39, %v1290_v50  ;;  %v1519_v52 = vor.u32 1.1754944e-38, %v1518_v22  ;;  %vm1527_vm2 = vweird.f32 %v1182_v40  ;;  %v3069_v49 = vld [vmem:[%s5662_s29 + $0x4] sm:$0xf]  ;;  %v4839_v47 = vld [vmem:[%s5501_s17 + $0x30] sm:$0xff]  ;;  %v4861_v50 = vld [vmem:[%s5501_s17 + $0x28] sm:$0xff]  ;;  %s5666_s29 = sld [smem:[#allocation36_spill]] }
 0x1cd   : > { %v1296_v17 = vmul.f32 %v1295_v12, %v5661_v63  ;;  %v3258_v25 = vpop.eup %3257  ;;  %vm1517_vm1 = vcmp.eq.f32.partialorder %v1516_v36, 8.507059e+37  ;;  %v1534_v23 = vor.u32 1.1754944e-38, %v1533_v30  ;;  %vm1532_vm4 = vcmp.eq.f32.partialorder %v1531_v4, 8.507059e+37  ;;  %v4834_v34 = vld [vmem:[%s5501_s17 + $0x60] sm:$0xff]  ;;  %v4856_v39 = vld [vmem:[%s5501_s17 + $0x50] sm:$0xff]  ;;  %v4872_v12 = vld [vmem:[%s5501_s17 + $0x48] sm:$0xff] }
 0x1ce   : > { %v1511_v45 = vadd.f32 %v3256_v0, %v1510_v32  ;;  %v1523_v14 = vmul.f32 %v3258_v25, %v1182_v40  ;;  %vm1528_vm15 = vweird.f32 %v3258_v25  ;;  %v2939_v43 = vor.u32 %v3069_v49, %v2936_v6  ;;  %v3072_v40 = vld [vmem:[%s5656_s1 + $0x4] sm:$0xf0]  ;;  %v4877_v42 = vld [vmem:[%s5501_s17 + $0x18] sm:$0xff]  ;;  %v4915_v30 = vld [vmem:[%s5501_s17] sm:$0xff]  ;;  %s3303_s1 = scalar_lea.hbm %s3302_s2, 16 }
 0x1cf   : > { %v1644_v51 = vpack.c.bf16 %v1296_v17, %v1281_v5  ;;  %vm1529_vm3 = vmor %vm1527_vm2, %vm1528_vm15  ;;  %vm1678_vm5 = vcmask 556032   ;;  %v4765_v31 = vor.u32 %v3076_v9, %v2959_v27  ;;  %v4773_v57 = vor.u32 %v3075_v56, %v2961_v8  ;;  %1875 = vrot.lane.b32.xlu0 %v4828_v2, %s5665_s24  ;;  %p3304_p11 = scmp.ne.s32.totalorder %s3302_s2, %s3303_s1 }
 0x1d0   : > { %v1524_v24 = vsub.f32 1.0, %v1523_v14  ;;  %v1515_v7 = vsel %vm1514_vm14, %v3256_v0, %v1511_v45  ;;  %v4786_v33 = vor.u32 %v3074_v28, %v2951_v13  ;;  %v4794_v0 = vld [vmem:[%s5501_s17 + $0x78] sm:$0xff]  ;;  %v4801_v19 = vor.u32 %v3073_v58, %v2953_v53  ;;  %v4891_v45 = vld [vmem:[%s5501_s17 + $0x8] sm:$0xff] }
 0x1d1   : > { %1693 = vmatpush.bf16.msra.mxu0 %v1644_v51  ;;  %v1520_v38 = vsel %vm1517_vm1, %v1519_v52, %v1515_v7  ;;  %1820 = vmatpush.bf16.msra.mxu2 %v4765_v31  ;;  %v4814_v44 = vor.u32 %v3072_v40, %v2943_v62  ;;  %v4823_v1 = vor.u32 %v3071_v35, %v2945_v21  ;;  %v4886_v51 = vld [vmem:[%s5501_s17 + $0x20] sm:$0xff]  ;;  %p3305_p12 = pnand %p3304_p11, %p3505_p5 }
 0x1d2   : > { %v1525_v48 = vmul.f32 %v3258_v25, %v1524_v24  ;;  %v1521_v59 = vmul.f32 %v1520_v38, %v5663_v61  ;;  %1834 = vmatpush.bf16.msra.mxu3 %v4773_v57  ;;  %1889 = vrot.lane.b32.xlu2 %v4794_v0, %s5665_s24  ;;  %v4908_v24 = vld [vmem:[%s5501_s17 + $0x10] sm:$0xff] }
 0x1d3   : > { %1881 = vrot.lane.b32.xlu1 %v4799_v20, %s5665_s24  ;;  %p3306_p13 = pneg %p3305_p12 }
 0x1d4   : > { %1694 = vmatmul.bf16.vlgmr.msra.gmra.mxu0 %v2935_v18  ;;  %v1526_v11 = vadd.f32 %v3258_v25, %v1525_v48 }
 0x1d5   : > { %1821 = vmatpush.bf16.msra.mxu2 %v4786_v33 }
 0x1d6   : > { %v1530_v37 = vsel %vm1529_vm3, %v3258_v25, %v1526_v11  ;;  %1835 = vmatpush.bf16.msra.mxu3 %v4801_v19 }
 0x1d7   : > { %v1535_v46 = vsel %vm1532_vm4, %v1534_v23, %v1530_v37  ;;  %1873 = vrot.lane.b32.xlu0 %v4851_v16, %s5665_s24 }
 0x1d8   : > { %v1536_v55 = vmul.f32 %v1535_v46, %v5664_v54  ;;  %v1722_v54 = vld [vmem:[%s5666_s29] sm:$0x3]  ;;  %s2835_s29 = scalar_lea.sflag [#allocation3], %s662_s26 }
 0x1d9   : > { %1822 = vmatpush.bf16.msra.mxu2 %v4814_v44  ;;  %v4930_v6 = vperm.slane %v1722_v54, 0 }
 0x1da   : > { %v1652_v15 = vpack.c.bf16 %v1536_v55, %v1521_v59  ;;  %1836 = vmatpush.bf16.msra.mxu3 %v4823_v1  ;;  %1883 = vrot.lane.b32.xlu2 %v4834_v34, %s5665_s24 }
 0x1db   : > { %1871 = vrot.lane.b32.xlu1 %v4839_v47, %s5665_s24 }
 0x1dc   : > { %1707 = vmatpush.bf16.msra.mxu1 %v1652_v15  ;;  %v4932_v15 = vperm.slane %v1722_v54, 1 }
 0x1df   : > { %2940 = vmatmul.msk.bf16.vlgmr.msra.gmra.mxu1 %vm1678_vm5, %v2939_v43 }
 0x1e2   : > { %1879 = vrot.lane.b32.xlu2 %v4856_v39, %s5665_s24 }
 0x1e3   : > { %1869 = vrot.lane.b32.xlu1 %v4861_v50, %s5665_s24 }
 0x1ea   : > { %1877 = vrot.lane.b32.xlu2 %v4872_v12, %s5665_s24 }
 0x1eb   : > { %1865 = vrot.lane.b32.xlu1 %v4877_v42, %s5665_s24 }
 0x1f2   : > { %1867 = vrot.lane.b32.xlu2 %v4886_v51, %s5665_s24 }
 0x1f3   : > { %1861 = vrot.lane.b32.xlu1 %v4891_v45, %s5665_s24 }
 0x1fa   : > { %1863 = vrot.lane.b32.xlu2 %v4908_v24, %s5665_s24 }
 0x202   : > { %1859 = vrot.lane.b32.xlu2 %v4915_v30, %s5665_s24 }
 0x221   : > { %v1662_v63 = vpop.permute.xlu2 %1661 }
 0x225   : > { %v1888_v7 = vpop.permute.xlu1 %1887 }
 0x22c   : > { %v1890_v48 = vpop.permute.xlu2 %1889 }
 0x234   : > { %v1884_v52 = vpop.permute.xlu2 %1883 }
 0x239   : > { %v1667_v60 = vpop.permute.xlu0 %1666 }
 0x23b   : > { %v1886_v4 = vpop.permute.xlu1 %1885 }
 0x23c   : > { %v4921_v38 = vpop.permute.xlu2 %1879 }
 0x241   : > { %v1876_v59 = vpop.permute.xlu0 %1875 }
 0x244   : > { %v1878_v37 = vpop.permute.xlu2 %1877 }
 0x245   : > { %v4919_v11 = vpop.permute.xlu1 %1881 }
 0x249   : > { %v1874_v8 = vpop.permute.xlu0 %1873 }
 0x24c   : > { %v4925_v61 = vpop.permute.xlu2 %1867 }
 0x24d   : > { %v1872_v23 = vpop.permute.xlu1 %1871 }
 0x251   : > { %v1695_v32 = vpop.f32.mrf.mxu0 }
 0x252   : > { %v1696_v3 = vadd.f32 %v1695_v32, %v1662_v63 }
 0x254   : > { %v1864_v56 = vpop.permute.xlu2 %1863 }
 0x255   : > { %v4923_v46 = vpop.permute.xlu1 %1869 }
 0x259   : > { %v1697_v17 = vpop.f32.mrf.mxu0 }
 0x25a   : > { %v1698_v25 = vadd.f32 %v1697_v17, %v1667_v60 }
 0x25c   : > { %v1709_v5 = vpop.f32.mrf.mxu1 }
 0x25d   : > { %v4893_v22 = vadd.f32 %v1709_v5, %v1696_v3  ;;  %v1866_v43 = vpop.permute.xlu1 %1865 }
 0x264   : > { %v1711_v14 = vpop.f32.mrf.mxu1 }
 0x265   : > { %v4895_v18 = vadd.f32 %v1711_v14, %v1698_v25 }
 0x267   : > { %v1766_v36 = vpack.c.bf16 %v4895_v18, %v4893_v22 }
 0x269   : > { %2973 = vmatmul.msk.bf16.vlgmr.msra.gmra.mxu2 %vm701_vm0, %v1766_v36  ;;  %2974 = vmatmul.msk.bf16.vlgmr.msra.gmra.mxu3 %vm701_vm0, %v1766_v36  ;;  %v1862_v36 = vpop.permute.xlu1 %1861 }
 0x2ec   : > { %v1824_v55 = vpop.f32.mrf.mxu2  ;;  %v1838_v49 = vpop.f32.mrf.mxu3 }
 0x2ed   : > { %v4935_v27 = vadd.f32 %v1824_v55, %v4930_v6  ;;  %v4938_v9 = vadd.f32 %v1838_v49, %v4932_v15 }
 0x2ef   : > { %v1913_v62 = vmul.f32 %v1872_v23, %v4935_v27  ;;  %v1945_v40 = vmul.f32 %v4938_v9, %v4676_v10  ;;  %v1921_v32 = vmul.f32 %v1888_v7, %v4935_v27  ;;  %v1915_v63 = vmul.f32 %v1876_v59, %v4935_v27  ;;  %v1860_v7 = vpop.permute.xlu2 %1859 }
 0x2f0   : > { %v1941_v54 = vmul.f32 %v4938_v9, %v4856_v39  ;;  %v1907_v49 = vmul.f32 %v1860_v7, %v4935_v27  ;;  %v1939_v39 = vmul.f32 %v4938_v9, %v4828_v2  ;;  %v1764_v7 = vld [vmem:[%s5502_s18 + $0x70] sm:$0xff] }
 0x2f4   : > { %v1826_v13 = vpop.f32.mrf.mxu2  ;;  %v1840_v28 = vpop.f32.mrf.mxu3 }
 0x2f5   : > { %v4941_v58 = vadd.f32 %v1826_v13, %v4930_v6  ;;  %v4944_v53 = vadd.f32 %v1840_v28, %v4932_v15 }
 0x2f7   : > { %v1914_v35 = vmul.f32 %v1874_v8, %v4941_v58  ;;  %v1946_v21 = vmul.f32 %v4944_v53, %v4794_v0  ;;  %v1922_v5 = vmul.f32 %v1890_v48, %v4941_v58  ;;  %v1916_v17 = vmul.f32 %v1878_v37, %v4941_v58 }
 0x2f8   : > { %v1944_v14 = vmul.f32 %v4944_v53, %v4755_v26  ;;  %v1943_v0 = vmul.f32 %v4938_v9, %v4834_v34  ;;  %v1942_v23 = vmul.f32 %v4944_v53, %v4799_v20  ;;  %v1920_v37 = vmul.f32 %v1886_v4, %v4941_v58 }
 0x2f9   : > { %v1926_v60 = vpack.c.bf16 %v1914_v35, %v1913_v62  ;;  %v1954_v3 = vpack.c.bf16 %v1946_v21, %v1945_v40  ;;  %v1930_v25 = vpack.c.bf16 %v1922_v5, %v1921_v32  ;;  %v1927_v10 = vpack.c.bf16 %v1916_v17, %v1915_v63 }
 0x2fa   : > { %v1953_v48 = vpack.c.bf16 %v1944_v14, %v1943_v0  ;;  %v1908_v26 = vmul.f32 %v1862_v36, %v4941_v58  ;;  %v1910_v59 = vmul.f32 %v1866_v43, %v4941_v58  ;;  %v1919_v34 = vmul.f32 %v1884_v52, %v4935_v27  ;;  %v1765_v0 = vld [vmem:[%s5502_s18 + $0x78] sm:$0xff] }
 0x2fb   : > { %2061 = vmatpush.bf16.msrb.mxu1 %v1954_v3  ;;  %1978 = vrot.lane.b32.xlu0 %v1930_v25, %s5665_s24  ;;  %v1955_v55 = vpack.c.bf16 %v4941_v58, %v4935_v27  ;;  %v1909_v8 = vmul.f32 %v1864_v56, %v4935_v27  ;;  %v1952_v20 = vpack.c.bf16 %v1942_v23, %v1941_v54  ;;  %v1760_v23 = vld [vmem:[%s5502_s18 + $0x50] sm:$0xff] }
 0x2fc   : > { %1972 = vrot.lane.b32.xlu2 %v1927_v10, %s5665_s24  ;;  %1970 = vrot.lane.b32.xlu1 %v1926_v60, %s5665_s24  ;;  %v1929_v13 = vpack.c.bf16 %v1920_v37, %v1919_v34  ;;  %v1940_v4 = vmul.f32 %v4944_v53, %v4872_v12  ;;  %v1923_v28 = vpack.c.bf16 %v1908_v26, %v1907_v49  ;;  %v1759_v37 = vld [vmem:[%s5502_s18 + $0x48] sm:$0xff]  ;;  %v1758_v26 = vld [vmem:[%s5502_s18 + $0x40] sm:$0xff] }
 0x2fd   : > { %v1924_v43 = vpack.c.bf16 %v1910_v59, %v1909_v8  ;;  %v1938_v56 = vmul.f32 %v4944_v53, %v4851_v16  ;;  %v1918_v62 = vmul.f32 %v4919_v11, %v4941_v58  ;;  %v1937_v12 = vmul.f32 %v4938_v9, %v4839_v47  ;;  %2033 = vmatpush.msrb.mxu3 %v1765_v0  ;;  %v1757_v59 = vld [vmem:[%s5502_s18 + $0x38] sm:$0xff]  ;;  %v1756_v54 = vld [vmem:[%s5502_s18 + $0x30] sm:$0xff]  ;;  %v5669_v0 = vld [vmem:[#allocation11_spill] sm:$0xff] }
 0x2fe   : > { %v1951_v52 = vpack.c.bf16 %v1940_v4, %v1939_v39  ;;  %v1917_v40 = vmul.f32 %v4921_v38, %v4935_v27  ;;  %v1936_v21 = vmul.f32 %v4944_v53, %v4861_v50  ;;  %v1935_v16 = vmul.f32 %v4938_v9, %v4886_v51  ;;  %v1753_v4 = vld [vmem:[%s5502_s18 + $0x18] sm:$0xff]  ;;  %v1750_v39 = vld [vmem:[%s5502_s18] sm:$0xff] }
 0x2ff   : > { %2062 = vmatpush.bf16.msrb.mxu1 %v1953_v48  ;;  %v1950_v35 = vpack.c.bf16 %v1938_v56, %v1937_v12  ;;  %v1934_v47 = vmul.f32 %v4944_v53, %v4877_v42  ;;  %v1912_v38 = vmul.f32 %v4923_v46, %v4941_v58  ;;  %v1933_v50 = vmul.f32 %v4938_v9, %v4908_v24  ;;  %v1763_v48 = vld [vmem:[%s5502_s18 + $0x68] sm:$0xff]  ;;  %v1761_v58 = vld [vmem:[%s5502_s18 + $0x58] sm:$0xff] }
 0x300   : > { %v1928_v2 = vpack.c.bf16 %v1918_v62, %v1917_v40  ;;  %v1949_v11 = vpack.c.bf16 %v1936_v21, %v1935_v16  ;;  %v1911_v32 = vmul.f32 %v4925_v61, %v4935_v27  ;;  %v1932_v51 = vmul.f32 %v4944_v53, %v4891_v45  ;;  %2034 = vmatpush.msrb.mxu3 %v1764_v7  ;;  %v1762_v27 = vld [vmem:[%s5502_s18 + $0x60] sm:$0xff]  ;;  %v3082_v16 = vld [vmem:[%s5667_s6 + $0x18] sm:$0xff] }
 0x301   : > { %v1948_v5 = vpack.c.bf16 %v1934_v47, %v1933_v50  ;;  %v1931_v42 = vmul.f32 %v4938_v9, %v4915_v30  ;;  %2110 = vmatpush.bf16.msrb.mxu0 %v3082_v16 }
 0x302   : > { %v1925_v63 = vpack.c.bf16 %v1912_v38, %v1911_v32  ;;  %2035 = vmatpush.msrb.mxu3 %v1763_v48 }
 0x303   : > { %2063 = vmatpush.bf16.msrb.mxu1 %v1952_v20  ;;  %1976 = vrot.lane.b32.xlu0 %v1929_v13, %s5665_s24  ;;  %v1947_v46 = vpack.c.bf16 %v1932_v51, %v1931_v42  ;;  %v1755_v20 = vld [vmem:[%s5502_s18 + $0x28] sm:$0xff]  ;;  %v1754_v13 = vld [vmem:[%s5502_s18 + $0x20] sm:$0xff] }
 0x304   : > { %1966 = vrot.lane.b32.xlu2 %v1924_v43, %s5665_s24  ;;  %1964 = vrot.lane.b32.xlu1 %v1923_v28, %s5665_s24  ;;  %v1752_v28 = vld [vmem:[%s5502_s18 + $0x10] sm:$0xff]  ;;  %v1751_v43 = vld [vmem:[%s5502_s18 + $0x8] sm:$0xff] }
 0x305   : > { %2036 = vmatpush.msrb.mxu3 %v1762_v27  ;;  %v3080_v42 = vld [vmem:[%s5667_s6 + $0x8] sm:$0xff]  ;;  %v2176_v27 = vld [vmem:[%s674_s0] sm:$0xff] }
 0x307   : > { %2064 = vmatpush.bf16.msrb.mxu1 %v1951_v52  ;;  %2037 = vmatpush.msrb.mxu3 %v1761_v58  ;;  %v2177_v58 = vld [vmem:[%s674_s0 + $0x8] sm:$0xff] }
 0x309   : > { %2038 = vmatpush.msrb.mxu3 %v1760_v23 }
 0x30b   : > { %2065 = vmatpush.bf16.msrb.mxu1 %v1950_v35  ;;  %1974 = vrot.lane.b32.xlu0 %v1928_v2, %s5665_s24 }
 0x30c   : > { %2241 = vrot.lane.b32.xlu1 %v4712_v29, %s5665_s24  ;;  %2039 = vmatpush.msrb.mxu3 %v1759_v37 }
 0x30e   : > { %2040 = vmatpush.msrb.mxu3 %v1758_v26 }
 0x30f   : > { %2066 = vmatpush.bf16.msrb.mxu1 %v1949_v11  ;;  %v3081_v11 = vld [vmem:[%s5667_s6 + $0x10] sm:$0xff] }
 0x310   : > { %2041 = vmatpush.msrb.mxu3 %v1757_v59  ;;  %2111 = vmatpush.bf16.msrb.mxu0 %v3081_v11 }
 0x312   : > { %2042 = vmatpush.msrb.mxu3 %v1756_v54 }
 0x313   : > { %2067 = vmatpush.bf16.msrb.mxu1 %v1948_v5  ;;  %1968 = vrot.lane.b32.xlu0 %v1925_v63, %s5665_s24 }
 0x314   : > { %2243 = vrot.lane.b32.xlu1 %v4724_v41, %s5665_s24  ;;  %2043 = vmatpush.msrb.mxu3 %v1755_v20  ;;  %v2192_v20 = vld [vmem:[%s5503_s19 + $0x70] sm:$0xff] }
 0x315   : > { %2112 = vmatpush.bf16.msrb.mxu0 %v3080_v42 }
 0x316   : > { %2044 = vmatpush.msrb.mxu3 %v1754_v13  ;;  %v2191_v13 = vld [vmem:[%s5503_s19 + $0x68] sm:$0xff] }
 0x317   : > { %2068 = vmatpush.bf16.msrb.mxu1 %v1947_v46  ;;  %v3079_v46 = vld [vmem:[%s5667_s6] sm:$0xff]  ;;  %s3307_s6 = scalar_lea.hbm %s5671_s23, 32 }
 0x318   : > { %2045 = vmatpush.msrb.mxu3 %v1753_v4  ;;  %v5144_v4 = vld [vmem:[%s5503_s19 + $0x50] sm:$0xff]  ;;  %p3309_p1 = scmp.lt.s32.totalorder %s3307_s6, %s3303_s1 }
 0x319   : > { %2113 = vmatpush.bf16.msrb.mxu0 %v3079_v46 }
 0x31a   : > { %2046 = vmatpush.msrb.mxu3 %v1752_v28  ;;  %v5151_v28 = vld [vmem:[%s5503_s19 + $0x40] sm:$0xff]  ;;  %p3310_p2 = por %p3309_p1, %p3308_p0 }
 0x31c   : > { %2237 = vrot.lane.b32.xlu1 %v4765_v31, %s5665_s24  ;;  %2047 = vmatpush.msrb.mxu3 %v1751_v43  ;;  %v5158_v43 = vld [vmem:[%s5503_s19 + $0x38] sm:$0xff]  ;;  %p3311_p3 = pnand %p3310_p2, %p3306_p13 }
 0x31d   : > { %2218 = vmatpush.bf16.msra.mxu0 %v4712_v29 }
 0x31e   : > { %2048 = vmatpush.msrb.mxu3 %v1750_v39  ;;  %v5165_v39 = vld [vmem:[%s5503_s19 + $0x10] sm:$0xff] }
 0x321   : > { %2219 = vmatpush.bf16.msra.mxu0 %v4765_v31 }
 0x324   : > { %2239 = vrot.lane.b32.xlu1 %v4773_v57, %s5665_s24 }
 0x325   : > { %2220 = vmatpush.bf16.msra.mxu0 %v4786_v33 }
 0x329   : > { %2221 = vmatpush.bf16.msra.mxu0 %v4814_v44 }
 0x32c   : > { %2233 = vrot.lane.b32.xlu1 %v4786_v33, %s5665_s24 }
 0x334   : > { %2235 = vrot.lane.b32.xlu1 %v4801_v19, %s5665_s24 }
 0x33c   : > { %2229 = vrot.lane.b32.xlu1 %v4814_v44, %s5665_s24 }
 0x356   : > { %v1973_v9 = vpop.permute.xlu2 %1972 }
 0x357   : > { %v1996_v53 = vsel %vm701_vm0, %v1973_v9, 0 }
 0x35e   : > { %v1967_v25 = vpop.permute.xlu2 %1966 }
 0x35f   : > { %v1987_v14 = vsel %vm701_vm0, %v1967_v25, 0 }
 0x36d   : > { %v1979_v45 = vpop.permute.xlu0 %1978 }
 0x36e   : > { %v2005_v41 = vsel %vm701_vm0, %v1979_v45, 0  ;;  %v1971_v19 = vpop.permute.xlu1 %1970 }
 0x36f   : > { %2007 = vmatpush.bf16.xpose.msrb.mxu2 %v2005_v41  ;;  %v1993_v17 = vsel %vm701_vm0, %v1971_v19, 0 }
 0x375   : > { %v1977_v24 = vpop.permute.xlu0 %1976 }
 0x376   : > { %v2002_v30 = vsel %vm701_vm0, %v1977_v24, 0  ;;  %v1965_v10 = vpop.permute.xlu1 %1964 }
 0x377   : > { %2008 = vmatpush.bf16.xpose.msrb.mxu2 %v2002_v30  ;;  %v1984_v36 = vsel %vm701_vm0, %v1965_v10, 0  ;;  %v5102_v30 = vld [vmem:[%s5668_s7] ss:$0 sm:$0xff] }
 0x37d   : > { %v1975_v61 = vpop.permute.xlu0 %1974 }
 0x37e   : > { %v1999_v57 = vsel %vm701_vm0, %v1975_v61, 0  ;;  %v2242_v61 = vpop.permute.xlu1 %2241 }
 0x37f   : > { %2009 = vmatpush.bf16.xpose.msrb.mxu2 %v1999_v57 }
 0x385   : > { %v1969_v60 = vpop.permute.xlu0 %1968 }
 0x386   : > { %v1990_v3 = vsel %vm701_vm0, %v1969_v60, 0  ;;  %v2244_v44 = vpop.permute.xlu1 %2243 }
 0x387   : > { %2010 = vmatpush.bf16.xpose.msrb.mxu2 %v1996_v53  ;;  %v2249_v9 = vsel %vm701_vm0, %v2242_v61, %v2244_v44 }
 0x388   : > { %2267 = vmatpush.bf16.msra.mxu3 %v2249_v9  ;;  %v5190_v9 = vld [vmem:[%s5503_s19 + $0x78] sm:$0xff] }
 0x38f   : > { %2011 = vmatpush.bf16.xpose.msrb.mxu2 %v1993_v17 }
 0x397   : > { %2012 = vmatpush.bf16.xpose.msrb.mxu2 %v1990_v3 }
 0x39f   : > { %2013 = vmatpush.bf16.xpose.msrb.mxu2 %v1987_v14 }
 0x3a7   : > { %2014 = vmatpush.bf16.xpose.msrb.mxu2 %v1984_v36 }
 0x3ae   : > { %2975 = vmatmul.msk.bf16.vlgmr.msrb.gmra.mxu2 %vm701_vm0, %v1955_v55 }
 0x3af   : > { %2525 = vmatpush.bf16.msra.mxu2 %v3082_v16 }
 0x3b3   : > { %2526 = vmatpush.bf16.msra.mxu2 %v3081_v11 }
 0x3b7   : > { %2527 = vmatpush.bf16.msra.mxu2 %v3080_v42 }
 0x3bb   : > { %2528 = vmatpush.bf16.msra.mxu2 %v3079_v46 }
 0x431   : > { %v2016_v34 = vpop.f32.mrf.mxu2 }
 0x432   : > { %v2021_v55 = vmul.f32 0.35355338, %v2016_v34  ;;  %v2228_v34 = vpack.c.bf16 %v2177_v58, %v2176_v27 }
 0x434   : > { %2023 = vmax.xlane.f32.xlu0 %v2021_v55 }
 0x439   : > { %v2018_v49 = vpop.f32.mrf.mxu2 }
 0x43a   : > { %v2022_v8 = vmul.f32 0.35355338, %v2018_v49 }
 0x43c   : > { %2025 = vmax.xlane.f32.xlu2 %v2022_v8 }
 0x4a7   : > { %v2024_v52 = vpop.xlane.xlu0 %2023 }
 0x4a8   : > { %v2027_v56 = vsub.f32 %v2021_v55, %v2024_v52  ;;  %v5172_v52 = vld [vmem:[%s5503_s19 + $0x8] sm:$0xff] }
 0x4aa   : > { %v2029_v62 = vmul.f32 1.442695, %v2027_v56 }
 0x4ac   : > { %3259 = vpow2.f32 %v2029_v62 }
 0x4af   : > { %v2026_v12 = vpop.xlane.xlu2 %2025 }
 0x4b0   : > { %v2028_v40 = vsub.f32 %v2022_v8, %v2026_v12 }
 0x4b2   : > { %v3260_v35 = vpop.eup %3259  ;;  %v2031_v2 = vmul.f32 1.442695, %v2028_v40 }
 0x4b3   : > { %2049 = vmatmul.f32.vlgmr.msrb.gmra.mxu3 %v3260_v35 }
 0x4b4   : > { %3261 = vpow2.f32 %v2031_v2 }
 0x4ba   : > { %v3262_v21 = vpop.eup %3261 }
 0x4bb   : > { %2052 = vmatmul.f32.gmra.mxu3 %v3262_v21 }
 0x536   : > { %v2050_v47 = vpop.f32.mrf.mxu3 }
 0x537   : > { %3263 = vrcp.f32 %v2050_v47 }
 0x53d   : > { %v3264_v50 = vpop.eup %3263 }
 0x53e   : > { %v2053_v38 = vpop.f32.mrf.mxu3  ;;  %v2058_v5 = vmul.f32 %v3264_v50, %v3260_v35 }
 0x53f   : > { %3265 = vrcp.f32 %v2053_v38 }
 0x545   : > { %v3266_v32 = vpop.eup %3265 }
 0x546   : > { %v2059_v63 = vmul.f32 %v3266_v32, %v3262_v21 }
 0x548   : > { %v2060_v51 = vpack.c.bf16 %v2059_v63, %v2058_v5 }
 0x54a   : > { %2069 = vmatmul.bf16.vlgmr.msrb.gmra.mxu1 %v2060_v51 }
 0x5c7   : > { %v2070_v45 = vpop.f32.mrf.mxu1 }
 0x5cf   : > { %v2072_v41 = vpop.f32.mrf.mxu1 }
 0x5d0   : > { %v2075_v24 = vpack.c.bf16 %v2072_v41, %v2070_v45 }
 0x5d2   : > { %2992 = vmatmul.msk.bf16.vlgmr.msrb.gmra.mxu0 %vm701_vm0, %v2075_v24 }
 0x64f   : > { %v2115_v57 = vpop.f32.mrf.mxu0 }
 0x650   : > { %v2116_v29 = vadd.f32 %v5102_v30, %v2115_v57 }
 0x652   : > { %v2120_v31 = vadd.f32 %v2116_v29, %v4893_v22  ;;  %v2238_v22 = vpop.permute.xlu1 %2237  ;;  %v5184_v29 = vld [vmem:[%s5492_s8] ss:$0 sm:$0xff] }
 0x654   : > { %v2122_v33 = vsel %vm701_vm0, %v2120_v31, 0.0 }
 0x655   : > { %2123 = vadd.xlane.f32.xlu2 %v2122_v33 }
 0x657   : > { %v2117_v53 = vpop.f32.mrf.mxu0 }
 0x658   : > { %v2118_v19 = vadd.f32 %v5102_v30, %v2117_v53 }
 0x65a   : > { %v2121_v17 = vadd.f32 %v2118_v19, %v4895_v18  ;;  %v2240_v3 = vpop.permute.xlu1 %2239 }
 0x65b   : > { %v2248_v14 = vsel %vm701_vm0, %v2238_v22, %v2240_v3 }
 0x65c   : > { %v2125_v60 = vsel %vm701_vm0, %v2121_v17, 0.0  ;;  %2268 = vmatpush.bf16.msra.mxu3 %v2248_v14 }
 0x65d   : > { %2126 = vadd.xlane.f32.xlu0 %v2125_v60  ;;  %v5198_v60 = vld [vmem:[%s5493_s9] ss:$0 sm:$0xff] }
 0x662   : > { %v2234_v25 = vpop.permute.xlu1 %2233 }
 0x66a   : > { %v2236_v10 = vpop.permute.xlu1 %2235 }
 0x66b   : > { %v2247_v36 = vsel %vm701_vm0, %v2234_v25, %v2236_v10  ;;  %v5204_v25 = vld [vmem:[%s5503_s19 + $0x60] sm:$0xff] }
 0x66c   : > { %2269 = vmatpush.bf16.msra.mxu3 %v2247_v36 }
 0x66d   : > { %2231 = vrot.lane.b32.xlu2 %v4823_v1, %s5665_s24 }
 0x675   : > { %2256 = vrot.lane.b32.xlu2 %v4932_v15, %s5665_s24  ;;  %v2230_v15 = vpop.permute.xlu1 %2229 }
 0x6c8   : > { %v2124_v18 = vpop.xlane.xlu2 %2123 }
 0x6c9   : > { %v2128_v7 = vmul.f32 %v2124_v18, %v5669_v0 }
 0x6cb   : > { %v5119_v48 = vsub.f32 %v2120_v31, %v2128_v7 }
 0x6cd   : > { %v2132_v1 = vmul.f32 %v5119_v48, %v5119_v48 }
 0x6cf   : > { %v2134_v23 = vsel %vm701_vm0, %v2132_v1, 0.0 }
 0x6d0   : > { %v2127_v37 = vpop.xlane.xlu0 %2126  ;;  %2135 = vadd.xlane.f32.xlu0 %v2134_v23  ;;  %v2232_v26 = vpop.permute.xlu2 %2231  ;;  %v2189_v23 = vld [vmem:[%s5503_s19 + $0x58] sm:$0xff] }
 0x6d1   : > { %v2129_v59 = vmul.f32 %v2127_v37, %v5669_v0  ;;  %v2246_v54 = vsel %vm701_vm0, %v2230_v15, %v2232_v26 }
 0x6d2   : > { %2270 = vmatpush.bf16.msra.mxu3 %v2246_v54 }
 0x6d3   : > { %v2131_v55 = vsub.f32 %v2121_v17, %v2129_v59 }
 0x6d5   : > { %v2133_v49 = vmul.f32 %v2131_v55, %v2131_v55  ;;  %2994 = vmatmul.msk.bf16.vlgmr.msra.gmra.mxu3 %vm701_vm0, %v2228_v34  ;;  %v5232_v34 = vld [vmem:[%s5503_s19 + $0x48] sm:$0xff] }
 0x6d7   : > { %v2137_v8 = vsel %vm701_vm0, %v2133_v49, 0.0 }
 0x6d8   : > { %2138 = vadd.xlane.f32.xlu1 %v2137_v8  ;;  %v2257_v51 = vpop.permute.xlu2 %2256 }
 0x6e4   : > { %2254 = vrot.lane.b32.xlu0 %v4930_v6, %s5665_s24 }
 0x6f1   : > { %2345 = vrot.lane.b32.xlu1 %v2192_v20, %s5665_s24 }
 0x6f9   : > { %2343 = vrot.lane.b32.xlu1 %v2191_v13, %s5665_s24 }
 0x701   : > { %2337 = vrot.lane.b32.xlu1 %v5144_v4, %s5665_s24 }
 0x709   : > { %2333 = vrot.lane.b32.xlu1 %v5151_v28, %s5665_s24 }
 0x711   : > { %2331 = vrot.lane.b32.xlu1 %v5158_v43, %s5665_s24 }
 0x719   : > { %2321 = vrot.lane.b32.xlu1 %v5165_v39, %s5665_s24 }
 0x721   : > { %2319 = vrot.lane.b32.xlu1 %v5172_v52, %s5665_s24 }
 0x743   : > { %v2136_v56 = vpop.xlane.xlu0 %2135 }
 0x744   : > { %v2140_v62 = vmul.f32 %v2136_v56, %v5669_v0 }
 0x746   : > { %v2142_v12 = vadd.f32 1e-05, %v2140_v62 }
 0x748   : > { %3267 = vrsqrt.f32 %v2142_v12  ;;  %vm2150_vm7 = vweird.f32 %v2142_v12 }
 0x74b   : > { %v2139_v40 = vpop.xlane.xlu1 %2138 }
 0x74c   : > { %v2141_v35 = vmul.f32 %v2139_v40, %v5669_v0  ;;  %v2183_v40 = vld [vmem:[%s5503_s19 + $0x28] sm:$0xff] }
 0x74e   : > { %v3268_v2 = vpop.eup %3267  ;;  %v2143_v21 = vadd.f32 1e-05, %v2141_v35 }
 0x74f   : > { %v2145_v16 = vmul.f32 %v3268_v2, %v2142_v12  ;;  %vm2151_vm6 = vweird.f32 %v3268_v2 }
 0x750   : > { %3269 = vrsqrt.f32 %v2143_v21  ;;  %vm2152_vm8 = vmor %vm2150_vm7, %vm2151_vm6  ;;  %vm2160_vm10 = vweird.f32 %v2143_v21 }
 0x751   : > { %v2146_v11 = vmul.f32 %v3268_v2, %v2145_v16 }
 0x753   : > { %v2147_v47 = vmul.f32 0.5, %v2146_v11 }
 0x755   : > { %v2148_v38 = vsub.f32 1.5, %v2147_v47 }
 0x756   : > { %v3270_v50 = vpop.eup %3269  ;;  %v2255_v63 = vpop.permute.xlu0 %2254 }
 0x757   : > { %v2149_v32 = vmul.f32 %v3268_v2, %v2148_v38  ;;  %v2155_v5 = vmul.f32 %v3270_v50, %v2143_v21  ;;  %v2258_v45 = vsel %vm701_vm0, %v2255_v63, %v2257_v51  ;;  %vm2161_vm9 = vweird.f32 %v3270_v50 }
 0x758   : > { %v2272_v42 = vpop.f32.mrf.mxu3  ;;  %vm2162_vm11 = vmor %vm2160_vm10, %vm2161_vm9 }
 0x759   : > { %v2156_v46 = vmul.f32 %v3270_v50, %v2155_v5  ;;  %v2153_v41 = vsel %vm2152_vm8, %v3268_v2, %v2149_v32  ;;  %v5179_v57 = vadd.f32 %v2272_v42, %v2258_v45  ;;  %v2178_v32 = vld [vmem:[%s5503_s19] sm:$0xff] }
 0x75a   : > { %v2164_v31 = vmul.f32 %v2153_v41, %v5119_v48 }
 0x75b   : > { %v2157_v24 = vmul.f32 0.5, %v2156_v46  ;;  %v2291_v17 = vmul.f32 %v5179_v57, %v2192_v20  ;;  %v2289_v18 = vmul.f32 %v5179_v57, %v5204_v25  ;;  %v2287_v26 = vmul.f32 %v5179_v57, %v5144_v4 }
 0x75c   : > { %v2169_v22 = vmul.f32 %v5184_v29, %v2164_v31  ;;  %v2285_v49 = vmul.f32 %v5179_v57, %v5151_v28  ;;  %v2182_v28 = vld [vmem:[%s5503_s19 + $0x20] sm:$0xff]  ;;  %v2279_v47 = vmul.f32 %v5179_v57, %v5165_v39  ;;  %v2277_v63 = vmul.f32 %v5179_v57, %v2178_v32 }
 0x75d   : > { %v2158_v61 = vsub.f32 1.5, %v2157_v24  ;;  %v2281_v2 = vmul.f32 %v5179_v57, %v2182_v28 }
 0x75e   : > { %v5213_v48 = vadd.f32 %v5198_v60, %v2169_v22  ;;  %v2205_v22 = vld [vmem:[%s5504_s20 + $0x58] sm:$0xff] }
 0x75f   : > { %v2159_v33 = vmul.f32 %v3270_v50, %v2158_v61 }
 0x760   : > { %v2274_v44 = vpop.f32.mrf.mxu3 }
 0x761   : > { %v2163_v53 = vsel %vm2162_vm11, %v3270_v50, %v2159_v33  ;;  %v5192_v19 = vadd.f32 %v2274_v44, %v2258_v45 }
 0x762   : > { %v2165_v3 = vmul.f32 %v2163_v53, %v2131_v55 }
 0x763   : > { %v2292_v14 = vmul.f32 %v5192_v19, %v5190_v9  ;;  %v2290_v7 = vmul.f32 %v5192_v19, %v2191_v13  ;;  %v2288_v59 = vmul.f32 %v5192_v19, %v2189_v23  ;;  %v2286_v8 = vmul.f32 %v5192_v19, %v5232_v34  ;;  %v2184_v13 = vld [vmem:[%s5503_s19 + $0x30] sm:$0xff] }
 0x764   : > { %v2170_v10 = vmul.f32 %v5184_v29, %v2165_v3  ;;  %v2283_v56 = vmul.f32 %v5179_v57, %v2184_v13  ;;  %v2284_v62 = vmul.f32 %v5192_v19, %v5158_v43  ;;  %v2282_v21 = vmul.f32 %v5192_v19, %v2183_v40  ;;  %v2181_v43 = vld [vmem:[%s5503_s19 + $0x18] sm:$0xff]  ;;  %v2204_v3 = vld [vmem:[%s5504_s20 + $0x50] sm:$0xff] }
 0x765   : > { %v2300_v36 = vpack.c.bf16 %v2292_v14, %v2291_v17  ;;  %v2299_v58 = vpack.c.bf16 %v2290_v7, %v2289_v18  ;;  %v2298_v54 = vpack.c.bf16 %v2288_v59, %v2287_v26  ;;  %v2297_v20 = vpack.c.bf16 %v2286_v8, %v2285_v49  ;;  %v2207_v17 = vld [vmem:[%s5504_s20 + $0x68] sm:$0xff]  ;;  %v2198_v7 = vld [vmem:[%s5504_s20 + $0x20] sm:$0xff] }
 0x766   : > { %v5216_v1 = vadd.f32 %v5198_v60, %v2170_v10  ;;  %v2296_v12 = vpack.c.bf16 %v2284_v62, %v2283_v56  ;;  %v2295_v16 = vpack.c.bf16 %v2282_v21, %v2281_v2  ;;  %v2280_v38 = vmul.f32 %v5192_v19, %v2181_v43  ;;  %v2203_v14 = vld [vmem:[%s5504_s20 + $0x48] sm:$0xff]  ;;  %v2202_v10 = vld [vmem:[%s5504_s20 + $0x40] sm:$0xff] }
 0x767   : > { %v2415_v15 = vsel %vm701_vm0, %v2300_v36, 0  ;;  %v2412_v37 = vsel %vm701_vm0, %v2299_v58, 0  ;;  %v2409_v55 = vsel %vm701_vm0, %v2298_v54, 0  ;;  %v2406_v4 = vsel %vm701_vm0, %v2297_v20, 0  ;;  %v2200_v36 = vld [vmem:[%s5504_s20 + $0x30] sm:$0xff]  ;;  %v2199_v18 = vld [vmem:[%s5504_s20 + $0x28] sm:$0xff] }
 0x768   : > { %v2210_v27 = vpack.c.bf16 %v5216_v1, %v5213_v48  ;;  %2417 = vmatpush.bf16.xpose.msra.mxu1 %v2415_v15  ;;  %v2403_v35 = vsel %vm701_vm0, %v2296_v12, 0  ;;  %v2400_v11 = vsel %vm701_vm0, %v2295_v16, 0  ;;  %v2294_v50 = vpack.c.bf16 %v2280_v38, %v2279_v47  ;;  %v2197_v15 = vld [vmem:[%s5504_s20 + $0x18] sm:$0xff]  ;;  %v2195_v58 = vld [vmem:[%s5504_s20 + $0x8] sm:$0xff] }
 0x769   : > { %v2278_v51 = vmul.f32 %v5192_v19, %v5172_v52  ;;  %v2209_v52 = vld [vmem:[%s5504_s20 + $0x78] sm:$0xff] }
 0x76a   : > { %2993 = vmatmul.msk.bf16.vlgmr.msra.gmra.mxu0 %vm701_vm0, %v2210_v27  ;;  %v2397_v5 = vsel %vm701_vm0, %v2294_v50, 0  ;;  %v2196_v27 = vld [vmem:[%s5504_s20 + $0x10] sm:$0xff] }
 0x76b   : > { %v2293_v42 = vpack.c.bf16 %v2278_v51, %v2277_v63  ;;  %2443 = vmatpush.msrb.mxu0 %v2209_v52 }
 0x76d   : > { %v2394_v46 = vsel %vm701_vm0, %v2293_v42, 0 }
 0x770   : > { %2418 = vmatpush.bf16.xpose.msra.mxu1 %v2412_v37  ;;  %v2346_v37 = vpop.permute.xlu1 %2345 }
 0x771   : > { %v2379_v2 = vmul.f32 %v2346_v37, %v5179_v57 }
 0x778   : > { %2419 = vmatpush.bf16.xpose.msra.mxu1 %v2409_v55  ;;  %v2344_v26 = vpop.permute.xlu1 %2343 }
 0x779   : > { %v2378_v56 = vmul.f32 %v2344_v26, %v5192_v19 }
 0x780   : > { %2420 = vmatpush.bf16.xpose.msra.mxu1 %v2406_v4  ;;  %v2338_v49 = vpop.permute.xlu1 %2337 }
 0x781   : > { %v2375_v38 = vmul.f32 %v2338_v49, %v5179_v57 }
 0x788   : > { %2421 = vmatpush.bf16.xpose.msra.mxu1 %v2403_v35 }
 0x790   : > { %2422 = vmatpush.bf16.xpose.msra.mxu1 %v2400_v11 }
 0x798   : > { %2423 = vmatpush.bf16.xpose.msra.mxu1 %v2397_v5 }
 0x7a0   : > { %2424 = vmatpush.bf16.xpose.msra.mxu1 %v2394_v46 }
 0x7e7   : > { %v2223_v39 = vpop.f32.mrf.mxu0 }
 0x7e8   : > { %v2224_v41 = vadd.f32 %v2223_v39, %v4930_v6 }
 0x7ef   : > { %v2225_v45 = vpop.f32.mrf.mxu0 }
 0x7f0   : > { %v2226_v24 = vadd.f32 %v2225_v45, %v4930_v6  ;;  %v2208_v6 = vld [vmem:[%s5504_s20 + $0x70] sm:$0xff] }
 0x7f1   : > { %2444 = vmatpush.msrb.mxu0 %v2208_v6 }
 0x7f2   : > { %v2389_v61 = vpack.c.bf16 %v2226_v24, %v2224_v41 }
 0x7f3   : > { %2445 = vmatpush.msrb.mxu0 %v2207_v17 }
 0x7f4   : > { %2995 = vmatmul.msk.bf16.vlgmr.msra.gmra.mxu1 %vm701_vm0, %v2389_v61 }
 0x871   : > { %v2426_v31 = vpop.f32.mrf.mxu1 }
 0x872   : > { %v2431_v33 = vmul.f32 0.35355338, %v2426_v31 }
 0x874   : > { %2433 = vmax.xlane.f32.xlu0 %v2431_v33 }
 0x879   : > { %v2428_v44 = vpop.f32.mrf.mxu1 }
 0x87a   : > { %v2432_v53 = vmul.f32 0.35355338, %v2428_v44 }
 0x87c   : > { %2435 = vmax.xlane.f32.xlu2 %v2432_v53 }
 0x888   : > { %2347 = vrot.lane.b32.xlu0 %v5190_v9, %s5665_s24  ;;  %v2206_v9 = vld [vmem:[%s5504_s20 + $0x60] sm:$0xff] }
 0x889   : > { %2446 = vmatpush.msrb.mxu0 %v2206_v9 }
 0x88b   : > { %2447 = vmatpush.msrb.mxu0 %v2205_v22 }
 0x88d   : > { %2448 = vmatpush.msrb.mxu0 %v2204_v3 }
 0x88f   : > { %2449 = vmatpush.msrb.mxu0 %v2203_v14 }
 0x890   : > { %2339 = vrot.lane.b32.xlu0 %v2189_v23, %s5665_s24  ;;  %v2194_v23 = vld [vmem:[%s5504_s20] sm:$0xff] }
 0x891   : > { %2450 = vmatpush.msrb.mxu0 %v2202_v10 }
 0x894   : > { %2341 = vrot.lane.b32.xlu2 %v5204_v25, %s5665_s24  ;;  %v2201_v25 = vld [vmem:[%s5504_s20 + $0x38] sm:$0xff] }
 0x895   : > { %2451 = vmatpush.msrb.mxu0 %v2201_v25 }
 0x897   : > { %2452 = vmatpush.msrb.mxu0 %v2200_v36 }
 0x898   : > { %2329 = vrot.lane.b32.xlu0 %v2184_v13, %s5665_s24 }
 0x899   : > { %2453 = vmatpush.msrb.mxu0 %v2199_v18 }
 0x89b   : > { %2454 = vmatpush.msrb.mxu0 %v2198_v7 }
 0x89c   : > { %2335 = vrot.lane.b32.xlu2 %v5232_v34, %s5665_s24 }
 0x89d   : > { %2455 = vmatpush.msrb.mxu0 %v2197_v15 }
 0x89f   : > { %2456 = vmatpush.msrb.mxu0 %v2196_v27 }
 0x8a0   : > { %2327 = vrot.lane.b32.xlu0 %v2183_v40, %s5665_s24 }
 0x8a1   : > { %2457 = vmatpush.msrb.mxu0 %v2195_v58 }
 0x8a3   : > { %2458 = vmatpush.msrb.mxu0 %v2194_v23 }
 0x8a4   : > { %2325 = vrot.lane.b32.xlu2 %v2182_v28, %s5665_s24  ;;  %v2334_v28 = vpop.permute.xlu1 %2333 }
 0x8a5   : > { %v2373_v50 = vmul.f32 %v2334_v28, %v5179_v57 }
 0x8a8   : > { %2317 = vrot.lane.b32.xlu0 %v2178_v32, %s5665_s24 }
 0x8ac   : > { %2323 = vrot.lane.b32.xlu2 %v2181_v43, %s5665_s24  ;;  %v2332_v5 = vpop.permute.xlu1 %2331 }
 0x8ad   : > { %v2372_v39 = vmul.f32 %v2332_v5, %v5192_v19  ;;  %v3086_v5 = vld [vmem:[%s5494_s10 + $0x18] sm:$0xff] }
 0x8ae   : > { %2629 = vmatpush.bf16.msra.mxu0 %v3086_v5 }
 0x8b4   : > { %v2322_v24 = vpop.permute.xlu1 %2321 }
 0x8b5   : > { %v2367_v31 = vmul.f32 %v2322_v24, %v5179_v57 }
 0x8bc   : > { %v2320_v9 = vpop.permute.xlu1 %2319 }
 0x8bd   : > { %v2366_v3 = vmul.f32 %v2320_v9, %v5192_v19 }
 0x8e7   : > { %v2434_v59 = vpop.xlane.xlu0 %2433 }
 0x8e8   : > { %v2437_v54 = vsub.f32 %v2431_v33, %v2434_v59 }
 0x8ea   : > { %v2439_v34 = vmul.f32 1.442695, %v2437_v54 }
 0x8ec   : > { %3271 = vpow2.f32 %v2439_v34 }
 0x8ef   : > { %v2436_v55 = vpop.xlane.xlu2 %2435 }
 0x8f0   : > { %v2438_v8 = vsub.f32 %v2432_v53, %v2436_v55 }
 0x8f2   : > { %v5333_v20 = vpop.eup %3271  ;;  %v2441_v13 = vmul.f32 1.442695, %v2438_v8 }
 0x8f3   : > { %2459 = vmatmul.f32.vlgmr.msrb.gmra.mxu0 %v5333_v20 }
 0x8f4   : > { %3273 = vpow2.f32 %v2441_v13 }
 0x8f7   : > { %v2342_v4 = vpop.permute.xlu2 %2341 }
 0x8f8   : > { %v2377_v62 = vmul.f32 %v2342_v4, %v5179_v57 }
 0x8fa   : > { %v5338_v12 = vpop.eup %3273  ;;  %v2387_v40 = vpack.c.bf16 %v2378_v56, %v2377_v62  ;;  %v2348_v35 = vpop.permute.xlu0 %2347 }
 0x8fb   : > { %v2380_v21 = vmul.f32 %v2348_v35, %v5192_v19  ;;  %2462 = vmatmul.f32.gmra.mxu0 %v5338_v12 }
 0x8fc   : > { %2491 = vrot.lane.b32.xlu0 %v2387_v40, %s5665_s24 }
 0x8fd   : > { %v2388_v16 = vpack.c.bf16 %v2380_v21, %v2379_v2 }
 0x8ff   : > { %2493 = vrot.lane.b32.xlu2 %v2388_v16, %s5665_s24  ;;  %v2336_v43 = vpop.permute.xlu2 %2335 }
 0x900   : > { %v2374_v11 = vmul.f32 %v2336_v43, %v5192_v19 }
 0x902   : > { %v2340_v47 = vpop.permute.xlu0 %2339  ;;  %v2385_v63 = vpack.c.bf16 %v2374_v11, %v2373_v50 }
 0x903   : > { %v2376_v32 = vmul.f32 %v2340_v47, %v5192_v19 }
 0x905   : > { %v2386_v51 = vpack.c.bf16 %v2376_v32, %v2375_v38 }
 0x907   : > { %2489 = vrot.lane.b32.xlu1 %v2386_v51, %s5665_s24  ;;  %2487 = vrot.lane.b32.xlu2 %v2385_v63, %s5665_s24  ;;  %v2326_v42 = vpop.permute.xlu2 %2325  ;;  %v3085_v63 = vld [vmem:[%s5494_s10 + $0x10] sm:$0xff]  ;;  %v3094_v51 = vld [vmem:[%s5496_s12 + $0x38] sm:$0xff] }
 0x908   : > { %v2369_v52 = vmul.f32 %v2326_v42, %v5179_v57  ;;  %2630 = vmatpush.bf16.msra.mxu0 %v3085_v63  ;;  %2710 = vmatpush.bf16.msrb.mxu2 %v3094_v51 }
 0x90a   : > { %v2330_v46 = vpop.permute.xlu0 %2329 }
 0x90b   : > { %v2371_v45 = vmul.f32 %v2330_v46, %v5179_v57 }
 0x90d   : > { %v2384_v41 = vpack.c.bf16 %v2372_v39, %v2371_v45  ;;  %v3084_v39 = vld [vmem:[%s5494_s10 + $0x8] sm:$0xff]  ;;  %v3093_v45 = vld [vmem:[%s5496_s12 + $0x30] sm:$0xff] }
 0x90e   : > { %2631 = vmatpush.bf16.msra.mxu0 %v3084_v39  ;;  %2711 = vmatpush.bf16.msrb.mxu2 %v3093_v45 }
 0x90f   : > { %2485 = vrot.lane.b32.xlu0 %v2384_v41, %s5665_s24  ;;  %v2324_v61 = vpop.permute.xlu2 %2323 }
 0x910   : > { %v2368_v33 = vmul.f32 %v2324_v61, %v5192_v19 }
 0x912   : > { %v2382_v44 = vpack.c.bf16 %v2368_v33, %v2367_v31  ;;  %v2328_v53 = vpop.permute.xlu0 %2327  ;;  %v3083_v31 = vld [vmem:[%s5494_s10] sm:$0xff]  ;;  %v3092_v33 = vld [vmem:[%s5496_s12 + $0x28] sm:$0xff] }
 0x913   : > { %v2370_v6 = vmul.f32 %v2328_v53, %v5192_v19  ;;  %2632 = vmatpush.bf16.msra.mxu0 %v3083_v31  ;;  %2712 = vmatpush.bf16.msrb.mxu2 %v3092_v33  ;;  %v3095_v33 = vld [vmem:[%s5500_s16] sm:$0xff] }
 0x914   : > { %2481 = vrot.lane.b32.xlu2 %v2382_v44, %s5665_s24 }
 0x915   : > { %v2383_v17 = vpack.c.bf16 %v2370_v6, %v2369_v52  ;;  %v3091_v52 = vld [vmem:[%s5496_s12 + $0x20] sm:$0xff] }
 0x917   : > { %2483 = vrot.lane.b32.xlu1 %v2383_v17, %s5665_s24  ;;  %2713 = vmatpush.bf16.msrb.mxu2 %v3091_v52 }
 0x91a   : > { %v2318_v22 = vpop.permute.xlu0 %2317 }
 0x91b   : > { %v2365_v14 = vmul.f32 %v2318_v22, %v5179_v57 }
 0x91d   : > { %v2381_v10 = vpack.c.bf16 %v2366_v3, %v2365_v14 }
 0x91f   : > { %2479 = vrot.lane.b32.xlu0 %v2381_v10, %s5665_s24  ;;  %s2847_s24 = sshll.u32 %s664_s28, 4  ;;  %s2848_s24 = int_to_ptr.vmem [resolvable:$true] %s2847_s24 }
 0x959   : > { %v2494_v25 = vpop.permute.xlu2 %2493 }
 0x95a   : > { %2503 = vmatpush.bf16.msrb.mxu3 %v2494_v25 }
 0x961   : > { %v2488_v15 = vpop.permute.xlu2 %2487 }
 0x96e   : > { %v2492_v36 = vpop.permute.xlu0 %2491  ;;  %v2482_v23 = vpop.permute.xlu2 %2481 }
 0x96f   : > { %2504 = vmatpush.bf16.msrb.mxu3 %v2492_v36 }
 0x970   : > { %v2460_v18 = vpop.f32.mrf.mxu0 }
 0x978   : > { %v2463_v58 = vpop.f32.mrf.mxu0 }
 0x979   : > { %v2490_v7 = vpop.permute.xlu1 %2489  ;;  %3275 = vrcp.f32 %v2463_v58 }
 0x97a   : > { %2505 = vmatpush.bf16.msrb.mxu3 %v2490_v7  ;;  %3277 = vrcp.f32 %v2460_v18 }
 0x97e   : > { %2506 = vmatpush.bf16.msrb.mxu3 %v2488_v15 }
 0x97f   : > { %v3276_v57 = vpop.eup %3275 }
 0x980   : > { %v3278_v37 = vpop.eup %3277  ;;  %v2469_v26 = vmul.f32 %v3276_v57, %v5338_v12 }
 0x981   : > { %v2486_v27 = vpop.permute.xlu0 %2485  ;;  %v2468_v59 = vmul.f32 %v3278_v37, %v5333_v20  ;;  %v3090_v37 = vld [vmem:[%s5496_s12 + $0x18] sm:$0xff] }
 0x982   : > { %2507 = vmatpush.bf16.msrb.mxu3 %v2486_v27  ;;  %2714 = vmatpush.bf16.msrb.mxu2 %v3090_v37 }
 0x983   : > { %v2470_v34 = vpack.c.bf16 %v2469_v26, %v2468_v59  ;;  %v3089_v26 = vld [vmem:[%s5496_s12 + $0x10] sm:$0xff] }
 0x986   : > { %2715 = vmatpush.bf16.msrb.mxu2 %v3089_v26 }
 0x989   : > { %v2484_v19 = vpop.permute.xlu1 %2483 }
 0x98a   : > { %2508 = vmatpush.bf16.msrb.mxu3 %v2484_v19 }
 0x98e   : > { %2509 = vmatpush.bf16.msrb.mxu3 %v2482_v23 }
 0x991   : > { %v2480_v54 = vpop.permute.xlu0 %2479 }
 0x992   : > { %2510 = vmatpush.bf16.msrb.mxu3 %v2480_v54  ;;  %v3151_v54 = vld [vmem:[%s5495_s11] ss:$0 sm:$0xff] }
 0x995   : > { %2511 = vmatmul.bf16.vlgmr.msrb.gmra.mxu3 %v2470_v34 }
 0xa18   : > { %v2512_v55 = vpop.f32.mrf.mxu3 }
 0xa20   : > { %v2514_v49 = vpop.f32.mrf.mxu3 }
 0xa21   : > { %v2517_v8 = vpack.c.bf16 %v2514_v49, %v2512_v55 }
 0xa23   : > { %2996 = vmatmul.msk.bf16.vlgmr.msra.gmra.mxu2 %vm701_vm0, %v2517_v8 }
 0xaa6   : > { %v2530_v13 = vpop.f32.mrf.mxu2 }
 0xaa7   : > { %v2531_v4 = vadd.f32 %v5102_v30, %v2530_v13 }
 0xaa9   : > { %v2535_v56 = vadd.f32 %v2531_v4, %v5213_v48 }
 0xaab   : > { %v2537_v62 = vsel %vm701_vm0, %v2535_v56, 0.0 }
 0xaac   : > { %2538 = vadd.xlane.f32.xlu1 %v2537_v62 }
 0xaae   : > { %v2532_v12 = vpop.f32.mrf.mxu2 }
 0xaaf   : > { %v2533_v20 = vadd.f32 %v5102_v30, %v2532_v12 }
 0xab1   : > { %v2536_v28 = vadd.f32 %v2533_v20, %v5216_v1 }
 0xab3   : > { %v2540_v40 = vsel %vm701_vm0, %v2536_v28, 0.0 }
 0xab4   : > { %2541 = vadd.xlane.f32.xlu2 %v2540_v40 }
 0xb1f   : > { %v2539_v35 = vpop.xlane.xlu1 %2538 }
 0xb20   : > { %v2543_v2 = vmul.f32 %v2539_v35, %v5669_v0 }
 0xb22   : > { %v2545_v21 = vsub.f32 %v2535_v56, %v2543_v2  ;;  %v3152_v56 = vld [vmem:[%s5497_s13] ss:$0 sm:$0xff] }
 0xb24   : > { %v2547_v16 = vmul.f32 %v2545_v21, %v2545_v21 }
 0xb26   : > { %v2549_v43 = vsel %vm701_vm0, %v2547_v16, 0.0 }
 0xb27   : > { %v2542_v11 = vpop.xlane.xlu2 %2541  ;;  %2550 = vadd.xlane.f32.xlu0 %v2549_v43 }
 0xb28   : > { %v2544_v48 = vmul.f32 %v2542_v11, %v5669_v0 }
 0xb2a   : > { %v2546_v47 = vsub.f32 %v2536_v28, %v2544_v48 }
 0xb2c   : > { %v2548_v38 = vmul.f32 %v2546_v47, %v2546_v47 }
 0xb2e   : > { %v2552_v30 = vsel %vm701_vm0, %v2548_v38, 0.0 }
 0xb2f   : > { %2553 = vadd.xlane.f32.xlu1 %v2552_v30 }
 0xb9a   : > { %v2551_v1 = vpop.xlane.xlu0 %2550 }
 0xb9b   : > { %v2555_v50 = vmul.f32 %v2551_v1, %v5669_v0 }
 0xb9d   : > { %v2557_v32 = vadd.f32 1e-05, %v2555_v50 }
 0xb9f   : > { %3279 = vrsqrt.f32 %v2557_v32  ;;  %vm2565_vm13 = vweird.f32 %v2557_v32 }
 0xba2   : > { %v2554_v42 = vpop.xlane.xlu1 %2553 }
 0xba3   : > { %v2556_v46 = vmul.f32 %v2554_v42, %v5669_v0  ;;  %v3098_v42 = vld [vmem:[%s5500_s16 + $0x18] sm:$0xff] }
 0xba4   : > { %2822 = vmatpush.bf16.msra.mxu3 %v3098_v42 }
 0xba5   : > { %v3280_v41 = vpop.eup %3279  ;;  %v2558_v24 = vadd.f32 1e-05, %v2556_v46  ;;  %v3097_v46 = vld [vmem:[%s5500_s16 + $0x10] sm:$0xff] }
 0xba6   : > { %v2560_v61 = vmul.f32 %v3280_v41, %v2557_v32  ;;  %vm2566_vm12 = vweird.f32 %v3280_v41 }
 0xba7   : > { %3281 = vrsqrt.f32 %v2558_v24  ;;  %vm2567_vm14 = vmor %vm2565_vm13, %vm2566_vm12  ;;  %vm2575_vm1 = vweird.f32 %v2558_v24 }
 0xba8   : > { %v2561_v44 = vmul.f32 %v3280_v41, %v2560_v61  ;;  %2823 = vmatpush.bf16.msra.mxu3 %v3097_v46 }
 0xbaa   : > { %v2562_v53 = vmul.f32 0.5, %v2561_v44 }
 0xbac   : > { %v2563_v6 = vsub.f32 1.5, %v2562_v53 }
 0xbad   : > { %v3282_v17 = vpop.eup %3281 }
 0xbae   : > { %v2564_v9 = vmul.f32 %v3280_v41, %v2563_v6  ;;  %v2570_v22 = vmul.f32 %v3282_v17, %v2558_v24  ;;  %vm2576_vm15 = vweird.f32 %v3282_v17 }
 0xbaf   : > { %vm2577_vm2 = vmor %vm2575_vm1, %vm2576_vm15 }
 0xbb0   : > { %v2571_v3 = vmul.f32 %v3282_v17, %v2570_v22  ;;  %v2568_v14 = vsel %vm2567_vm14, %v3280_v41, %v2564_v9  ;;  %v3096_v41 = vld [vmem:[%s5500_s16 + $0x8] sm:$0xff] }
 0xbb1   : > { %v2579_v36 = vmul.f32 %v2568_v14, %v2545_v21  ;;  %2824 = vmatpush.bf16.msra.mxu3 %v3096_v41 }
 0xbb2   : > { %v2572_v10 = vmul.f32 0.5, %v2571_v3 }
 0xbb3   : > { %v2581_v15 = vmul.f32 %v5184_v29, %v2579_v36 }
 0xbb4   : > { %v2573_v25 = vsub.f32 1.5, %v2572_v10  ;;  %v3153_v10 = vld [vmem:[%s5498_s14] ss:$0 sm:$0xff] }
 0xbb5   : > { %v2583_v19 = vadd.f32 %v5198_v60, %v2581_v15  ;;  %2825 = vmatpush.bf16.msra.mxu3 %v3095_v33 }
 0xbb6   : > { %v2574_v18 = vmul.f32 %v3282_v17, %v2573_v25 }
 0xbb8   : > { %v2578_v7 = vsel %vm2577_vm2, %v3282_v17, %v2574_v18 }
 0xbb9   : > { %v2580_v27 = vmul.f32 %v2578_v7, %v2546_v47  ;;  %v3154_v7 = vld [vmem:[%s5499_s15] ss:$0 sm:$0xff] }
 0xbbb   : > { %v2582_v58 = vmul.f32 %v5184_v29, %v2580_v27  ;;  %v3088_v29 = vld [vmem:[%s5496_s12 + $0x8] sm:$0xff] }
 0xbbc   : > { %2716 = vmatpush.bf16.msrb.mxu2 %v3088_v29 }
 0xbbd   : > { %v2584_v57 = vadd.f32 %v5198_v60, %v2582_v58  ;;  %v3087_v60 = vld [vmem:[%s5496_s12] sm:$0xff] }
 0xbbf   : > { %v2585_v23 = vpack.c.bf16 %v2584_v57, %v2583_v19 }
 0xbc0   : > { %2717 = vmatpush.bf16.msrb.mxu2 %v3087_v60 }
 0xbc1   : > { %3013 = vmatmul.msk.bf16.vlgmr.msra.gmra.mxu0 %vm701_vm0, %v2585_v23 }
 0xc3e   : > { %v2634_v59 = vpop.f32.mrf.mxu0 }
 0xc3f   : > { %v2635_v34 = vadd.f32 %v3151_v54, %v2634_v59 }
 0xc41   : > { %v2639_v8 = vmax.f32 %v2635_v34, 0.0 }
 0xc46   : > { %v2636_v55 = vpop.f32.mrf.mxu0 }
 0xc47   : > { %v2637_v49 = vadd.f32 %v3151_v54, %v2636_v55 }
 0xc49   : > { %v2640_v13 = vmax.f32 %v2637_v49, 0.0 }
 0xc4b   : > { %v2641_v4 = vpack.c.bf16 %v2640_v13, %v2639_v8 }
 0xc4d   : > { %2718 = vmatmul.bf16.vlgmr.msrb.gmra.mxu2 %v2641_v4 }
 0xcd0   : > { %v2719_v62 = vpop.f32.mrf.mxu2 }
 0xcd1   : > { %v2720_v12 = vadd.f32 %v3152_v56, %v2719_v62 }
 0xcd3   : > { %v2724_v20 = vadd.f32 %v2720_v12, %v2583_v19 }
 0xcd5   : > { %v2728_v28 = vsel %vm701_vm0, %v2724_v20, 0.0 }
 0xcd6   : > { %2729 = vadd.xlane.f32.xlu2 %v2728_v28 }
 0xcd8   : > { %v2721_v40 = vpop.f32.mrf.mxu2 }
 0xcd9   : > { %v2722_v35 = vadd.f32 %v3152_v56, %v2721_v40 }
 0xcdb   : > { %v2725_v2 = vadd.f32 %v2722_v35, %v2584_v57 }
 0xcdd   : > { %v2731_v21 = vsel %vm701_vm0, %v2725_v2, 0.0 }
 0xcde   : > { %2732 = vadd.xlane.f32.xlu0 %v2731_v21 }
 0xd49   : > { %v2730_v16 = vpop.xlane.xlu2 %2729 }
 0xd4a   : > { %v2734_v43 = vmul.f32 %v2730_v16, %v5669_v0 }
 0xd4c   : > { %v2736_v11 = vsub.f32 %v2724_v20, %v2734_v43 }
 0xd4e   : > { %v2738_v48 = vmul.f32 %v2736_v11, %v2736_v11 }
 0xd50   : > { %v2740_v47 = vsel %vm701_vm0, %v2738_v48, 0.0 }
 0xd51   : > { %v2733_v38 = vpop.xlane.xlu0 %2732  ;;  %2741 = vadd.xlane.f32.xlu1 %v2740_v47 }
 0xd52   : > { %v2735_v30 = vmul.f32 %v2733_v38, %v5669_v0 }
 0xd54   : > { %v2737_v1 = vsub.f32 %v2725_v2, %v2735_v30 }
 0xd56   : > { %v2739_v50 = vmul.f32 %v2737_v1, %v2737_v1 }
 0xd58   : > { %v2743_v32 = vsel %vm701_vm0, %v2739_v50, 0.0 }
 0xd59   : > { %2744 = vadd.xlane.f32.xlu2 %v2743_v32 }
 0xdc4   : > { %v2742_v5 = vpop.xlane.xlu1 %2741 }
 0xdc5   : > { %v2746_v63 = vmul.f32 %v2742_v5, %v5669_v0 }
 0xdc7   : > { %v2748_v51 = vadd.f32 1e-05, %v2746_v63 }
 0xdc9   : > { %3283 = vrsqrt.f32 %v2748_v51  ;;  %vm2756_vm4 = vweird.f32 %v2748_v51 }
 0xdcc   : > { %v2745_v39 = vpop.xlane.xlu2 %2744 }
 0xdcd   : > { %v2747_v45 = vmul.f32 %v2745_v39, %v5669_v0 }
 0xdcf   : > { %v3284_v24 = vpop.eup %3283  ;;  %v2749_v61 = vadd.f32 1e-05, %v2747_v45 }
 0xdd0   : > { %v2751_v31 = vmul.f32 %v3284_v24, %v2748_v51  ;;  %vm2757_vm3 = vweird.f32 %v3284_v24 }
 0xdd1   : > { %3285 = vrsqrt.f32 %v2749_v61  ;;  %vm2758_vm5 = vmor %vm2756_vm4, %vm2757_vm3  ;;  %vm2766_vm7 = vweird.f32 %v2749_v61 }
 0xdd2   : > { %v2752_v44 = vmul.f32 %v3284_v24, %v2751_v31 }
 0xdd4   : > { %v2753_v53 = vmul.f32 0.5, %v2752_v44 }
 0xdd6   : > { %v2754_v52 = vsub.f32 1.5, %v2753_v53 }
 0xdd7   : > { %v3286_v6 = vpop.eup %3285 }
 0xdd8   : > { %v2755_v0 = vmul.f32 %v3284_v24, %v2754_v52  ;;  %v2761_v17 = vmul.f32 %v3286_v6, %v2749_v61  ;;  %vm2767_vm6 = vweird.f32 %v3286_v6 }
 0xdd9   : > { %vm2768_vm8 = vmor %vm2766_vm7, %vm2767_vm6 }
 0xdda   : > { %v2762_v9 = vmul.f32 %v3286_v6, %v2761_v17  ;;  %v2759_v22 = vsel %vm2758_vm5, %v3284_v24, %v2755_v0 }
 0xddb   : > { %v2770_v25 = vmul.f32 %v2759_v22, %v2736_v11 }
 0xddc   : > { %v2763_v3 = vmul.f32 0.5, %v2762_v9 }
 0xddd   : > { %v2775_v15 = vmul.f32 %v3153_v10, %v2770_v25 }
 0xdde   : > { %v2764_v14 = vsub.f32 1.5, %v2763_v3 }
 0xddf   : > { %v2780_v19 = vadd.f32 %v3154_v7, %v2775_v15 }
 0xde0   : > { %v2765_v36 = vmul.f32 %v3286_v6, %v2764_v14 }
 0xde2   : > { %v2769_v18 = vsel %vm2768_vm8, %v3286_v6, %v2765_v36 }
 0xde3   : > { %v2771_v27 = vmul.f32 %v2769_v18, %v2737_v1 }
 0xde5   : > { %v2776_v58 = vmul.f32 %v3153_v10, %v2771_v27 }
 0xde7   : > { %v2781_v57 = vadd.f32 %v3154_v7, %v2776_v58 }
 0xde9   : > { %v2782_v23 = vpack.c.bf16 %v2781_v57, %v2780_v19 }
 0xdeb   : > { %3062 = vmatmul.msk.bf16.vlgmr.msra.gmra.mxu3 %vm701_vm0, %v2782_v23 }
 0xe6e   : > { %v2827_v37 = vpop.f32.mrf.mxu3 }
 0xe6f   : > { %2832 = vst [vmem:[%s664_s28] sm:$0xff] %v2827_v37 }
 0xe76   : > { %v2829_v26 = vpop.f32.mrf.mxu3 }
 0xe77   : > { %2833 = vst [vmem:[%s664_s28 + $0x8] sm:$0xff] %v2829_v26 }
 0xe78   : > { %3314 = shalt.err (!%p3311_p3)
}
 0xe79   : > { %s3355_s26 = smov 128   ;;  %s3356_s28 = smov 8  }
 0xe7a   : > { %3101 = dma.vmem_to_hbm [thread:$0]  (%p3505_p5), %s2848_s24, 256, %s2850_s27, %s2835_s29, %s3355_s26, %s3355_s26, %s3356_s28  }
 0xe7b PF: > { %s5672_s0 = sld [smem:[#allocation7_spill]] }
 0xe7c   : > { %s5673_s21 = sld [smem:[#allocation5_spill]] }
 0xe81   : > { %p3107_p4 = scmp.ge.s32.totalorder %s5672_s0, 2 }
 0xe82   : > { %s2864_s3 = sand.u32 1, %s5673_s21  }
 0xe83   : > { %p3104_p7 = pnand %p3107_p4, %p3509_p6  ;;  %s2865_s22 = scalar_lea.sflag [#allocation3], %s2864_s3 }
 0xe85   : > { %p3105_p8 = pneg %p3104_p7 }
 0xe87   : > { %3332 = dma.done.wait (%p3105_p8), %s2865_s22, 256  }
 0xe88   : > { %3334 = vsyncadd (%p3105_p8), %s2865_s22, 4294967040  ;;  %s5675_s27 = sld [smem:[#allocation8_spill]]  ;;  %s5678_s2 = smov %s3341_s25 }
 0xe89   : > { %s5676_s6 = sld [smem:[#allocation6_spill]] }
 0xe8a   : > { %s5677_s26 = sld [smem:[#allocation9_spill]] }
 0xe8e   : > { %p31_p9 = scmp.ge.s32.totalorder %s5675_s27, 4  }
 0xe8f   : > { %s5679_s25 = smov %s5676_s6 }
 0xe90   :  { %33 = sbr.rel (!%p31_p9) target bundleno = 13 (0xd), region = 142 }
 0xe95   :  { %2871 = vsyncpa [#allocation3], 1 }
 0xe96   :  { %2873 = vsyncpa [#allocation3 + $0x1], 1 }

</bundles_post_ra>
